<compile_context>
chip_gen: v5e
topology: v5e:2x2
jax: 0.10.0
libtpu: 0.0.40
codegen_flags: <defaults>
</compile_context>

<pallas_src>
import functools
import math

import jax
import jax.numpy as jnp
from jax.experimental import pallas as pl
from jax.experimental.pallas import tpu as pltpu

PAD = 0  # Constants.PAD


# ----------------------------- in-kernel helpers -----------------------------

def _layer_norm(x, gamma, beta, eps=1e-6):
    # THP's sublayers use nn.LayerNorm(d_model, eps=1e-6).
    mu = jnp.mean(x, axis=-1, keepdims=True)
    var = jnp.mean((x - mu) ** 2, axis=-1, keepdims=True)
    return (x - mu) * jax.lax.rsqrt(var + eps) * gamma + beta


def _gelu_tanh(x):
    # TODO(synk): torch.F.gelu defaults to the exact erf formulation; the tanh
    # approximation is used because lax.erf may not lower inside Mosaic.
    c = 0.7978845608028654
    return 0.5 * x * (1.0 + jnp.tanh(c * (x + 0.044715 * x * x * x)))


# ------------------------------ encoder layer --------------------------------

def _make_encoder_kernel(n_head, d_k, d_v, *, with_enc, with_mask, need_attn):
    """Fused EncoderLayer kernel (MHA + residual + LN + FFN + residual + LN)."""
    h_dk = n_head * d_k
    h_dv = n_head * d_v

    def kernel(*refs):
        it = iter(refs)
        x_ref = next(it)
        enc_ref = next(it) if with_enc else None
        npm_ref = next(it)
        kp_ref = next(it) if with_mask else None
        (wqkv_ref, wo_ref, bo_ref, ln1g_ref, ln1b_ref,
         w1_ref, b1_ref, w2_ref, b2_ref, ln2g_ref, ln2b_ref) = [next(it) for _ in range(11)]
        out_ref = next(it)
        attn_ref = next(it) if need_attn else None

        x = x_ref[0]                                    # (S, D) fp32
        if with_enc:
            x = x + enc_ref[0]                          # fused positional residual
        npm = npm_ref[0]                                # (S, 1)
        S = x.shape[0]

        # --- fused QKV projection (bf16 MXU, fp32 accumulation) ---
        xb = x.astype(jnp.bfloat16)
        qkv = jnp.dot(xb, wqkv_ref[...],
                      preferred_element_type=jnp.float32)      # (S, 2*Hdk + Hdv)
        q = qkv[:, :h_dk]                                      # scale pre-folded
        k = qkv[:, h_dk:2 * h_dk]
        v = qkv[:, 2 * h_dk:2 * h_dk + h_dv]

        # --- attention bias rebuilt in-kernel (no (B,S,S) mask DMA) ---
        if with_mask:
            kp = kp_ref[0]                                     # (1, S), 1.0 == pad key
            qi = jax.lax.broadcasted_iota(jnp.int32, (S, S), 0)
            ki = jax.lax.broadcasted_iota(jnp.int32, (S, S), 1)
            masked = jnp.logical_or(ki > qi, kp > 0.5)
            bias = jnp.where(masked, jnp.float32(-1e9), jnp.float32(0.0))

        # --- per-head scores/softmax/context; output projection fused below ---
        ctx_heads = []
        for h in range(n_head):
            qh = q[:, h * d_k:(h + 1) * d_k].astype(jnp.bfloat16)
            kh = k[:, h * d_k:(h + 1) * d_k].astype(jnp.bfloat16)
            vh = v[:, h * d_v:(h + 1) * d_v].astype(jnp.bfloat16)
            s = jnp.einsum('qd,kd->qk', qh, kh,
                           preferred_element_type=jnp.float32)        # (S, S) fp32
            if with_mask:
                s = s + bias
            m = jnp.max(s, axis=-1, keepdims=True)
            e = jnp.exp(s - m)
            a = e * pl.reciprocal(jnp.sum(e, axis=-1, keepdims=True), approx=True)
            if need_attn:
                attn_ref[0, h] = a
            ctx_heads.append(jnp.dot(a.astype(jnp.bfloat16), vh,
                                     preferred_element_type=jnp.float32))  # (S, dv)
        ctx = ctx_heads[0] if n_head == 1 else jnp.concatenate(ctx_heads, axis=-1)

        # --- single fused output projection + residual + LN (normalize_before=False) ---
        o = jnp.dot(ctx.astype(jnp.bfloat16), wo_ref[...],
                    preferred_element_type=jnp.float32) + bo_ref[...]
        o = o + x
        o = _layer_norm(o, ln1g_ref[...], ln1b_ref[...])
        o = o * npm                                            # non-pad mask

        # --- position-wise FFN ---
        hdn = _gelu_tanh(jnp.dot(o.astype(jnp.bfloat16), w1_ref[...],
                                 preferred_element_type=jnp.float32) + b1_ref[...])
        f = jnp.dot(hdn.astype(jnp.bfloat16), w2_ref[...],
                    preferred_element_type=jnp.float32) + b2_ref[...]
        f = f + o
        f = _layer_norm(f, ln2g_ref[...], ln2b_ref[...])
        f = f * npm
        out_ref[0] = f

    return kernel


def encoder_layer_apply(x, non_pad_mask, lp, *, enc=None, keypad_row=None,
                        need_attn=False):
    """One EncoderLayer. `enc` (optional) is added to x in-kernel. `keypad_row`
    (B,1,S) enables the causal+keypad attention bias; None means no mask
    (slf_attn_mask=None in the original). Returns (out, attn_or_None)."""
    B, S, D = x.shape
    H, d_k, d_v = lp['n_head'], lp['d_k'], lp['d_v']
    with_enc = enc is not None
    with_mask = keypad_row is not None
    kernel = _make_encoder_kernel(H, d_k, d_v, with_enc=with_enc,
                                  with_mask=with_mask, need_attn=need_attn)

    def rep(a):  # 2-D weight replicated across the batch grid
        return pl.BlockSpec(a.shape, lambda b: (0, 0))

    inputs = [x]
    in_specs = [pl.BlockSpec((1, S, D), lambda b: (b, 0, 0))]
    if with_enc:
        inputs.append(enc)
        in_specs.append(pl.BlockSpec((1, S, D), lambda b: (b, 0, 0)))
    inputs.append(non_pad_mask)
    in_specs.append(pl.BlockSpec((1, S, 1), lambda b: (b, 0, 0)))
    if with_mask:
        inputs.append(keypad_row)
        in_specs.append(pl.BlockSpec((1, 1, S), lambda b: (b, 0, 0)))

    weights = [lp['wqkv'], lp['wo'], lp['bo'], lp['ln1_g'], lp['ln1_b'],
               lp['w1'], lp['b1'], lp['w2'], lp['b2'], lp['ln2_g'], lp['ln2_b']]
    inputs += weights
    in_specs += [rep(w) for w in weights]

    out_specs = pl.BlockSpec((1, S, D), lambda b: (b, 0, 0))
    out_shape = jax.ShapeDtypeStruct((B, S, D), jnp.float32)
    if need_attn:
        out_specs = [out_specs, pl.BlockSpec((1, H, S, S), lambda b: (b, 0, 0, 0))]
        out_shape = [out_shape, jax.ShapeDtypeStruct((B, H, S, S), jnp.float32)]

    result = pl.pallas_call(
        kernel,
        grid=(B,),
        in_specs=in_specs,
        out_specs=out_specs,
        out_shape=out_shape,
        compiler_params=pltpu.CompilerParams(dimension_semantics=("parallel",)),
    )(*inputs)

    if need_attn:
        return result[0], result[1]
    return result, None


# ----------------------- temporal / spatial sin-cos enc -----------------------

def _sincos_kernel(t_ref, pv_ref, npm_ref, out_ref):
    t = t_ref[0]          # (S, 1)
    pv = pv_ref[...]      # (1, D)
    r = t / pv            # (S, D)
    S, D = r.shape
    parity = jax.lax.broadcasted_iota(jnp.int32, (S, D), 1) % 2
    r = jnp.where(parity == 0, jnp.sin(r), jnp.cos(r))
    out_ref[0] = r * npm_ref[0]


def sincos_enc(values, non_pad_mask, position_vec):
    B, S = values.shape
    D = position_vec.shape[-1]
    v3 = values[..., None].astype(jnp.float32)  # (B, S, 1)
    return pl.pallas_call(
        _sincos_kernel,
        grid=(B,),
        in_specs=[pl.BlockSpec((1, S, 1), lambda b: (b, 0, 0)),
                  pl.BlockSpec((1, D), lambda b: (0, 0)),
                  pl.BlockSpec((1, S, 1), lambda b: (b, 0, 0))],
        out_specs=pl.BlockSpec((1, S, D), lambda b: (b, 0, 0)),
        out_shape=jax.ShapeDtypeStruct((B, S, D), jnp.float32),
        compiler_params=pltpu.CompilerParams(dimension_semantics=("parallel",)),
    )(v3, position_vec, non_pad_mask)


# ------------------------------ fusion linear ---------------------------------

def _linear_kernel(x_ref, w_ref, b_ref, out_ref):
    out_ref[0] = jnp.dot(x_ref[0].astype(jnp.bfloat16), w_ref[...],
                         preferred_element_type=jnp.float32) + b_ref[...]


def fusion_linear(x, w, b):
    B, S, Din = x.shape
    Dout = w.shape[1]
    w16 = w.astype(jnp.bfloat16)
    return pl.pallas_call(
        _linear_kernel,
        grid=(B,),
        in_specs=[pl.BlockSpec((1, S, Din), lambda bb: (bb, 0, 0)),
                  pl.BlockSpec((Din, Dout), lambda bb: (0, 0)),
                  pl.BlockSpec((1, Dout), lambda bb: (0, 0))],
        out_specs=pl.BlockSpec((1, S, Dout), lambda bb: (bb, 0, 0)),
        out_shape=jax.ShapeDtypeStruct((B, S, Dout), jnp.float32),
        compiler_params=pltpu.CompilerParams(dimension_semantics=("parallel",)),
    )(x, w16, b)


# --------------------------------- glue ---------------------------------------

def _prep_layer(lp):
    """Fuse Q|K|V weights (scale folded into Q) and cast MXU weights to bf16."""
    d_k = lp['d_k']
    scale = 1.0 / (float(d_k) ** 0.5)
    wqkv = jnp.concatenate([lp['wq'] * scale, lp['wk'], lp['wv']],
                           axis=1).astype(jnp.bfloat16)
    return dict(
        n_head=lp['n_head'], d_k=d_k, d_v=lp['d_v'],
        wqkv=wqkv,
        wo=lp['wo'].astype(jnp.bfloat16), bo=lp['bo'],
        ln1_g=lp['ln1_g'], ln1_b=lp['ln1_b'],
        w1=lp['w1'].astype(jnp.bfloat16), b1=lp['b1'],
        w2=lp['w2'].astype(jnp.bfloat16), b2=lp['b2'],
        ln2_g=lp['ln2_g'], ln2_b=lp['ln2_b'],
    )


def star_forward(params, event_type, event_time, xy, non_pad_mask):
    B, S = event_type.shape
    layers = [_prep_layer(lp) for lp in params['layers']]
    pos_vec = params['position_vec']

    # Key-pad row vector (B,1,S): 1.0 where the key position is PAD. The causal part
    # of the attention mask is rebuilt in-kernel from iota, so no (B,S,S) mask is DMA'd.
    keypad_row = (event_type == PAD).astype(jnp.float32)[:, None, :]

    # temporal branch (positional residual fused into the encoder kernel)
    tem_enc = sincos_enc(event_time, non_pad_mask, pos_vec)
    temporal = jnp.take(params['event_emb'], event_type, axis=0)
    for lp in layers:
        temporal, _ = encoder_layer_apply(temporal, non_pad_mask, lp,
                                          enc=tem_enc, keypad_row=keypad_row)

    # spatial branch — only the last layer's attn is returned, so only it writes attn
    spa_enc = sincos_enc(xy, non_pad_mask, pos_vec)
    spatial = jnp.take(params['event_emb'], event_type, axis=0)
    xattn = None
    for i, lp in enumerate(layers):
        need = (i == len(layers) - 1)
        spatial, attn = encoder_layer_apply(spatial, non_pad_mask, lp,
                                            enc=spa_enc, keypad_row=keypad_row,
                                            need_attn=need)
        if need:
            xattn = attn
    spatial_input_embedded2 = spatial

    # fusion of the last 334 steps (clamped for short sequences, numpy-style slicing)
    last = min(S, 334)
    temporal_last = temporal[:, S - last:, :]
    temporal_head = temporal[:, :S - last, :]
    fusion_feat = jnp.concatenate((temporal_last, spatial[:, S - last:, :]), axis=2)
    fusion_feat = fusion_linear(fusion_feat, params['fusion_w'], params['fusion_b'])

    npm_last = non_pad_mask[:, S - last:, :]
    # Original loops feed fusion_feat every iteration and only keep the final output,
    # so running only layer_stack[-1] is bit-identical; slf_attn_mask=None -> no mask.
    spatial_f, _ = encoder_layer_apply(fusion_feat, npm_last, layers[-1])

    temporal_cat = jnp.concatenate((temporal_head, spatial_f), axis=1)
    # Same argument: constant input every iteration, only the final output survives.
    outputs, _ = encoder_layer_apply(temporal_cat, non_pad_mask, layers[-1],
                                     keypad_row=keypad_row)

    return outputs, xattn, spatial_input_embedded2


# ------------------------------ parameter init ---------------------------------

def init_params(key, num_types, d_model, d_inner, n_layers, n_head, d_k, d_v):
    keys = jax.random.split(key, 3 + n_layers)

    def nrm(k, shape, scale=0.05):
        return scale * jax.random.normal(k, shape, dtype=jnp.float32)

    emb = nrm(keys[0], (num_types + 1, d_model))
    emb = emb.at[PAD].set(0.0)  # padding_idx=PAD

    # original: nn.Linear(1024, 512) == Linear(2*d_model, d_model) with d_model=512
    fusion_w = nrm(keys[1], (2 * d_model, d_model))
    fusion_b = nrm(keys[2], (1, d_model))

    layers = []
    for i in range(n_layers):
        lk = jax.random.split(keys[3 + i], 9)
        layers.append(dict(
            n_head=n_head, d_k=d_k, d_v=d_v,
            wq=nrm(lk[0], (d_model, n_head * d_k)),
            wk=nrm(lk[1], (d_model, n_head * d_k)),
            wv=nrm(lk[2], (d_model, n_head * d_v)),
            wo=nrm(lk[3], (n_head * d_v, d_model)),
            bo=nrm(lk[4], (1, d_model)),
            ln1_g=jnp.ones((1, d_model), jnp.float32),
            ln1_b=jnp.zeros((1, d_model), jnp.float32),
            w1=nrm(lk[5], (d_model, d_inner)),
            b1=nrm(lk[6], (1, d_inner)),
            w2=nrm(lk[7], (d_inner, d_model)),
            b2=nrm(lk[8], (1, d_model)),
            ln2_g=jnp.ones((1, d_model), jnp.float32),
            ln2_b=jnp.zeros((1, d_model), jnp.float32),
        ))

    position_vec = jnp.array(
        [math.pow(10000.0, 2.0 * (i // 2) / d_model) for i in range(d_model)],
        dtype=jnp.float32)[None, :]

    return dict(d_model=d_model, event_emb=emb, fusion_w=fusion_w,
                fusion_b=fusion_b, layers=layers, position_vec=position_vec)


# ----------------------------------- main ---------------------------------------

if __name__ == "__main__":
    B, S = 2, 8
    num_types, d_model, d_inner = 5, 32, 64
    n_layers, n_head, d_k, d_v = 2, 2, 16, 16

    key = jax.random.PRNGKey(0)
    pkey, k1, k2, k3 = jax.random.split(key, 4)
    params = init_params(pkey, num_types, d_model, d_inner, n_layers, n_head, d_k, d_v)

    event_type = jax.random.randint(k1, (B, S), 1, num_types + 1).astype(jnp.int32)
    event_type = event_type.at[:, -2:].set(PAD)  # pad the tail positions
    event_time = jnp.cumsum(jax.random.uniform(k2, (B, S), dtype=jnp.float32), axis=1)
    xy = jax.random.uniform(k3, (B, S), dtype=jnp.float32) * 10.0
    non_pad_mask = (event_type != PAD).astype(jnp.float32)[..., None]  # (B, S, 1)

    fwd = jax.jit(functools.partial(star_forward, params))
    outputs, xattn, spatial2 = fwd(event_type, event_time, xy, non_pad_mask)
    jax.block_until_ready((outputs, xattn, spatial2))

    assert outputs.shape == (B, S, d_model)
    assert xattn.shape == (B, n_head, S, S)
    assert spatial2.shape == (B, S, d_model)
    print("KERNEL_OK")
</pallas_src>

<mosaic_0001>
module attributes {stable_mosaic.version = 11 : i64} {
  func.func @kernel(%arg0: i32, %arg1: memref<1x8x32xf32, #tpu.memory_space<vmem>>, %arg2: memref<1x8x32xf32, #tpu.memory_space<vmem>>, %arg3: memref<1x8x1xf32, #tpu.memory_space<vmem>>, %arg4: memref<1x1x8xf32, #tpu.memory_space<vmem>>, %arg5: memref<32x96xbf16, #tpu.memory_space<vmem>>, %arg6: memref<32x32xbf16, #tpu.memory_space<vmem>>, %arg7: memref<1x32xf32, #tpu.memory_space<vmem>>, %arg8: memref<1x32xf32, #tpu.memory_space<vmem>>, %arg9: memref<1x32xf32, #tpu.memory_space<vmem>>, %arg10: memref<32x64xbf16, #tpu.memory_space<vmem>>, %arg11: memref<1x64xf32, #tpu.memory_space<vmem>>, %arg12: memref<64x32xbf16, #tpu.memory_space<vmem>>, %arg13: memref<1x32xf32, #tpu.memory_space<vmem>>, %arg14: memref<1x32xf32, #tpu.memory_space<vmem>>, %arg15: memref<1x32xf32, #tpu.memory_space<vmem>>, %arg16: memref<1x8x32xf32, #tpu.memory_space<vmem>>, %arg17: memref<1x2x8x8xf32, #tpu.memory_space<vmem>>) attributes {dimension_semantics = [#tpu.dimension_semantics<parallel>], iteration_bounds = array<i64: 2>, scalar_prefetch = 0 : i64, scratch_operands = 0 : i64, tpu.core_type = #tpu.core_type<tc>, window_params = [{transform_indices = @transform_0, window_bounds = array<i64: 1, 8, 32>}, {transform_indices = @transform_1, window_bounds = array<i64: 1, 8, 32>}, {transform_indices = @transform_2, window_bounds = array<i64: 1, 8, 1>}, {transform_indices = @transform_3, window_bounds = array<i64: 1, 1, 8>}, {pipeline_mode = #tpu.pipeline_mode<synchronous>, transform_indices = @transform_4, window_bounds = array<i64: 32, 96>}, {pipeline_mode = #tpu.pipeline_mode<synchronous>, transform_indices = @transform_5, window_bounds = array<i64: 32, 32>}, {pipeline_mode = #tpu.pipeline_mode<synchronous>, transform_indices = @transform_6, window_bounds = array<i64: 1, 32>}, {pipeline_mode = #tpu.pipeline_mode<synchronous>, transform_indices = @transform_7, window_bounds = array<i64: 1, 32>}, {pipeline_mode = #tpu.pipeline_mode<synchronous>, transform_indices = @transform_8, window_bounds = array<i64: 1, 32>}, {pipeline_mode = #tpu.pipeline_mode<synchronous>, transform_indices = @transform_9, window_bounds = array<i64: 32, 64>}, {pipeline_mode = #tpu.pipeline_mode<synchronous>, transform_indices = @transform_10, window_bounds = array<i64: 1, 64>}, {pipeline_mode = #tpu.pipeline_mode<synchronous>, transform_indices = @transform_11, window_bounds = array<i64: 64, 32>}, {pipeline_mode = #tpu.pipeline_mode<synchronous>, transform_indices = @transform_12, window_bounds = array<i64: 1, 32>}, {pipeline_mode = #tpu.pipeline_mode<synchronous>, transform_indices = @transform_13, window_bounds = array<i64: 1, 32>}, {pipeline_mode = #tpu.pipeline_mode<synchronous>, transform_indices = @transform_14, window_bounds = array<i64: 1, 32>}, {transform_indices = @transform_15, window_bounds = array<i64: 1, 8, 32>}, {transform_indices = @transform_16, window_bounds = array<i64: 1, 2, 8, 8>}]} {
    %c0 = arith.constant 0 : index
    %c0_0 = arith.constant 0 : index
    %c0_1 = arith.constant 0 : index
    %0 = vector.load %arg1[%c0, %c0_0, %c0_1] : memref<1x8x32xf32, #tpu.memory_space<vmem>>, vector<1x8x32xf32>
    %1 = vector.shape_cast %0 : vector<1x8x32xf32> to vector<8x32xf32>
    %c0_2 = arith.constant 0 : index
    %c0_3 = arith.constant 0 : index
    %c0_4 = arith.constant 0 : index
    %2 = vector.load %arg2[%c0_2, %c0_3, %c0_4] : memref<1x8x32xf32, #tpu.memory_space<vmem>>, vector<1x8x32xf32>
    %3 = vector.shape_cast %2 : vector<1x8x32xf32> to vector<8x32xf32>
    %4 = arith.addf %1, %3 : vector<8x32xf32>
    %c0_5 = arith.constant 0 : index
    %c0_6 = arith.constant 0 : index
    %c0_7 = arith.constant 0 : index
    %5 = vector.load %arg3[%c0_5, %c0_6, %c0_7] : memref<1x8x1xf32, #tpu.memory_space<vmem>>, vector<1x8x1xf32>
    %6 = vector.shape_cast %5 : vector<1x8x1xf32> to vector<8x1xf32>
    %7 = arith.truncf %4 : vector<8x32xf32> to vector<8x32xbf16>
    %c0_8 = arith.constant 0 : index
    %c0_9 = arith.constant 0 : index
    %8 = vector.load %arg5[%c0_8, %c0_9] : memref<32x96xbf16, #tpu.memory_space<vmem>>, vector<32x96xbf16>
    %cst = arith.constant dense<0.000000e+00> : vector<8x96xf32>
    %9 = tpu.matmul %7, %8, %cst {dimension_numbers = #tpu.dot_dimension_numbers<[1], [0], [0], [1], [0, 0, 1, 1], [], []>} : vector<8x32xbf16>, vector<32x96xbf16>, vector<8x96xf32> -> vector<8x96xf32>
    %10 = vector.extract_strided_slice %9 {offsets = [0, 0], sizes = [8, 32], strides = [1, 1]} : vector<8x96xf32> to vector<8x32xf32>
    %11 = vector.extract_strided_slice %9 {offsets = [0, 32], sizes = [8, 32], strides = [1, 1]} : vector<8x96xf32> to vector<8x32xf32>
    %12 = vector.extract_strided_slice %9 {offsets = [0, 64], sizes = [8, 32], strides = [1, 1]} : vector<8x96xf32> to vector<8x32xf32>
    %c0_10 = arith.constant 0 : index
    %c0_11 = arith.constant 0 : index
    %c0_12 = arith.constant 0 : index
    %13 = vector.load %arg4[%c0_10, %c0_11, %c0_12] : memref<1x1x8xf32, #tpu.memory_space<vmem>>, vector<1x1x8xf32>
    %14 = vector.shape_cast %13 : vector<1x1x8xf32> to vector<1x8xf32>
    %15 = tpu.iota {dimensions = array<i32: 0>} : vector<8x8xi32>
    %16 = tpu.iota {dimensions = array<i32: 1>} : vector<8x8xi32>
    %17 = arith.cmpi sgt, %16, %15 : vector<8x8xi32>
    %cst_13 = arith.constant 5.000000e-01 : f32
    %18 = vector.broadcast %cst_13 : f32 to vector<1x8xf32>
    %19 = arith.cmpf ogt, %14, %18 : vector<1x8xf32>
    %20 = vector.broadcast %19 : vector<1x8xi1> to vector<8x8xi1>
    %21 = arith.ori %17, %20 : vector<8x8xi1>
    %cst_14 = arith.constant -1.000000e+09 : f32
    %cst_15 = arith.constant 0.000000e+00 : f32
    %22 = vector.broadcast %cst_14 : f32 to vector<8x8xf32>
    %23 = vector.broadcast %cst_15 : f32 to vector<8x8xf32>
    %24 = arith.select %21, %22, %23 : vector<8x8xi1>, vector<8x8xf32>
    %25 = vector.extract_strided_slice %10 {offsets = [0, 0], sizes = [8, 16], strides = [1, 1]} : vector<8x32xf32> to vector<8x16xf32>
    %26 = arith.truncf %25 : vector<8x16xf32> to vector<8x16xbf16>
    %27 = vector.extract_strided_slice %11 {offsets = [0, 0], sizes = [8, 16], strides = [1, 1]} : vector<8x32xf32> to vector<8x16xf32>
    %28 = arith.truncf %27 : vector<8x16xf32> to vector<8x16xbf16>
    %29 = vector.extract_strided_slice %12 {offsets = [0, 0], sizes = [8, 16], strides = [1, 1]} : vector<8x32xf32> to vector<8x16xf32>
    %30 = arith.truncf %29 : vector<8x16xf32> to vector<8x16xbf16>
    "tpu.trace_start"() <{level = 10 : i32, message = "qd,kd->qk"}> : () -> ()
    %cst_16 = arith.constant dense<0.000000e+00> : vector<8x8xf32>
    %31 = tpu.matmul %26, %28, %cst_16 {dimension_numbers = #tpu.dot_dimension_numbers<[1], [1], [0], [0], [0, 0, 1, 0], [], []>} : vector<8x16xbf16>, vector<8x16xbf16>, vector<8x8xf32> -> vector<8x8xf32>
    "tpu.trace_stop"() : () -> ()
    %32 = arith.addf %31, %24 : vector<8x8xf32>
    %cst_17 = arith.constant dense<0xFF800000> : vector<8xf32>
    %33 = vector.multi_reduction <maximumf>, %32, %cst_17 [1] : vector<8x8xf32> to vector<8xf32>
    %34 = vector.shape_cast %33 : vector<8xf32> to vector<8x1xf32>
    %35 = vector.broadcast %34 : vector<8x1xf32> to vector<8x8xf32>
    %36 = arith.subf %32, %35 : vector<8x8xf32>
    %37 = math.exp %36 : vector<8x8xf32>
    %cst_18 = arith.constant dense<0.000000e+00> : vector<8xf32>
    %38 = vector.multi_reduction <add>, %37, %cst_18 [1] : vector<8x8xf32> to vector<8xf32>
    %39 = vector.shape_cast %38 : vector<8xf32> to vector<8x1xf32>
    %40 = tpu.reciprocal %39 {approx = true} : vector<8x1xf32> -> vector<8x1xf32>
    %41 = vector.broadcast %40 : vector<8x1xf32> to vector<8x8xf32>
    %42 = arith.mulf %37, %41 : vector<8x8xf32>
    %c0_19 = arith.constant 0 : index
    %c0_20 = arith.constant 0 : index
    %c0_21 = arith.constant 0 : index
    %c0_22 = arith.constant 0 : index
    %43 = vector.load %arg17[%c0_19, %c0_20, %c0_21, %c0_22] : memref<1x2x8x8xf32, #tpu.memory_space<vmem>>, vector<1x1x8x8xf32>
    %44 = vector.shape_cast %43 : vector<1x1x8x8xf32> to vector<8x8xf32>
    %45 = vector.shape_cast %42 : vector<8x8xf32> to vector<1x1x8x8xf32>
    tpu.vector_store %arg17[%c0_19, %c0_20, %c0_21, %c0_22], %45 {strides = array<i32>} : memref<1x2x8x8xf32, #tpu.memory_space<vmem>>, vector<1x1x8x8xf32>,
    %46 = arith.truncf %42 : vector<8x8xf32> to vector<8x8xbf16>
    %cst_23 = arith.constant dense<0.000000e+00> : vector<8x16xf32>
    %47 = tpu.matmul %46, %30, %cst_23 {dimension_numbers = #tpu.dot_dimension_numbers<[1], [0], [0], [1], [0, 0, 1, 1], [], []>} : vector<8x8xbf16>, vector<8x16xbf16>, vector<8x16xf32> -> vector<8x16xf32>
    %48 = vector.extract_strided_slice %10 {offsets = [0, 16], sizes = [8, 16], strides = [1, 1]} : vector<8x32xf32> to vector<8x16xf32>
    %49 = arith.truncf %48 : vector<8x16xf32> to vector<8x16xbf16>
    %50 = vector.extract_strided_slice %11 {offsets = [0, 16], sizes = [8, 16], strides = [1, 1]} : vector<8x32xf32> to vector<8x16xf32>
    %51 = arith.truncf %50 : vector<8x16xf32> to vector<8x16xbf16>
    %52 = vector.extract_strided_slice %12 {offsets = [0, 16], sizes = [8, 16], strides = [1, 1]} : vector<8x32xf32> to vector<8x16xf32>
    %53 = arith.truncf %52 : vector<8x16xf32> to vector<8x16xbf16>
    "tpu.trace_start"() <{level = 10 : i32, message = "qd,kd->qk"}> : () -> ()
    %cst_24 = arith.constant dense<0.000000e+00> : vector<8x8xf32>
    %54 = tpu.matmul %49, %51, %cst_24 {dimension_numbers = #tpu.dot_dimension_numbers<[1], [1], [0], [0], [0, 0, 1, 0], [], []>} : vector<8x16xbf16>, vector<8x16xbf16>, vector<8x8xf32> -> vector<8x8xf32>
    "tpu.trace_stop"() : () -> ()
    %55 = arith.addf %54, %24 : vector<8x8xf32>
    %cst_25 = arith.constant dense<0xFF800000> : vector<8xf32>
    %56 = vector.multi_reduction <maximumf>, %55, %cst_25 [1] : vector<8x8xf32> to vector<8xf32>
    %57 = vector.shape_cast %56 : vector<8xf32> to vector<8x1xf32>
    %58 = vector.broadcast %57 : vector<8x1xf32> to vector<8x8xf32>
    %59 = arith.subf %55, %58 : vector<8x8xf32>
    %60 = math.exp %59 : vector<8x8xf32>
    %cst_26 = arith.constant dense<0.000000e+00> : vector<8xf32>
    %61 = vector.multi_reduction <add>, %60, %cst_26 [1] : vector<8x8xf32> to vector<8xf32>
    %62 = vector.shape_cast %61 : vector<8xf32> to vector<8x1xf32>
    %63 = tpu.reciprocal %62 {approx = true} : vector<8x1xf32> -> vector<8x1xf32>
    %64 = vector.broadcast %63 : vector<8x1xf32> to vector<8x8xf32>
    %65 = arith.mulf %60, %64 : vector<8x8xf32>
    %c0_27 = arith.constant 0 : index
    %c1 = arith.constant 1 : index
    %c0_28 = arith.constant 0 : index
    %c0_29 = arith.constant 0 : index
    %66 = vector.load %arg17[%c0_27, %c1, %c0_28, %c0_29] : memref<1x2x8x8xf32, #tpu.memory_space<vmem>>, vector<1x1x8x8xf32>
    %67 = vector.shape_cast %66 : vector<1x1x8x8xf32> to vector<8x8xf32>
    %68 = vector.shape_cast %65 : vector<8x8xf32> to vector<1x1x8x8xf32>
    tpu.vector_store %arg17[%c0_27, %c1, %c0_28, %c0_29], %68 {strides = array<i32>} : memref<1x2x8x8xf32, #tpu.memory_space<vmem>>, vector<1x1x8x8xf32>,
    %69 = arith.truncf %65 : vector<8x8xf32> to vector<8x8xbf16>
    %cst_30 = arith.constant dense<0.000000e+00> : vector<8x16xf32>
    %70 = tpu.matmul %69, %53, %cst_30 {dimension_numbers = #tpu.dot_dimension_numbers<[1], [0], [0], [1], [0, 0, 1, 1], [], []>} : vector<8x8xbf16>, vector<8x16xbf16>, vector<8x16xf32> -> vector<8x16xf32>
    %71 = tpu.concatenate %47, %70 in 1 : vector<8x16xf32>, vector<8x16xf32> -> vector<8x32xf32>
    %72 = arith.truncf %71 : vector<8x32xf32> to vector<8x32xbf16>
    %c0_31 = arith.constant 0 : index
    %c0_32 = arith.constant 0 : index
    %73 = vector.load %arg6[%c0_31, %c0_32] : memref<32x32xbf16, #tpu.memory_space<vmem>>, vector<32x32xbf16>
    %cst_33 = arith.constant dense<0.000000e+00> : vector<8x32xf32>
    %74 = tpu.matmul %72, %73, %cst_33 {dimension_numbers = #tpu.dot_dimension_numbers<[1], [0], [0], [1], [0, 0, 1, 1], [], []>} : vector<8x32xbf16>, vector<32x32xbf16>, vector<8x32xf32> -> vector<8x32xf32>
    %c0_34 = arith.constant 0 : index
    %c0_35 = arith.constant 0 : index
    %75 = vector.load %arg7[%c0_34, %c0_35] : memref<1x32xf32, #tpu.memory_space<vmem>>, vector<1x32xf32>
    %76 = vector.broadcast %75 : vector<1x32xf32> to vector<8x32xf32>
    %77 = arith.addf %74, %76 : vector<8x32xf32>
    %78 = arith.addf %77, %4 : vector<8x32xf32>
    %c0_36 = arith.constant 0 : index
    %c0_37 = arith.constant 0 : index
    %79 = vector.load %arg8[%c0_36, %c0_37] : memref<1x32xf32, #tpu.memory_space<vmem>>, vector<1x32xf32>
    %c0_38 = arith.constant 0 : index
    %c0_39 = arith.constant 0 : index
    %80 = vector.load %arg9[%c0_38, %c0_39] : memref<1x32xf32, #tpu.memory_space<vmem>>, vector<1x32xf32>
    %cst_40 = arith.constant dense<0.000000e+00> : vector<8xf32>
    %81 = vector.multi_reduction <add>, %78, %cst_40 [1] : vector<8x32xf32> to vector<8xf32>
    %82 = vector.shape_cast %81 : vector<8xf32> to vector<8x1xf32>
    %cst_41 = arith.constant 3.200000e+01 : f32
    %83 = vector.broadcast %cst_41 : f32 to vector<8x1xf32>
    %84 = arith.divf %82, %83 : vector<8x1xf32>
    %85 = vector.broadcast %84 : vector<8x1xf32> to vector<8x32xf32>
    %86 = arith.subf %78, %85 : vector<8x32xf32>
    %87 = arith.mulf %86, %86 : vector<8x32xf32>
    %cst_42 = arith.constant dense<0.000000e+00> : vector<8xf32>
    %88 = vector.multi_reduction <add>, %87, %cst_42 [1] : vector<8x32xf32> to vector<8xf32>
    %89 = vector.shape_cast %88 : vector<8xf32> to vector<8x1xf32>
    %cst_43 = arith.constant 3.200000e+01 : f32
    %90 = vector.broadcast %cst_43 : f32 to vector<8x1xf32>
    %91 = arith.divf %89, %90 : vector<8x1xf32>
    %92 = vector.broadcast %84 : vector<8x1xf32> to vector<8x32xf32>
    %93 = arith.subf %78, %92 : vector<8x32xf32>
    %cst_44 = arith.constant 9.99999997E-7 : f32
    %94 = vector.broadcast %cst_44 : f32 to vector<8x1xf32>
    %95 = arith.addf %91, %94 : vector<8x1xf32>
    %96 = math.rsqrt %95 : vector<8x1xf32>
    %97 = vector.broadcast %96 : vector<8x1xf32> to vector<8x32xf32>
    %98 = arith.mulf %93, %97 : vector<8x32xf32>
    %99 = vector.broadcast %79 : vector<1x32xf32> to vector<8x32xf32>
    %100 = arith.mulf %98, %99 : vector<8x32xf32>
    %101 = vector.broadcast %80 : vector<1x32xf32> to vector<8x32xf32>
    %102 = arith.addf %100, %101 : vector<8x32xf32>
    %103 = vector.broadcast %6 : vector<8x1xf32> to vector<8x32xf32>
    %104 = arith.mulf %102, %103 : vector<8x32xf32>
    %105 = arith.truncf %104 : vector<8x32xf32> to vector<8x32xbf16>
    %c0_45 = arith.constant 0 : index
    %c0_46 = arith.constant 0 : index
    %106 = vector.load %arg10[%c0_45, %c0_46] : memref<32x64xbf16, #tpu.memory_space<vmem>>, vector<32x64xbf16>
    %cst_47 = arith.constant dense<0.000000e+00> : vector<8x64xf32>
    %107 = tpu.matmul %105, %106, %cst_47 {dimension_numbers = #tpu.dot_dimension_numbers<[1], [0], [0], [1], [0, 0, 1, 1], [], []>} : vector<8x32xbf16>, vector<32x64xbf16>, vector<8x64xf32> -> vector<8x64xf32>
    %c0_48 = arith.constant 0 : index
    %c0_49 = arith.constant 0 : index
    %108 = vector.load %arg11[%c0_48, %c0_49] : memref<1x64xf32, #tpu.memory_space<vmem>>, vector<1x64xf32>
    %109 = vector.broadcast %108 : vector<1x64xf32> to vector<8x64xf32>
    %110 = arith.addf %107, %109 : vector<8x64xf32>
    %cst_50 = arith.constant 5.000000e-01 : f32
    %111 = vector.broadcast %cst_50 : f32 to vector<8x64xf32>
    %112 = arith.mulf %111, %110 : vector<8x64xf32>
    %cst_51 = arith.constant 4.471500e-02 : f32
    %113 = vector.broadcast %cst_51 : f32 to vector<8x64xf32>
    %114 = arith.mulf %113, %110 : vector<8x64xf32>
    %115 = arith.mulf %114, %110 : vector<8x64xf32>
    %116 = arith.mulf %115, %110 : vector<8x64xf32>
    %117 = arith.addf %110, %116 : vector<8x64xf32>
    %cst_52 = arith.constant 0.797884583 : f32
    %118 = vector.broadcast %cst_52 : f32 to vector<8x64xf32>
    %119 = arith.mulf %118, %117 : vector<8x64xf32>
    %120 = math.tanh %119 : vector<8x64xf32>
    %cst_53 = arith.constant 1.000000e+00 : f32
    %121 = vector.broadcast %cst_53 : f32 to vector<8x64xf32>
    %122 = arith.addf %121, %120 : vector<8x64xf32>
    %123 = arith.mulf %112, %122 : vector<8x64xf32>
    %124 = arith.truncf %123 : vector<8x64xf32> to vector<8x64xbf16>
    %c0_54 = arith.constant 0 : index
    %c0_55 = arith.constant 0 : index
    %125 = vector.load %arg12[%c0_54, %c0_55] : memref<64x32xbf16, #tpu.memory_space<vmem>>, vector<64x32xbf16>
    %cst_56 = arith.constant dense<0.000000e+00> : vector<8x32xf32>
    %126 = tpu.matmul %124, %125, %cst_56 {dimension_numbers = #tpu.dot_dimension_numbers<[1], [0], [0], [1], [0, 0, 1, 1], [], []>} : vector<8x64xbf16>, vector<64x32xbf16>, vector<8x32xf32> -> vector<8x32xf32>
    %c0_57 = arith.constant 0 : index
    %c0_58 = arith.constant 0 : index
    %127 = vector.load %arg13[%c0_57, %c0_58] : memref<1x32xf32, #tpu.memory_space<vmem>>, vector<1x32xf32>
    %128 = vector.broadcast %127 : vector<1x32xf32> to vector<8x32xf32>
    %129 = arith.addf %126, %128 : vector<8x32xf32>
    %130 = arith.addf %129, %104 : vector<8x32xf32>
    %c0_59 = arith.constant 0 : index
    %c0_60 = arith.constant 0 : index
    %131 = vector.load %arg14[%c0_59, %c0_60] : memref<1x32xf32, #tpu.memory_space<vmem>>, vector<1x32xf32>
    %c0_61 = arith.constant 0 : index
    %c0_62 = arith.constant 0 : index
    %132 = vector.load %arg15[%c0_61, %c0_62] : memref<1x32xf32, #tpu.memory_space<vmem>>, vector<1x32xf32>
    %cst_63 = arith.constant dense<0.000000e+00> : vector<8xf32>
    %133 = vector.multi_reduction <add>, %130, %cst_63 [1] : vector<8x32xf32> to vector<8xf32>
    %134 = vector.shape_cast %133 : vector<8xf32> to vector<8x1xf32>
    %cst_64 = arith.constant 3.200000e+01 : f32
    %135 = vector.broadcast %cst_64 : f32 to vector<8x1xf32>
    %136 = arith.divf %134, %135 : vector<8x1xf32>
    %137 = vector.broadcast %136 : vector<8x1xf32> to vector<8x32xf32>
    %138 = arith.subf %130, %137 : vector<8x32xf32>
    %139 = arith.mulf %138, %138 : vector<8x32xf32>
    %cst_65 = arith.constant dense<0.000000e+00> : vector<8xf32>
    %140 = vector.multi_reduction <add>, %139, %cst_65 [1] : vector<8x32xf32> to vector<8xf32>
    %141 = vector.shape_cast %140 : vector<8xf32> to vector<8x1xf32>
    %cst_66 = arith.constant 3.200000e+01 : f32
    %142 = vector.broadcast %cst_66 : f32 to vector<8x1xf32>
    %143 = arith.divf %141, %142 : vector<8x1xf32>
    %144 = vector.broadcast %136 : vector<8x1xf32> to vector<8x32xf32>
    %145 = arith.subf %130, %144 : vector<8x32xf32>
    %cst_67 = arith.constant 9.99999997E-7 : f32
    %146 = vector.broadcast %cst_67 : f32 to vector<8x1xf32>
    %147 = arith.addf %143, %146 : vector<8x1xf32>
    %148 = math.rsqrt %147 : vector<8x1xf32>
    %149 = vector.broadcast %148 : vector<8x1xf32> to vector<8x32xf32>
    %150 = arith.mulf %145, %149 : vector<8x32xf32>
    %151 = vector.broadcast %131 : vector<1x32xf32> to vector<8x32xf32>
    %152 = arith.mulf %150, %151 : vector<8x32xf32>
    %153 = vector.broadcast %132 : vector<1x32xf32> to vector<8x32xf32>
    %154 = arith.addf %152, %153 : vector<8x32xf32>
    %155 = vector.broadcast %6 : vector<8x1xf32> to vector<8x32xf32>
    %156 = arith.mulf %154, %155 : vector<8x32xf32>
    %c0_68 = arith.constant 0 : index
    %c0_69 = arith.constant 0 : index
    %c0_70 = arith.constant 0 : index
    %157 = vector.load %arg16[%c0_68, %c0_69, %c0_70] : memref<1x8x32xf32, #tpu.memory_space<vmem>>, vector<1x8x32xf32>
    %158 = vector.shape_cast %157 : vector<1x8x32xf32> to vector<8x32xf32>
    %159 = vector.shape_cast %156 : vector<8x32xf32> to vector<1x8x32xf32>
    tpu.vector_store %arg16[%c0_68, %c0_69, %c0_70], %159 {strides = array<i32>} : memref<1x8x32xf32, #tpu.memory_space<vmem>>, vector<1x8x32xf32>,
    return
  }
  func.func @transform_0(%arg0: i32) -> (i32, i32, i32) {
    %c0_i32 = arith.constant 0 : i32
    %c0_i32_0 = arith.constant 0 : i32
    %c0_i32_1 = arith.constant 0 : i32
    return %arg0, %c0_i32, %c0_i32_0 : i32, i32, i32
  }
  func.func @transform_1(%arg0: i32) -> (i32, i32, i32) {
    %c0_i32 = arith.constant 0 : i32
    %c0_i32_0 = arith.constant 0 : i32
    %c0_i32_1 = arith.constant 0 : i32
    return %arg0, %c0_i32, %c0_i32_0 : i32, i32, i32
  }
  func.func @transform_2(%arg0: i32) -> (i32, i32, i32) {
    %c0_i32 = arith.constant 0 : i32
    %c0_i32_0 = arith.constant 0 : i32
    %c0_i32_1 = arith.constant 0 : i32
    return %arg0, %c0_i32, %c0_i32_0 : i32, i32, i32
  }
  func.func @transform_3(%arg0: i32) -> (i32, i32, i32) {
    %c0_i32 = arith.constant 0 : i32
    %c0_i32_0 = arith.constant 0 : i32
    %c0_i32_1 = arith.constant 0 : i32
    return %arg0, %c0_i32, %c0_i32_0 : i32, i32, i32
  }
  func.func @transform_4(%arg0: i32) -> (i32, i32) {
    %c0_i32 = arith.constant 0 : i32
    %c0_i32_0 = arith.constant 0 : i32
    %c0_i32_1 = arith.constant 0 : i32
    return %c0_i32, %c0_i32_0 : i32, i32
  }
  func.func @transform_5(%arg0: i32) -> (i32, i32) {
    %c0_i32 = arith.constant 0 : i32
    %c0_i32_0 = arith.constant 0 : i32
    %c0_i32_1 = arith.constant 0 : i32
    return %c0_i32, %c0_i32_0 : i32, i32
  }
  func.func @transform_6(%arg0: i32) -> (i32, i32) {
    %c0_i32 = arith.constant 0 : i32
    %c0_i32_0 = arith.constant 0 : i32
    %c0_i32_1 = arith.constant 0 : i32
    return %c0_i32, %c0_i32_0 : i32, i32
  }
  func.func @transform_7(%arg0: i32) -> (i32, i32) {
    %c0_i32 = arith.constant 0 : i32
    %c0_i32_0 = arith.constant 0 : i32
    %c0_i32_1 = arith.constant 0 : i32
    return %c0_i32, %c0_i32_0 : i32, i32
  }
  func.func @transform_8(%arg0: i32) -> (i32, i32) {
    %c0_i32 = arith.constant 0 : i32
    %c0_i32_0 = arith.constant 0 : i32
    %c0_i32_1 = arith.constant 0 : i32
    return %c0_i32, %c0_i32_0 : i32, i32
  }
  func.func @transform_9(%arg0: i32) -> (i32, i32) {
    %c0_i32 = arith.constant 0 : i32
    %c0_i32_0 = arith.constant 0 : i32
    %c0_i32_1 = arith.constant 0 : i32
    return %c0_i32, %c0_i32_0 : i32, i32
  }
  func.func @transform_10(%arg0: i32) -> (i32, i32) {
    %c0_i32 = arith.constant 0 : i32
    %c0_i32_0 = arith.constant 0 : i32
    %c0_i32_1 = arith.constant 0 : i32
    return %c0_i32, %c0_i32_0 : i32, i32
  }
  func.func @transform_11(%arg0: i32) -> (i32, i32) {
    %c0_i32 = arith.constant 0 : i32
    %c0_i32_0 = arith.constant 0 : i32
    %c0_i32_1 = arith.constant 0 : i32
    return %c0_i32, %c0_i32_0 : i32, i32
  }
  func.func @transform_12(%arg0: i32) -> (i32, i32) {
    %c0_i32 = arith.constant 0 : i32
    %c0_i32_0 = arith.constant 0 : i32
    %c0_i32_1 = arith.constant 0 : i32
    return %c0_i32, %c0_i32_0 : i32, i32
  }
  func.func @transform_13(%arg0: i32) -> (i32, i32) {
    %c0_i32 = arith.constant 0 : i32
    %c0_i32_0 = arith.constant 0 : i32
    %c0_i32_1 = arith.constant 0 : i32
    return %c0_i32, %c0_i32_0 : i32, i32
  }
  func.func @transform_14(%arg0: i32) -> (i32, i32) {
    %c0_i32 = arith.constant 0 : i32
    %c0_i32_0 = arith.constant 0 : i32
    %c0_i32_1 = arith.constant 0 : i32
    return %c0_i32, %c0_i32_0 : i32, i32
  }
  func.func @transform_15(%arg0: i32) -> (i32, i32, i32) {
    %c0_i32 = arith.constant 0 : i32
    %c0_i32_0 = arith.constant 0 : i32
    %c0_i32_1 = arith.constant 0 : i32
    return %arg0, %c0_i32, %c0_i32_0 : i32, i32, i32
  }
  func.func @transform_16(%arg0: i32) -> (i32, i32, i32, i32) {
    %c0_i32 = arith.constant 0 : i32
    %c0_i32_0 = arith.constant 0 : i32
    %c0_i32_1 = arith.constant 0 : i32
    %c0_i32_2 = arith.constant 0 : i32
    return %arg0, %c0_i32, %c0_i32_0, %c0_i32_1 : i32, i32, i32, i32
  }
}

module attributes {stable_mosaic.version = 11 : i64} {
  func.func @kernel(%arg0: i32, %arg1: memref<1x8x32xf32, #tpu.memory_space<vmem>>, %arg2: memref<1x8x32xf32, #tpu.memory_space<vmem>>, %arg3: memref<1x8x1xf32, #tpu.memory_space<vmem>>, %arg4: memref<1x1x8xf32, #tpu.memory_space<vmem>>, %arg5: memref<32x96xbf16, #tpu.memory_space<vmem>>, %arg6: memref<32x32xbf16, #tpu.memory_space<vmem>>, %arg7: memref<1x32xf32, #tpu.memory_space<vmem>>, %arg8: memref<1x32xf32, #tpu.memory_space<vmem>>, %arg9: memref<1x32xf32, #tpu.memory_space<vmem>>, %arg10: memref<32x64xbf16, #tpu.memory_space<vmem>>, %arg11: memref<1x64xf32, #tpu.memory_space<vmem>>, %arg12: memref<64x32xbf16, #tpu.memory_space<vmem>>, %arg13: memref<1x32xf32, #tpu.memory_space<vmem>>, %arg14: memref<1x32xf32, #tpu.memory_space<vmem>>, %arg15: memref<1x32xf32, #tpu.memory_space<vmem>>, %arg16: memref<1x8x32xf32, #tpu.memory_space<vmem>>) attributes {dimension_semantics = [#tpu.dimension_semantics<parallel>], iteration_bounds = array<i64: 2>, scalar_prefetch = 0 : i64, scratch_operands = 0 : i64, tpu.core_type = #tpu.core_type<tc>, window_params = [{transform_indices = @transform_0, window_bounds = array<i64: 1, 8, 32>}, {transform_indices = @transform_1, window_bounds = array<i64: 1, 8, 32>}, {transform_indices = @transform_2, window_bounds = array<i64: 1, 8, 1>}, {transform_indices = @transform_3, window_bounds = array<i64: 1, 1, 8>}, {pipeline_mode = #tpu.pipeline_mode<synchronous>, transform_indices = @transform_4, window_bounds = array<i64: 32, 96>}, {pipeline_mode = #tpu.pipeline_mode<synchronous>, transform_indices = @transform_5, window_bounds = array<i64: 32, 32>}, {pipeline_mode = #tpu.pipeline_mode<synchronous>, transform_indices = @transform_6, window_bounds = array<i64: 1, 32>}, {pipeline_mode = #tpu.pipeline_mode<synchronous>, transform_indices = @transform_7, window_bounds = array<i64: 1, 32>}, {pipeline_mode = #tpu.pipeline_mode<synchronous>, transform_indices = @transform_8, window_bounds = array<i64: 1, 32>}, {pipeline_mode = #tpu.pipeline_mode<synchronous>, transform_indices = @transform_9, window_bounds = array<i64: 32, 64>}, {pipeline_mode = #tpu.pipeline_mode<synchronous>, transform_indices = @transform_10, window_bounds = array<i64: 1, 64>}, {pipeline_mode = #tpu.pipeline_mode<synchronous>, transform_indices = @transform_11, window_bounds = array<i64: 64, 32>}, {pipeline_mode = #tpu.pipeline_mode<synchronous>, transform_indices = @transform_12, window_bounds = array<i64: 1, 32>}, {pipeline_mode = #tpu.pipeline_mode<synchronous>, transform_indices = @transform_13, window_bounds = array<i64: 1, 32>}, {pipeline_mode = #tpu.pipeline_mode<synchronous>, transform_indices = @transform_14, window_bounds = array<i64: 1, 32>}, {transform_indices = @transform_15, window_bounds = array<i64: 1, 8, 32>}]} {
    %c0 = arith.constant 0 : index
    %c0_0 = arith.constant 0 : index
    %c0_1 = arith.constant 0 : index
    %0 = vector.load %arg1[%c0, %c0_0, %c0_1] : memref<1x8x32xf32, #tpu.memory_space<vmem>>, vector<1x8x32xf32>
    %1 = vector.shape_cast %0 : vector<1x8x32xf32> to vector<8x32xf32>
    %c0_2 = arith.constant 0 : index
    %c0_3 = arith.constant 0 : index
    %c0_4 = arith.constant 0 : index
    %2 = vector.load %arg2[%c0_2, %c0_3, %c0_4] : memref<1x8x32xf32, #tpu.memory_space<vmem>>, vector<1x8x32xf32>
    %3 = vector.shape_cast %2 : vector<1x8x32xf32> to vector<8x32xf32>
    %4 = arith.addf %1, %3 : vector<8x32xf32>
    %c0_5 = arith.constant 0 : index
    %c0_6 = arith.constant 0 : index
    %c0_7 = arith.constant 0 : index
    %5 = vector.load %arg3[%c0_5, %c0_6, %c0_7] : memref<1x8x1xf32, #tpu.memory_space<vmem>>, vector<1x8x1xf32>
    %6 = vector.shape_cast %5 : vector<1x8x1xf32> to vector<8x1xf32>
    %7 = arith.truncf %4 : vector<8x32xf32> to vector<8x32xbf16>
    %c0_8 = arith.constant 0 : index
    %c0_9 = arith.constant 0 : index
    %8 = vector.load %arg5[%c0_8, %c0_9] : memref<32x96xbf16, #tpu.memory_space<vmem>>, vector<32x96xbf16>
    %cst = arith.constant dense<0.000000e+00> : vector<8x96xf32>
    %9 = tpu.matmul %7, %8, %cst {dimension_numbers = #tpu.dot_dimension_numbers<[1], [0], [0], [1], [0, 0, 1, 1], [], []>} : vector<8x32xbf16>, vector<32x96xbf16>, vector<8x96xf32> -> vector<8x96xf32>
    %10 = vector.extract_strided_slice %9 {offsets = [0, 0], sizes = [8, 32], strides = [1, 1]} : vector<8x96xf32> to vector<8x32xf32>
    %11 = vector.extract_strided_slice %9 {offsets = [0, 32], sizes = [8, 32], strides = [1, 1]} : vector<8x96xf32> to vector<8x32xf32>
    %12 = vector.extract_strided_slice %9 {offsets = [0, 64], sizes = [8, 32], strides = [1, 1]} : vector<8x96xf32> to vector<8x32xf32>
    %c0_10 = arith.constant 0 : index
    %c0_11 = arith.constant 0 : index
    %c0_12 = arith.constant 0 : index
    %13 = vector.load %arg4[%c0_10, %c0_11, %c0_12] : memref<1x1x8xf32, #tpu.memory_space<vmem>>, vector<1x1x8xf32>
    %14 = vector.shape_cast %13 : vector<1x1x8xf32> to vector<1x8xf32>
    %15 = tpu.iota {dimensions = array<i32: 0>} : vector<8x8xi32>
    %16 = tpu.iota {dimensions = array<i32: 1>} : vector<8x8xi32>
    %17 = arith.cmpi sgt, %16, %15 : vector<8x8xi32>
    %cst_13 = arith.constant 5.000000e-01 : f32
    %18 = vector.broadcast %cst_13 : f32 to vector<1x8xf32>
    %19 = arith.cmpf ogt, %14, %18 : vector<1x8xf32>
    %20 = vector.broadcast %19 : vector<1x8xi1> to vector<8x8xi1>
    %21 = arith.ori %17, %20 : vector<8x8xi1>
    %cst_14 = arith.constant -1.000000e+09 : f32
    %cst_15 = arith.constant 0.000000e+00 : f32
    %22 = vector.broadcast %cst_14 : f32 to vector<8x8xf32>
    %23 = vector.broadcast %cst_15 : f32 to vector<8x8xf32>
    %24 = arith.select %21, %22, %23 : vector<8x8xi1>, vector<8x8xf32>
    %25 = vector.extract_strided_slice %10 {offsets = [0, 0], sizes = [8, 16], strides = [1, 1]} : vector<8x32xf32> to vector<8x16xf32>
    %26 = arith.truncf %25 : vector<8x16xf32> to vector<8x16xbf16>
    %27 = vector.extract_strided_slice %11 {offsets = [0, 0], sizes = [8, 16], strides = [1, 1]} : vector<8x32xf32> to vector<8x16xf32>
    %28 = arith.truncf %27 : vector<8x16xf32> to vector<8x16xbf16>
    %29 = vector.extract_strided_slice %12 {offsets = [0, 0], sizes = [8, 16], strides = [1, 1]} : vector<8x32xf32> to vector<8x16xf32>
    %30 = arith.truncf %29 : vector<8x16xf32> to vector<8x16xbf16>
    "tpu.trace_start"() <{level = 10 : i32, message = "qd,kd->qk"}> : () -> ()
    %cst_16 = arith.constant dense<0.000000e+00> : vector<8x8xf32>
    %31 = tpu.matmul %26, %28, %cst_16 {dimension_numbers = #tpu.dot_dimension_numbers<[1], [1], [0], [0], [0, 0, 1, 0], [], []>} : vector<8x16xbf16>, vector<8x16xbf16>, vector<8x8xf32> -> vector<8x8xf32>
    "tpu.trace_stop"() : () -> ()
    %32 = arith.addf %31, %24 : vector<8x8xf32>
    %cst_17 = arith.constant dense<0xFF800000> : vector<8xf32>
    %33 = vector.multi_reduction <maximumf>, %32, %cst_17 [1] : vector<8x8xf32> to vector<8xf32>
    %34 = vector.shape_cast %33 : vector<8xf32> to vector<8x1xf32>
    %35 = vector.broadcast %34 : vector<8x1xf32> to vector<8x8xf32>
    %36 = arith.subf %32, %35 : vector<8x8xf32>
    %37 = math.exp %36 : vector<8x8xf32>
    %cst_18 = arith.constant dense<0.000000e+00> : vector<8xf32>
    %38 = vector.multi_reduction <add>, %37, %cst_18 [1] : vector<8x8xf32> to vector<8xf32>
    %39 = vector.shape_cast %38 : vector<8xf32> to vector<8x1xf32>
    %40 = tpu.reciprocal %39 {approx = true} : vector<8x1xf32> -> vector<8x1xf32>
    %41 = vector.broadcast %40 : vector<8x1xf32> to vector<8x8xf32>
    %42 = arith.mulf %37, %41 : vector<8x8xf32>
    %43 = arith.truncf %42 : vector<8x8xf32> to vector<8x8xbf16>
    %cst_19 = arith.constant dense<0.000000e+00> : vector<8x16xf32>
    %44 = tpu.matmul %43, %30, %cst_19 {dimension_numbers = #tpu.dot_dimension_numbers<[1], [0], [0], [1], [0, 0, 1, 1], [], []>} : vector<8x8xbf16>, vector<8x16xbf16>, vector<8x16xf32> -> vector<8x16xf32>
    %45 = vector.extract_strided_slice %10 {offsets = [0, 16], sizes = [8, 16], strides = [1, 1]} : vector<8x32xf32> to vector<8x16xf32>
    %46 = arith.truncf %45 : vector<8x16xf32> to vector<8x16xbf16>
    %47 = vector.extract_strided_slice %11 {offsets = [0, 16], sizes = [8, 16], strides = [1, 1]} : vector<8x32xf32> to vector<8x16xf32>
    %48 = arith.truncf %47 : vector<8x16xf32> to vector<8x16xbf16>
    %49 = vector.extract_strided_slice %12 {offsets = [0, 16], sizes = [8, 16], strides = [1, 1]} : vector<8x32xf32> to vector<8x16xf32>
    %50 = arith.truncf %49 : vector<8x16xf32> to vector<8x16xbf16>
    "tpu.trace_start"() <{level = 10 : i32, message = "qd,kd->qk"}> : () -> ()
    %cst_20 = arith.constant dense<0.000000e+00> : vector<8x8xf32>
    %51 = tpu.matmul %46, %48, %cst_20 {dimension_numbers = #tpu.dot_dimension_numbers<[1], [1], [0], [0], [0, 0, 1, 0], [], []>} : vector<8x16xbf16>, vector<8x16xbf16>, vector<8x8xf32> -> vector<8x8xf32>
    "tpu.trace_stop"() : () -> ()
    %52 = arith.addf %51, %24 : vector<8x8xf32>
    %cst_21 = arith.constant dense<0xFF800000> : vector<8xf32>
    %53 = vector.multi_reduction <maximumf>, %52, %cst_21 [1] : vector<8x8xf32> to vector<8xf32>
    %54 = vector.shape_cast %53 : vector<8xf32> to vector<8x1xf32>
    %55 = vector.broadcast %54 : vector<8x1xf32> to vector<8x8xf32>
    %56 = arith.subf %52, %55 : vector<8x8xf32>
    %57 = math.exp %56 : vector<8x8xf32>
    %cst_22 = arith.constant dense<0.000000e+00> : vector<8xf32>
    %58 = vector.multi_reduction <add>, %57, %cst_22 [1] : vector<8x8xf32> to vector<8xf32>
    %59 = vector.shape_cast %58 : vector<8xf32> to vector<8x1xf32>
    %60 = tpu.reciprocal %59 {approx = true} : vector<8x1xf32> -> vector<8x1xf32>
    %61 = vector.broadcast %60 : vector<8x1xf32> to vector<8x8xf32>
    %62 = arith.mulf %57, %61 : vector<8x8xf32>
    %63 = arith.truncf %62 : vector<8x8xf32> to vector<8x8xbf16>
    %cst_23 = arith.constant dense<0.000000e+00> : vector<8x16xf32>
    %64 = tpu.matmul %63, %50, %cst_23 {dimension_numbers = #tpu.dot_dimension_numbers<[1], [0], [0], [1], [0, 0, 1, 1], [], []>} : vector<8x8xbf16>, vector<8x16xbf16>, vector<8x16xf32> -> vector<8x16xf32>
    %65 = tpu.concatenate %44, %64 in 1 : vector<8x16xf32>, vector<8x16xf32> -> vector<8x32xf32>
    %66 = arith.truncf %65 : vector<8x32xf32> to vector<8x32xbf16>
    %c0_24 = arith.constant 0 : index
    %c0_25 = arith.constant 0 : index
    %67 = vector.load %arg6[%c0_24, %c0_25] : memref<32x32xbf16, #tpu.memory_space<vmem>>, vector<32x32xbf16>
    %cst_26 = arith.constant dense<0.000000e+00> : vector<8x32xf32>
    %68 = tpu.matmul %66, %67, %cst_26 {dimension_numbers = #tpu.dot_dimension_numbers<[1], [0], [0], [1], [0, 0, 1, 1], [], []>} : vector<8x32xbf16>, vector<32x32xbf16>, vector<8x32xf32> -> vector<8x32xf32>
    %c0_27 = arith.constant 0 : index
    %c0_28 = arith.constant 0 : index
    %69 = vector.load %arg7[%c0_27, %c0_28] : memref<1x32xf32, #tpu.memory_space<vmem>>, vector<1x32xf32>
    %70 = vector.broadcast %69 : vector<1x32xf32> to vector<8x32xf32>
    %71 = arith.addf %68, %70 : vector<8x32xf32>
    %72 = arith.addf %71, %4 : vector<8x32xf32>
    %c0_29 = arith.constant 0 : index
    %c0_30 = arith.constant 0 : index
    %73 = vector.load %arg8[%c0_29, %c0_30] : memref<1x32xf32, #tpu.memory_space<vmem>>, vector<1x32xf32>
    %c0_31 = arith.constant 0 : index
    %c0_32 = arith.constant 0 : index
    %74 = vector.load %arg9[%c0_31, %c0_32] : memref<1x32xf32, #tpu.memory_space<vmem>>, vector<1x32xf32>
    %cst_33 = arith.constant dense<0.000000e+00> : vector<8xf32>
    %75 = vector.multi_reduction <add>, %72, %cst_33 [1] : vector<8x32xf32> to vector<8xf32>
    %76 = vector.shape_cast %75 : vector<8xf32> to vector<8x1xf32>
    %cst_34 = arith.constant 3.200000e+01 : f32
    %77 = vector.broadcast %cst_34 : f32 to vector<8x1xf32>
    %78 = arith.divf %76, %77 : vector<8x1xf32>
    %79 = vector.broadcast %78 : vector<8x1xf32> to vector<8x32xf32>
    %80 = arith.subf %72, %79 : vector<8x32xf32>
    %81 = arith.mulf %80, %80 : vector<8x32xf32>
    %cst_35 = arith.constant dense<0.000000e+00> : vector<8xf32>
    %82 = vector.multi_reduction <add>, %81, %cst_35 [1] : vector<8x32xf32> to vector<8xf32>
    %83 = vector.shape_cast %82 : vector<8xf32> to vector<8x1xf32>
    %cst_36 = arith.constant 3.200000e+01 : f32
    %84 = vector.broadcast %cst_36 : f32 to vector<8x1xf32>
    %85 = arith.divf %83, %84 : vector<8x1xf32>
    %86 = vector.broadcast %78 : vector<8x1xf32> to vector<8x32xf32>
    %87 = arith.subf %72, %86 : vector<8x32xf32>
    %cst_37 = arith.constant 9.99999997E-7 : f32
    %88 = vector.broadcast %cst_37 : f32 to vector<8x1xf32>
    %89 = arith.addf %85, %88 : vector<8x1xf32>
    %90 = math.rsqrt %89 : vector<8x1xf32>
    %91 = vector.broadcast %90 : vector<8x1xf32> to vector<8x32xf32>
    %92 = arith.mulf %87, %91 : vector<8x32xf32>
    %93 = vector.broadcast %73 : vector<1x32xf32> to vector<8x32xf32>
    %94 = arith.mulf %92, %93 : vector<8x32xf32>
    %95 = vector.broadcast %74 : vector<1x32xf32> to vector<8x32xf32>
    %96 = arith.addf %94, %95 : vector<8x32xf32>
    %97 = vector.broadcast %6 : vector<8x1xf32> to vector<8x32xf32>
    %98 = arith.mulf %96, %97 : vector<8x32xf32>
    %99 = arith.truncf %98 : vector<8x32xf32> to vector<8x32xbf16>
    %c0_38 = arith.constant 0 : index
    %c0_39 = arith.constant 0 : index
    %100 = vector.load %arg10[%c0_38, %c0_39] : memref<32x64xbf16, #tpu.memory_space<vmem>>, vector<32x64xbf16>
    %cst_40 = arith.constant dense<0.000000e+00> : vector<8x64xf32>
    %101 = tpu.matmul %99, %100, %cst_40 {dimension_numbers = #tpu.dot_dimension_numbers<[1], [0], [0], [1], [0, 0, 1, 1], [], []>} : vector<8x32xbf16>, vector<32x64xbf16>, vector<8x64xf32> -> vector<8x64xf32>
    %c0_41 = arith.constant 0 : index
    %c0_42 = arith.constant 0 : index
    %102 = vector.load %arg11[%c0_41, %c0_42] : memref<1x64xf32, #tpu.memory_space<vmem>>, vector<1x64xf32>
    %103 = vector.broadcast %102 : vector<1x64xf32> to vector<8x64xf32>
    %104 = arith.addf %101, %103 : vector<8x64xf32>
    %cst_43 = arith.constant 5.000000e-01 : f32
    %105 = vector.broadcast %cst_43 : f32 to vector<8x64xf32>
    %106 = arith.mulf %105, %104 : vector<8x64xf32>
    %cst_44 = arith.constant 4.471500e-02 : f32
    %107 = vector.broadcast %cst_44 : f32 to vector<8x64xf32>
    %108 = arith.mulf %107, %104 : vector<8x64xf32>
    %109 = arith.mulf %108, %104 : vector<8x64xf32>
    %110 = arith.mulf %109, %104 : vector<8x64xf32>
    %111 = arith.addf %104, %110 : vector<8x64xf32>
    %cst_45 = arith.constant 0.797884583 : f32
    %112 = vector.broadcast %cst_45 : f32 to vector<8x64xf32>
    %113 = arith.mulf %112, %111 : vector<8x64xf32>
    %114 = math.tanh %113 : vector<8x64xf32>
    %cst_46 = arith.constant 1.000000e+00 : f32
    %115 = vector.broadcast %cst_46 : f32 to vector<8x64xf32>
    %116 = arith.addf %115, %114 : vector<8x64xf32>
    %117 = arith.mulf %106, %116 : vector<8x64xf32>
    %118 = arith.truncf %117 : vector<8x64xf32> to vector<8x64xbf16>
    %c0_47 = arith.constant 0 : index
    %c0_48 = arith.constant 0 : index
    %119 = vector.load %arg12[%c0_47, %c0_48] : memref<64x32xbf16, #tpu.memory_space<vmem>>, vector<64x32xbf16>
    %cst_49 = arith.constant dense<0.000000e+00> : vector<8x32xf32>
    %120 = tpu.matmul %118, %119, %cst_49 {dimension_numbers = #tpu.dot_dimension_numbers<[1], [0], [0], [1], [0, 0, 1, 1], [], []>} : vector<8x64xbf16>, vector<64x32xbf16>, vector<8x32xf32> -> vector<8x32xf32>
    %c0_50 = arith.constant 0 : index
    %c0_51 = arith.constant 0 : index
    %121 = vector.load %arg13[%c0_50, %c0_51] : memref<1x32xf32, #tpu.memory_space<vmem>>, vector<1x32xf32>
    %122 = vector.broadcast %121 : vector<1x32xf32> to vector<8x32xf32>
    %123 = arith.addf %120, %122 : vector<8x32xf32>
    %124 = arith.addf %123, %98 : vector<8x32xf32>
    %c0_52 = arith.constant 0 : index
    %c0_53 = arith.constant 0 : index
    %125 = vector.load %arg14[%c0_52, %c0_53] : memref<1x32xf32, #tpu.memory_space<vmem>>, vector<1x32xf32>
    %c0_54 = arith.constant 0 : index
    %c0_55 = arith.constant 0 : index
    %126 = vector.load %arg15[%c0_54, %c0_55] : memref<1x32xf32, #tpu.memory_space<vmem>>, vector<1x32xf32>
    %cst_56 = arith.constant dense<0.000000e+00> : vector<8xf32>
    %127 = vector.multi_reduction <add>, %124, %cst_56 [1] : vector<8x32xf32> to vector<8xf32>
    %128 = vector.shape_cast %127 : vector<8xf32> to vector<8x1xf32>
    %cst_57 = arith.constant 3.200000e+01 : f32
    %129 = vector.broadcast %cst_57 : f32 to vector<8x1xf32>
    %130 = arith.divf %128, %129 : vector<8x1xf32>
    %131 = vector.broadcast %130 : vector<8x1xf32> to vector<8x32xf32>
    %132 = arith.subf %124, %131 : vector<8x32xf32>
    %133 = arith.mulf %132, %132 : vector<8x32xf32>
    %cst_58 = arith.constant dense<0.000000e+00> : vector<8xf32>
    %134 = vector.multi_reduction <add>, %133, %cst_58 [1] : vector<8x32xf32> to vector<8xf32>
    %135 = vector.shape_cast %134 : vector<8xf32> to vector<8x1xf32>
    %cst_59 = arith.constant 3.200000e+01 : f32
    %136 = vector.broadcast %cst_59 : f32 to vector<8x1xf32>
    %137 = arith.divf %135, %136 : vector<8x1xf32>
    %138 = vector.broadcast %130 : vector<8x1xf32> to vector<8x32xf32>
    %139 = arith.subf %124, %138 : vector<8x32xf32>
    %cst_60 = arith.constant 9.99999997E-7 : f32
    %140 = vector.broadcast %cst_60 : f32 to vector<8x1xf32>
    %141 = arith.addf %137, %140 : vector<8x1xf32>
    %142 = math.rsqrt %141 : vector<8x1xf32>
    %143 = vector.broadcast %142 : vector<8x1xf32> to vector<8x32xf32>
    %144 = arith.mulf %139, %143 : vector<8x32xf32>
    %145 = vector.broadcast %125 : vector<1x32xf32> to vector<8x32xf32>
    %146 = arith.mulf %144, %145 : vector<8x32xf32>
    %147 = vector.broadcast %126 : vector<1x32xf32> to vector<8x32xf32>
    %148 = arith.addf %146, %147 : vector<8x32xf32>
    %149 = vector.broadcast %6 : vector<8x1xf32> to vector<8x32xf32>
    %150 = arith.mulf %148, %149 : vector<8x32xf32>
    %c0_61 = arith.constant 0 : index
    %c0_62 = arith.constant 0 : index
    %c0_63 = arith.constant 0 : index
    %151 = vector.load %arg16[%c0_61, %c0_62, %c0_63] : memref<1x8x32xf32, #tpu.memory_space<vmem>>, vector<1x8x32xf32>
    %152 = vector.shape_cast %151 : vector<1x8x32xf32> to vector<8x32xf32>
    %153 = vector.shape_cast %150 : vector<8x32xf32> to vector<1x8x32xf32>
    tpu.vector_store %arg16[%c0_61, %c0_62, %c0_63], %153 {strides = array<i32>} : memref<1x8x32xf32, #tpu.memory_space<vmem>>, vector<1x8x32xf32>,
    return
  }
  func.func @transform_0(%arg0: i32) -> (i32, i32, i32) {
    %c0_i32 = arith.constant 0 : i32
    %c0_i32_0 = arith.constant 0 : i32
    %c0_i32_1 = arith.constant 0 : i32
    return %arg0, %c0_i32, %c0_i32_0 : i32, i32, i32
  }
  func.func @transform_1(%arg0: i32) -> (i32, i32, i32) {
    %c0_i32 = arith.constant 0 : i32
    %c0_i32_0 = arith.constant 0 : i32
    %c0_i32_1 = arith.constant 0 : i32
    return %arg0, %c0_i32, %c0_i32_0 : i32, i32, i32
  }
  func.func @transform_2(%arg0: i32) -> (i32, i32, i32) {
    %c0_i32 = arith.constant 0 : i32
    %c0_i32_0 = arith.constant 0 : i32
    %c0_i32_1 = arith.constant 0 : i32
    return %arg0, %c0_i32, %c0_i32_0 : i32, i32, i32
  }
  func.func @transform_3(%arg0: i32) -> (i32, i32, i32) {
    %c0_i32 = arith.constant 0 : i32
    %c0_i32_0 = arith.constant 0 : i32
    %c0_i32_1 = arith.constant 0 : i32
    return %arg0, %c0_i32, %c0_i32_0 : i32, i32, i32
  }
  func.func @transform_4(%arg0: i32) -> (i32, i32) {
    %c0_i32 = arith.constant 0 : i32
    %c0_i32_0 = arith.constant 0 : i32
    %c0_i32_1 = arith.constant 0 : i32
    return %c0_i32, %c0_i32_0 : i32, i32
  }
  func.func @transform_5(%arg0: i32) -> (i32, i32) {
    %c0_i32 = arith.constant 0 : i32
    %c0_i32_0 = arith.constant 0 : i32
    %c0_i32_1 = arith.constant 0 : i32
    return %c0_i32, %c0_i32_0 : i32, i32
  }
  func.func @transform_6(%arg0: i32) -> (i32, i32) {
    %c0_i32 = arith.constant 0 : i32
    %c0_i32_0 = arith.constant 0 : i32
    %c0_i32_1 = arith.constant 0 : i32
    return %c0_i32, %c0_i32_0 : i32, i32
  }
  func.func @transform_7(%arg0: i32) -> (i32, i32) {
    %c0_i32 = arith.constant 0 : i32
    %c0_i32_0 = arith.constant 0 : i32
    %c0_i32_1 = arith.constant 0 : i32
    return %c0_i32, %c0_i32_0 : i32, i32
  }
  func.func @transform_8(%arg0: i32) -> (i32, i32) {
    %c0_i32 = arith.constant 0 : i32
    %c0_i32_0 = arith.constant 0 : i32
    %c0_i32_1 = arith.constant 0 : i32
    return %c0_i32, %c0_i32_0 : i32, i32
  }
  func.func @transform_9(%arg0: i32) -> (i32, i32) {
    %c0_i32 = arith.constant 0 : i32
    %c0_i32_0 = arith.constant 0 : i32
    %c0_i32_1 = arith.constant 0 : i32
    return %c0_i32, %c0_i32_0 : i32, i32
  }
  func.func @transform_10(%arg0: i32) -> (i32, i32) {
    %c0_i32 = arith.constant 0 : i32
    %c0_i32_0 = arith.constant 0 : i32
    %c0_i32_1 = arith.constant 0 : i32
    return %c0_i32, %c0_i32_0 : i32, i32
  }
  func.func @transform_11(%arg0: i32) -> (i32, i32) {
    %c0_i32 = arith.constant 0 : i32
    %c0_i32_0 = arith.constant 0 : i32
    %c0_i32_1 = arith.constant 0 : i32
    return %c0_i32, %c0_i32_0 : i32, i32
  }
  func.func @transform_12(%arg0: i32) -> (i32, i32) {
    %c0_i32 = arith.constant 0 : i32
    %c0_i32_0 = arith.constant 0 : i32
    %c0_i32_1 = arith.constant 0 : i32
    return %c0_i32, %c0_i32_0 : i32, i32
  }
  func.func @transform_13(%arg0: i32) -> (i32, i32) {
    %c0_i32 = arith.constant 0 : i32
    %c0_i32_0 = arith.constant 0 : i32
    %c0_i32_1 = arith.constant 0 : i32
    return %c0_i32, %c0_i32_0 : i32, i32
  }
  func.func @transform_14(%arg0: i32) -> (i32, i32) {
    %c0_i32 = arith.constant 0 : i32
    %c0_i32_0 = arith.constant 0 : i32
    %c0_i32_1 = arith.constant 0 : i32
    return %c0_i32, %c0_i32_0 : i32, i32
  }
  func.func @transform_15(%arg0: i32) -> (i32, i32, i32) {
    %c0_i32 = arith.constant 0 : i32
    %c0_i32_0 = arith.constant 0 : i32
    %c0_i32_1 = arith.constant 0 : i32
    return %arg0, %c0_i32, %c0_i32_0 : i32, i32, i32
  }
}

module attributes {stable_mosaic.version = 11 : i64} {
  func.func @_sincos_kernel(%arg0: i32, %arg1: memref<1x8x1xf32, #tpu.memory_space<vmem>>, %arg2: memref<1x32xf32, #tpu.memory_space<vmem>>, %arg3: memref<1x8x1xf32, #tpu.memory_space<vmem>>, %arg4: memref<1x8x32xf32, #tpu.memory_space<vmem>>) attributes {dimension_semantics = [#tpu.dimension_semantics<parallel>], iteration_bounds = array<i64: 2>, scalar_prefetch = 0 : i64, scratch_operands = 0 : i64, tpu.core_type = #tpu.core_type<tc>, window_params = [{transform_indices = @transform_0, window_bounds = array<i64: 1, 8, 1>}, {pipeline_mode = #tpu.pipeline_mode<synchronous>, transform_indices = @transform_1, window_bounds = array<i64: 1, 32>}, {transform_indices = @transform_2, window_bounds = array<i64: 1, 8, 1>}, {transform_indices = @transform_3, window_bounds = array<i64: 1, 8, 32>}]} {
    %c0 = arith.constant 0 : index
    %c0_0 = arith.constant 0 : index
    %c0_1 = arith.constant 0 : index
    %0 = vector.load %arg1[%c0, %c0_0, %c0_1] : memref<1x8x1xf32, #tpu.memory_space<vmem>>, vector<1x8x1xf32>
    %1 = vector.shape_cast %0 : vector<1x8x1xf32> to vector<8x1xf32>
    %c0_2 = arith.constant 0 : index
    %c0_3 = arith.constant 0 : index
    %2 = vector.load %arg2[%c0_2, %c0_3] : memref<1x32xf32, #tpu.memory_space<vmem>>, vector<1x32xf32>
    %3 = vector.broadcast %1 : vector<8x1xf32> to vector<8x32xf32>
    %4 = vector.broadcast %2 : vector<1x32xf32> to vector<8x32xf32>
    %5 = arith.divf %3, %4 : vector<8x32xf32>
    %6 = tpu.iota {dimensions = array<i32: 1>} : vector<8x32xi32>
    %c2_i32 = arith.constant 2 : i32
    %c0_i32 = arith.constant 0 : i32
    %7 = arith.cmpi eq, %c2_i32, %c0_i32 : i32
    %c1_i32 = arith.constant 1 : i32
    %8 = arith.select %7, %c1_i32, %c2_i32 : i32
    %9 = vector.broadcast %8 : i32 to vector<8x32xi32>
    %10 = arith.remsi %6, %9 : vector<8x32xi32>
    %c0_i32_4 = arith.constant 0 : i32
    %11 = vector.broadcast %c0_i32_4 : i32 to vector<8x32xi32>
    %12 = arith.cmpi ne, %10, %11 : vector<8x32xi32>
    %c0_i32_5 = arith.constant 0 : i32
    %13 = vector.broadcast %c0_i32_5 : i32 to vector<8x32xi32>
    %14 = arith.cmpi slt, %10, %13 : vector<8x32xi32>
    %c0_i32_6 = arith.constant 0 : i32
    %15 = arith.cmpi slt, %8, %c0_i32_6 : i32
    %16 = vector.broadcast %15 : i1 to vector<8x32xi1>
    %17 = vector.broadcast %16 : vector<8x32xi1> to vector<8x32xi1>
    %18 = arith.xori %14, %17 : vector<8x32xi1>
    %19 = arith.andi %18, %12 : vector<8x32xi1>
    %20 = vector.broadcast %8 : i32 to vector<8x32xi32>
    %21 = arith.addi %10, %20 : vector<8x32xi32>
    %22 = arith.select %19, %21, %10 : vector<8x32xi1>, vector<8x32xi32>
    %c0_i32_7 = arith.constant 0 : i32
    %23 = vector.broadcast %c0_i32_7 : i32 to vector<8x32xi32>
    %24 = arith.cmpi eq, %22, %23 : vector<8x32xi32>
    %25 = math.sin %5 : vector<8x32xf32>
    %26 = math.cos %5 : vector<8x32xf32>
    %27 = arith.select %24, %25, %26 : vector<8x32xi1>, vector<8x32xf32>
    %c0_8 = arith.constant 0 : index
    %c0_9 = arith.constant 0 : index
    %c0_10 = arith.constant 0 : index
    %28 = vector.load %arg3[%c0_8, %c0_9, %c0_10] : memref<1x8x1xf32, #tpu.memory_space<vmem>>, vector<1x8x1xf32>
    %29 = vector.shape_cast %28 : vector<1x8x1xf32> to vector<8x1xf32>
    %30 = vector.broadcast %29 : vector<8x1xf32> to vector<8x32xf32>
    %31 = arith.mulf %27, %30 : vector<8x32xf32>
    %c0_11 = arith.constant 0 : index
    %c0_12 = arith.constant 0 : index
    %c0_13 = arith.constant 0 : index
    %32 = vector.load %arg4[%c0_11, %c0_12, %c0_13] : memref<1x8x32xf32, #tpu.memory_space<vmem>>, vector<1x8x32xf32>
    %33 = vector.shape_cast %32 : vector<1x8x32xf32> to vector<8x32xf32>
    %34 = vector.shape_cast %31 : vector<8x32xf32> to vector<1x8x32xf32>
    tpu.vector_store %arg4[%c0_11, %c0_12, %c0_13], %34 {strides = array<i32>} : memref<1x8x32xf32, #tpu.memory_space<vmem>>, vector<1x8x32xf32>,
    return
  }
  func.func @transform_0(%arg0: i32) -> (i32, i32, i32) {
    %c0_i32 = arith.constant 0 : i32
    %c0_i32_0 = arith.constant 0 : i32
    %c0_i32_1 = arith.constant 0 : i32
    return %arg0, %c0_i32, %c0_i32_0 : i32, i32, i32
  }
  func.func @transform_1(%arg0: i32) -> (i32, i32) {
    %c0_i32 = arith.constant 0 : i32
    %c0_i32_0 = arith.constant 0 : i32
    %c0_i32_1 = arith.constant 0 : i32
    return %c0_i32, %c0_i32_0 : i32, i32
  }
  func.func @transform_2(%arg0: i32) -> (i32, i32, i32) {
    %c0_i32 = arith.constant 0 : i32
    %c0_i32_0 = arith.constant 0 : i32
    %c0_i32_1 = arith.constant 0 : i32
    return %arg0, %c0_i32, %c0_i32_0 : i32, i32, i32
  }
  func.func @transform_3(%arg0: i32) -> (i32, i32, i32) {
    %c0_i32 = arith.constant 0 : i32
    %c0_i32_0 = arith.constant 0 : i32
    %c0_i32_1 = arith.constant 0 : i32
    return %arg0, %c0_i32, %c0_i32_0 : i32, i32, i32
  }
}

module attributes {stable_mosaic.version = 11 : i64} {
  func.func @_linear_kernel(%arg0: i32, %arg1: memref<1x8x64xf32, #tpu.memory_space<vmem>>, %arg2: memref<64x32xbf16, #tpu.memory_space<vmem>>, %arg3: memref<1x32xf32, #tpu.memory_space<vmem>>, %arg4: memref<1x8x32xf32, #tpu.memory_space<vmem>>) attributes {dimension_semantics = [#tpu.dimension_semantics<parallel>], iteration_bounds = array<i64: 2>, scalar_prefetch = 0 : i64, scratch_operands = 0 : i64, tpu.core_type = #tpu.core_type<tc>, window_params = [{transform_indices = @transform_0, window_bounds = array<i64: 1, 8, 64>}, {pipeline_mode = #tpu.pipeline_mode<synchronous>, transform_indices = @transform_1, window_bounds = array<i64: 64, 32>}, {pipeline_mode = #tpu.pipeline_mode<synchronous>, transform_indices = @transform_2, window_bounds = array<i64: 1, 32>}, {transform_indices = @transform_3, window_bounds = array<i64: 1, 8, 32>}]} {
    %c0 = arith.constant 0 : index
    %c0_0 = arith.constant 0 : index
    %c0_1 = arith.constant 0 : index
    %0 = vector.load %arg1[%c0, %c0_0, %c0_1] : memref<1x8x64xf32, #tpu.memory_space<vmem>>, vector<1x8x64xf32>
    %1 = vector.shape_cast %0 : vector<1x8x64xf32> to vector<8x64xf32>
    %2 = arith.truncf %1 : vector<8x64xf32> to vector<8x64xbf16>
    %c0_2 = arith.constant 0 : index
    %c0_3 = arith.constant 0 : index
    %3 = vector.load %arg2[%c0_2, %c0_3] : memref<64x32xbf16, #tpu.memory_space<vmem>>, vector<64x32xbf16>
    %cst = arith.constant dense<0.000000e+00> : vector<8x32xf32>
    %4 = tpu.matmul %2, %3, %cst {dimension_numbers = #tpu.dot_dimension_numbers<[1], [0], [0], [1], [0, 0, 1, 1], [], []>} : vector<8x64xbf16>, vector<64x32xbf16>, vector<8x32xf32> -> vector<8x32xf32>
    %c0_4 = arith.constant 0 : index
    %c0_5 = arith.constant 0 : index
    %5 = vector.load %arg3[%c0_4, %c0_5] : memref<1x32xf32, #tpu.memory_space<vmem>>, vector<1x32xf32>
    %6 = vector.broadcast %5 : vector<1x32xf32> to vector<8x32xf32>
    %7 = arith.addf %4, %6 : vector<8x32xf32>
    %c0_6 = arith.constant 0 : index
    %c0_7 = arith.constant 0 : index
    %c0_8 = arith.constant 0 : index
    %8 = vector.load %arg4[%c0_6, %c0_7, %c0_8] : memref<1x8x32xf32, #tpu.memory_space<vmem>>, vector<1x8x32xf32>
    %9 = vector.shape_cast %8 : vector<1x8x32xf32> to vector<8x32xf32>
    %10 = vector.shape_cast %7 : vector<8x32xf32> to vector<1x8x32xf32>
    tpu.vector_store %arg4[%c0_6, %c0_7, %c0_8], %10 {strides = array<i32>} : memref<1x8x32xf32, #tpu.memory_space<vmem>>, vector<1x8x32xf32>,
    return
  }
  func.func @transform_0(%arg0: i32) -> (i32, i32, i32) {
    %c0_i32 = arith.constant 0 : i32
    %c0_i32_0 = arith.constant 0 : i32
    %c0_i32_1 = arith.constant 0 : i32
    return %arg0, %c0_i32, %c0_i32_0 : i32, i32, i32
  }
  func.func @transform_1(%arg0: i32) -> (i32, i32) {
    %c0_i32 = arith.constant 0 : i32
    %c0_i32_0 = arith.constant 0 : i32
    %c0_i32_1 = arith.constant 0 : i32
    return %c0_i32, %c0_i32_0 : i32, i32
  }
  func.func @transform_2(%arg0: i32) -> (i32, i32) {
    %c0_i32 = arith.constant 0 : i32
    %c0_i32_0 = arith.constant 0 : i32
    %c0_i32_1 = arith.constant 0 : i32
    return %c0_i32, %c0_i32_0 : i32, i32
  }
  func.func @transform_3(%arg0: i32) -> (i32, i32, i32) {
    %c0_i32 = arith.constant 0 : i32
    %c0_i32_0 = arith.constant 0 : i32
    %c0_i32_1 = arith.constant 0 : i32
    return %arg0, %c0_i32, %c0_i32_0 : i32, i32, i32
  }
}

module attributes {stable_mosaic.version = 11 : i64} {
  func.func @kernel(%arg0: i32, %arg1: memref<1x8x32xf32, #tpu.memory_space<vmem>>, %arg2: memref<1x8x1xf32, #tpu.memory_space<vmem>>, %arg3: memref<32x96xbf16, #tpu.memory_space<vmem>>, %arg4: memref<32x32xbf16, #tpu.memory_space<vmem>>, %arg5: memref<1x32xf32, #tpu.memory_space<vmem>>, %arg6: memref<1x32xf32, #tpu.memory_space<vmem>>, %arg7: memref<1x32xf32, #tpu.memory_space<vmem>>, %arg8: memref<32x64xbf16, #tpu.memory_space<vmem>>, %arg9: memref<1x64xf32, #tpu.memory_space<vmem>>, %arg10: memref<64x32xbf16, #tpu.memory_space<vmem>>, %arg11: memref<1x32xf32, #tpu.memory_space<vmem>>, %arg12: memref<1x32xf32, #tpu.memory_space<vmem>>, %arg13: memref<1x32xf32, #tpu.memory_space<vmem>>, %arg14: memref<1x8x32xf32, #tpu.memory_space<vmem>>) attributes {dimension_semantics = [#tpu.dimension_semantics<parallel>], iteration_bounds = array<i64: 2>, scalar_prefetch = 0 : i64, scratch_operands = 0 : i64, tpu.core_type = #tpu.core_type<tc>, window_params = [{transform_indices = @transform_0, window_bounds = array<i64: 1, 8, 32>}, {transform_indices = @transform_1, window_bounds = array<i64: 1, 8, 1>}, {pipeline_mode = #tpu.pipeline_mode<synchronous>, transform_indices = @transform_2, window_bounds = array<i64: 32, 96>}, {pipeline_mode = #tpu.pipeline_mode<synchronous>, transform_indices = @transform_3, window_bounds = array<i64: 32, 32>}, {pipeline_mode = #tpu.pipeline_mode<synchronous>, transform_indices = @transform_4, window_bounds = array<i64: 1, 32>}, {pipeline_mode = #tpu.pipeline_mode<synchronous>, transform_indices = @transform_5, window_bounds = array<i64: 1, 32>}, {pipeline_mode = #tpu.pipeline_mode<synchronous>, transform_indices = @transform_6, window_bounds = array<i64: 1, 32>}, {pipeline_mode = #tpu.pipeline_mode<synchronous>, transform_indices = @transform_7, window_bounds = array<i64: 32, 64>}, {pipeline_mode = #tpu.pipeline_mode<synchronous>, transform_indices = @transform_8, window_bounds = array<i64: 1, 64>}, {pipeline_mode = #tpu.pipeline_mode<synchronous>, transform_indices = @transform_9, window_bounds = array<i64: 64, 32>}, {pipeline_mode = #tpu.pipeline_mode<synchronous>, transform_indices = @transform_10, window_bounds = array<i64: 1, 32>}, {pipeline_mode = #tpu.pipeline_mode<synchronous>, transform_indices = @transform_11, window_bounds = array<i64: 1, 32>}, {pipeline_mode = #tpu.pipeline_mode<synchronous>, transform_indices = @transform_12, window_bounds = array<i64: 1, 32>}, {transform_indices = @transform_13, window_bounds = array<i64: 1, 8, 32>}]} {
    %c0 = arith.constant 0 : index
    %c0_0 = arith.constant 0 : index
    %c0_1 = arith.constant 0 : index
    %0 = vector.load %arg1[%c0, %c0_0, %c0_1] : memref<1x8x32xf32, #tpu.memory_space<vmem>>, vector<1x8x32xf32>
    %1 = vector.shape_cast %0 : vector<1x8x32xf32> to vector<8x32xf32>
    %c0_2 = arith.constant 0 : index
    %c0_3 = arith.constant 0 : index
    %c0_4 = arith.constant 0 : index
    %2 = vector.load %arg2[%c0_2, %c0_3, %c0_4] : memref<1x8x1xf32, #tpu.memory_space<vmem>>, vector<1x8x1xf32>
    %3 = vector.shape_cast %2 : vector<1x8x1xf32> to vector<8x1xf32>
    %4 = arith.truncf %1 : vector<8x32xf32> to vector<8x32xbf16>
    %c0_5 = arith.constant 0 : index
    %c0_6 = arith.constant 0 : index
    %5 = vector.load %arg3[%c0_5, %c0_6] : memref<32x96xbf16, #tpu.memory_space<vmem>>, vector<32x96xbf16>
    %cst = arith.constant dense<0.000000e+00> : vector<8x96xf32>
    %6 = tpu.matmul %4, %5, %cst {dimension_numbers = #tpu.dot_dimension_numbers<[1], [0], [0], [1], [0, 0, 1, 1], [], []>} : vector<8x32xbf16>, vector<32x96xbf16>, vector<8x96xf32> -> vector<8x96xf32>
    %7 = vector.extract_strided_slice %6 {offsets = [0, 0], sizes = [8, 32], strides = [1, 1]} : vector<8x96xf32> to vector<8x32xf32>
    %8 = vector.extract_strided_slice %6 {offsets = [0, 32], sizes = [8, 32], strides = [1, 1]} : vector<8x96xf32> to vector<8x32xf32>
    %9 = vector.extract_strided_slice %6 {offsets = [0, 64], sizes = [8, 32], strides = [1, 1]} : vector<8x96xf32> to vector<8x32xf32>
    %10 = vector.extract_strided_slice %7 {offsets = [0, 0], sizes = [8, 16], strides = [1, 1]} : vector<8x32xf32> to vector<8x16xf32>
    %11 = arith.truncf %10 : vector<8x16xf32> to vector<8x16xbf16>
    %12 = vector.extract_strided_slice %8 {offsets = [0, 0], sizes = [8, 16], strides = [1, 1]} : vector<8x32xf32> to vector<8x16xf32>
    %13 = arith.truncf %12 : vector<8x16xf32> to vector<8x16xbf16>
    %14 = vector.extract_strided_slice %9 {offsets = [0, 0], sizes = [8, 16], strides = [1, 1]} : vector<8x32xf32> to vector<8x16xf32>
    %15 = arith.truncf %14 : vector<8x16xf32> to vector<8x16xbf16>
    "tpu.trace_start"() <{level = 10 : i32, message = "qd,kd->qk"}> : () -> ()
    %cst_7 = arith.constant dense<0.000000e+00> : vector<8x8xf32>
    %16 = tpu.matmul %11, %13, %cst_7 {dimension_numbers = #tpu.dot_dimension_numbers<[1], [1], [0], [0], [0, 0, 1, 0], [], []>} : vector<8x16xbf16>, vector<8x16xbf16>, vector<8x8xf32> -> vector<8x8xf32>
    "tpu.trace_stop"() : () -> ()
    %cst_8 = arith.constant dense<0xFF800000> : vector<8xf32>
    %17 = vector.multi_reduction <maximumf>, %16, %cst_8 [1] : vector<8x8xf32> to vector<8xf32>
    %18 = vector.shape_cast %17 : vector<8xf32> to vector<8x1xf32>
    %19 = vector.broadcast %18 : vector<8x1xf32> to vector<8x8xf32>
    %20 = arith.subf %16, %19 : vector<8x8xf32>
    %21 = math.exp %20 : vector<8x8xf32>
    %cst_9 = arith.constant dense<0.000000e+00> : vector<8xf32>
    %22 = vector.multi_reduction <add>, %21, %cst_9 [1] : vector<8x8xf32> to vector<8xf32>
    %23 = vector.shape_cast %22 : vector<8xf32> to vector<8x1xf32>
    %24 = tpu.reciprocal %23 {approx = true} : vector<8x1xf32> -> vector<8x1xf32>
    %25 = vector.broadcast %24 : vector<8x1xf32> to vector<8x8xf32>
    %26 = arith.mulf %21, %25 : vector<8x8xf32>
    %27 = arith.truncf %26 : vector<8x8xf32> to vector<8x8xbf16>
    %cst_10 = arith.constant dense<0.000000e+00> : vector<8x16xf32>
    %28 = tpu.matmul %27, %15, %cst_10 {dimension_numbers = #tpu.dot_dimension_numbers<[1], [0], [0], [1], [0, 0, 1, 1], [], []>} : vector<8x8xbf16>, vector<8x16xbf16>, vector<8x16xf32> -> vector<8x16xf32>
    %29 = vector.extract_strided_slice %7 {offsets = [0, 16], sizes = [8, 16], strides = [1, 1]} : vector<8x32xf32> to vector<8x16xf32>
    %30 = arith.truncf %29 : vector<8x16xf32> to vector<8x16xbf16>
    %31 = vector.extract_strided_slice %8 {offsets = [0, 16], sizes = [8, 16], strides = [1, 1]} : vector<8x32xf32> to vector<8x16xf32>
    %32 = arith.truncf %31 : vector<8x16xf32> to vector<8x16xbf16>
    %33 = vector.extract_strided_slice %9 {offsets = [0, 16], sizes = [8, 16], strides = [1, 1]} : vector<8x32xf32> to vector<8x16xf32>
    %34 = arith.truncf %33 : vector<8x16xf32> to vector<8x16xbf16>
    "tpu.trace_start"() <{level = 10 : i32, message = "qd,kd->qk"}> : () -> ()
    %cst_11 = arith.constant dense<0.000000e+00> : vector<8x8xf32>
    %35 = tpu.matmul %30, %32, %cst_11 {dimension_numbers = #tpu.dot_dimension_numbers<[1], [1], [0], [0], [0, 0, 1, 0], [], []>} : vector<8x16xbf16>, vector<8x16xbf16>, vector<8x8xf32> -> vector<8x8xf32>
    "tpu.trace_stop"() : () -> ()
    %cst_12 = arith.constant dense<0xFF800000> : vector<8xf32>
    %36 = vector.multi_reduction <maximumf>, %35, %cst_12 [1] : vector<8x8xf32> to vector<8xf32>
    %37 = vector.shape_cast %36 : vector<8xf32> to vector<8x1xf32>
    %38 = vector.broadcast %37 : vector<8x1xf32> to vector<8x8xf32>
    %39 = arith.subf %35, %38 : vector<8x8xf32>
    %40 = math.exp %39 : vector<8x8xf32>
    %cst_13 = arith.constant dense<0.000000e+00> : vector<8xf32>
    %41 = vector.multi_reduction <add>, %40, %cst_13 [1] : vector<8x8xf32> to vector<8xf32>
    %42 = vector.shape_cast %41 : vector<8xf32> to vector<8x1xf32>
    %43 = tpu.reciprocal %42 {approx = true} : vector<8x1xf32> -> vector<8x1xf32>
    %44 = vector.broadcast %43 : vector<8x1xf32> to vector<8x8xf32>
    %45 = arith.mulf %40, %44 : vector<8x8xf32>
    %46 = arith.truncf %45 : vector<8x8xf32> to vector<8x8xbf16>
    %cst_14 = arith.constant dense<0.000000e+00> : vector<8x16xf32>
    %47 = tpu.matmul %46, %34, %cst_14 {dimension_numbers = #tpu.dot_dimension_numbers<[1], [0], [0], [1], [0, 0, 1, 1], [], []>} : vector<8x8xbf16>, vector<8x16xbf16>, vector<8x16xf32> -> vector<8x16xf32>
    %48 = tpu.concatenate %28, %47 in 1 : vector<8x16xf32>, vector<8x16xf32> -> vector<8x32xf32>
    %49 = arith.truncf %48 : vector<8x32xf32> to vector<8x32xbf16>
    %c0_15 = arith.constant 0 : index
    %c0_16 = arith.constant 0 : index
    %50 = vector.load %arg4[%c0_15, %c0_16] : memref<32x32xbf16, #tpu.memory_space<vmem>>, vector<32x32xbf16>
    %cst_17 = arith.constant dense<0.000000e+00> : vector<8x32xf32>
    %51 = tpu.matmul %49, %50, %cst_17 {dimension_numbers = #tpu.dot_dimension_numbers<[1], [0], [0], [1], [0, 0, 1, 1], [], []>} : vector<8x32xbf16>, vector<32x32xbf16>, vector<8x32xf32> -> vector<8x32xf32>
    %c0_18 = arith.constant 0 : index
    %c0_19 = arith.constant 0 : index
    %52 = vector.load %arg5[%c0_18, %c0_19] : memref<1x32xf32, #tpu.memory_space<vmem>>, vector<1x32xf32>
    %53 = vector.broadcast %52 : vector<1x32xf32> to vector<8x32xf32>
    %54 = arith.addf %51, %53 : vector<8x32xf32>
    %55 = arith.addf %54, %1 : vector<8x32xf32>
    %c0_20 = arith.constant 0 : index
    %c0_21 = arith.constant 0 : index
    %56 = vector.load %arg6[%c0_20, %c0_21] : memref<1x32xf32, #tpu.memory_space<vmem>>, vector<1x32xf32>
    %c0_22 = arith.constant 0 : index
    %c0_23 = arith.constant 0 : index
    %57 = vector.load %arg7[%c0_22, %c0_23] : memref<1x32xf32, #tpu.memory_space<vmem>>, vector<1x32xf32>
    %cst_24 = arith.constant dense<0.000000e+00> : vector<8xf32>
    %58 = vector.multi_reduction <add>, %55, %cst_24 [1] : vector<8x32xf32> to vector<8xf32>
    %59 = vector.shape_cast %58 : vector<8xf32> to vector<8x1xf32>
    %cst_25 = arith.constant 3.200000e+01 : f32
    %60 = vector.broadcast %cst_25 : f32 to vector<8x1xf32>
    %61 = arith.divf %59, %60 : vector<8x1xf32>
    %62 = vector.broadcast %61 : vector<8x1xf32> to vector<8x32xf32>
    %63 = arith.subf %55, %62 : vector<8x32xf32>
    %64 = arith.mulf %63, %63 : vector<8x32xf32>
    %cst_26 = arith.constant dense<0.000000e+00> : vector<8xf32>
    %65 = vector.multi_reduction <add>, %64, %cst_26 [1] : vector<8x32xf32> to vector<8xf32>
    %66 = vector.shape_cast %65 : vector<8xf32> to vector<8x1xf32>
    %cst_27 = arith.constant 3.200000e+01 : f32
    %67 = vector.broadcast %cst_27 : f32 to vector<8x1xf32>
    %68 = arith.divf %66, %67 : vector<8x1xf32>
    %69 = vector.broadcast %61 : vector<8x1xf32> to vector<8x32xf32>
    %70 = arith.subf %55, %69 : vector<8x32xf32>
    %cst_28 = arith.constant 9.99999997E-7 : f32
    %71 = vector.broadcast %cst_28 : f32 to vector<8x1xf32>
    %72 = arith.addf %68, %71 : vector<8x1xf32>
    %73 = math.rsqrt %72 : vector<8x1xf32>
    %74 = vector.broadcast %73 : vector<8x1xf32> to vector<8x32xf32>
    %75 = arith.mulf %70, %74 : vector<8x32xf32>
    %76 = vector.broadcast %56 : vector<1x32xf32> to vector<8x32xf32>
    %77 = arith.mulf %75, %76 : vector<8x32xf32>
    %78 = vector.broadcast %57 : vector<1x32xf32> to vector<8x32xf32>
    %79 = arith.addf %77, %78 : vector<8x32xf32>
    %80 = vector.broadcast %3 : vector<8x1xf32> to vector<8x32xf32>
    %81 = arith.mulf %79, %80 : vector<8x32xf32>
    %82 = arith.truncf %81 : vector<8x32xf32> to vector<8x32xbf16>
    %c0_29 = arith.constant 0 : index
    %c0_30 = arith.constant 0 : index
    %83 = vector.load %arg8[%c0_29, %c0_30] : memref<32x64xbf16, #tpu.memory_space<vmem>>, vector<32x64xbf16>
    %cst_31 = arith.constant dense<0.000000e+00> : vector<8x64xf32>
    %84 = tpu.matmul %82, %83, %cst_31 {dimension_numbers = #tpu.dot_dimension_numbers<[1], [0], [0], [1], [0, 0, 1, 1], [], []>} : vector<8x32xbf16>, vector<32x64xbf16>, vector<8x64xf32> -> vector<8x64xf32>
    %c0_32 = arith.constant 0 : index
    %c0_33 = arith.constant 0 : index
    %85 = vector.load %arg9[%c0_32, %c0_33] : memref<1x64xf32, #tpu.memory_space<vmem>>, vector<1x64xf32>
    %86 = vector.broadcast %85 : vector<1x64xf32> to vector<8x64xf32>
    %87 = arith.addf %84, %86 : vector<8x64xf32>
    %cst_34 = arith.constant 5.000000e-01 : f32
    %88 = vector.broadcast %cst_34 : f32 to vector<8x64xf32>
    %89 = arith.mulf %88, %87 : vector<8x64xf32>
    %cst_35 = arith.constant 4.471500e-02 : f32
    %90 = vector.broadcast %cst_35 : f32 to vector<8x64xf32>
    %91 = arith.mulf %90, %87 : vector<8x64xf32>
    %92 = arith.mulf %91, %87 : vector<8x64xf32>
    %93 = arith.mulf %92, %87 : vector<8x64xf32>
    %94 = arith.addf %87, %93 : vector<8x64xf32>
    %cst_36 = arith.constant 0.797884583 : f32
    %95 = vector.broadcast %cst_36 : f32 to vector<8x64xf32>
    %96 = arith.mulf %95, %94 : vector<8x64xf32>
    %97 = math.tanh %96 : vector<8x64xf32>
    %cst_37 = arith.constant 1.000000e+00 : f32
    %98 = vector.broadcast %cst_37 : f32 to vector<8x64xf32>
    %99 = arith.addf %98, %97 : vector<8x64xf32>
    %100 = arith.mulf %89, %99 : vector<8x64xf32>
    %101 = arith.truncf %100 : vector<8x64xf32> to vector<8x64xbf16>
    %c0_38 = arith.constant 0 : index
    %c0_39 = arith.constant 0 : index
    %102 = vector.load %arg10[%c0_38, %c0_39] : memref<64x32xbf16, #tpu.memory_space<vmem>>, vector<64x32xbf16>
    %cst_40 = arith.constant dense<0.000000e+00> : vector<8x32xf32>
    %103 = tpu.matmul %101, %102, %cst_40 {dimension_numbers = #tpu.dot_dimension_numbers<[1], [0], [0], [1], [0, 0, 1, 1], [], []>} : vector<8x64xbf16>, vector<64x32xbf16>, vector<8x32xf32> -> vector<8x32xf32>
    %c0_41 = arith.constant 0 : index
    %c0_42 = arith.constant 0 : index
    %104 = vector.load %arg11[%c0_41, %c0_42] : memref<1x32xf32, #tpu.memory_space<vmem>>, vector<1x32xf32>
    %105 = vector.broadcast %104 : vector<1x32xf32> to vector<8x32xf32>
    %106 = arith.addf %103, %105 : vector<8x32xf32>
    %107 = arith.addf %106, %81 : vector<8x32xf32>
    %c0_43 = arith.constant 0 : index
    %c0_44 = arith.constant 0 : index
    %108 = vector.load %arg12[%c0_43, %c0_44] : memref<1x32xf32, #tpu.memory_space<vmem>>, vector<1x32xf32>
    %c0_45 = arith.constant 0 : index
    %c0_46 = arith.constant 0 : index
    %109 = vector.load %arg13[%c0_45, %c0_46] : memref<1x32xf32, #tpu.memory_space<vmem>>, vector<1x32xf32>
    %cst_47 = arith.constant dense<0.000000e+00> : vector<8xf32>
    %110 = vector.multi_reduction <add>, %107, %cst_47 [1] : vector<8x32xf32> to vector<8xf32>
    %111 = vector.shape_cast %110 : vector<8xf32> to vector<8x1xf32>
    %cst_48 = arith.constant 3.200000e+01 : f32
    %112 = vector.broadcast %cst_48 : f32 to vector<8x1xf32>
    %113 = arith.divf %111, %112 : vector<8x1xf32>
    %114 = vector.broadcast %113 : vector<8x1xf32> to vector<8x32xf32>
    %115 = arith.subf %107, %114 : vector<8x32xf32>
    %116 = arith.mulf %115, %115 : vector<8x32xf32>
    %cst_49 = arith.constant dense<0.000000e+00> : vector<8xf32>
    %117 = vector.multi_reduction <add>, %116, %cst_49 [1] : vector<8x32xf32> to vector<8xf32>
    %118 = vector.shape_cast %117 : vector<8xf32> to vector<8x1xf32>
    %cst_50 = arith.constant 3.200000e+01 : f32
    %119 = vector.broadcast %cst_50 : f32 to vector<8x1xf32>
    %120 = arith.divf %118, %119 : vector<8x1xf32>
    %121 = vector.broadcast %113 : vector<8x1xf32> to vector<8x32xf32>
    %122 = arith.subf %107, %121 : vector<8x32xf32>
    %cst_51 = arith.constant 9.99999997E-7 : f32
    %123 = vector.broadcast %cst_51 : f32 to vector<8x1xf32>
    %124 = arith.addf %120, %123 : vector<8x1xf32>
    %125 = math.rsqrt %124 : vector<8x1xf32>
    %126 = vector.broadcast %125 : vector<8x1xf32> to vector<8x32xf32>
    %127 = arith.mulf %122, %126 : vector<8x32xf32>
    %128 = vector.broadcast %108 : vector<1x32xf32> to vector<8x32xf32>
    %129 = arith.mulf %127, %128 : vector<8x32xf32>
    %130 = vector.broadcast %109 : vector<1x32xf32> to vector<8x32xf32>
    %131 = arith.addf %129, %130 : vector<8x32xf32>
    %132 = vector.broadcast %3 : vector<8x1xf32> to vector<8x32xf32>
    %133 = arith.mulf %131, %132 : vector<8x32xf32>
    %c0_52 = arith.constant 0 : index
    %c0_53 = arith.constant 0 : index
    %c0_54 = arith.constant 0 : index
    %134 = vector.load %arg14[%c0_52, %c0_53, %c0_54] : memref<1x8x32xf32, #tpu.memory_space<vmem>>, vector<1x8x32xf32>
    %135 = vector.shape_cast %134 : vector<1x8x32xf32> to vector<8x32xf32>
    %136 = vector.shape_cast %133 : vector<8x32xf32> to vector<1x8x32xf32>
    tpu.vector_store %arg14[%c0_52, %c0_53, %c0_54], %136 {strides = array<i32>} : memref<1x8x32xf32, #tpu.memory_space<vmem>>, vector<1x8x32xf32>,
    return
  }
  func.func @transform_0(%arg0: i32) -> (i32, i32, i32) {
    %c0_i32 = arith.constant 0 : i32
    %c0_i32_0 = arith.constant 0 : i32
    %c0_i32_1 = arith.constant 0 : i32
    return %arg0, %c0_i32, %c0_i32_0 : i32, i32, i32
  }
  func.func @transform_1(%arg0: i32) -> (i32, i32, i32) {
    %c0_i32 = arith.constant 0 : i32
    %c0_i32_0 = arith.constant 0 : i32
    %c0_i32_1 = arith.constant 0 : i32
    return %arg0, %c0_i32, %c0_i32_0 : i32, i32, i32
  }
  func.func @transform_2(%arg0: i32) -> (i32, i32) {
    %c0_i32 = arith.constant 0 : i32
    %c0_i32_0 = arith.constant 0 : i32
    %c0_i32_1 = arith.constant 0 : i32
    return %c0_i32, %c0_i32_0 : i32, i32
  }
  func.func @transform_3(%arg0: i32) -> (i32, i32) {
    %c0_i32 = arith.constant 0 : i32
    %c0_i32_0 = arith.constant 0 : i32
    %c0_i32_1 = arith.constant 0 : i32
    return %c0_i32, %c0_i32_0 : i32, i32
  }
  func.func @transform_4(%arg0: i32) -> (i32, i32) {
    %c0_i32 = arith.constant 0 : i32
    %c0_i32_0 = arith.constant 0 : i32
    %c0_i32_1 = arith.constant 0 : i32
    return %c0_i32, %c0_i32_0 : i32, i32
  }
  func.func @transform_5(%arg0: i32) -> (i32, i32) {
    %c0_i32 = arith.constant 0 : i32
    %c0_i32_0 = arith.constant 0 : i32
    %c0_i32_1 = arith.constant 0 : i32
    return %c0_i32, %c0_i32_0 : i32, i32
  }
  func.func @transform_6(%arg0: i32) -> (i32, i32) {
    %c0_i32 = arith.constant 0 : i32
    %c0_i32_0 = arith.constant 0 : i32
    %c0_i32_1 = arith.constant 0 : i32
    return %c0_i32, %c0_i32_0 : i32, i32
  }
  func.func @transform_7(%arg0: i32) -> (i32, i32) {
    %c0_i32 = arith.constant 0 : i32
    %c0_i32_0 = arith.constant 0 : i32
    %c0_i32_1 = arith.constant 0 : i32
    return %c0_i32, %c0_i32_0 : i32, i32
  }
  func.func @transform_8(%arg0: i32) -> (i32, i32) {
    %c0_i32 = arith.constant 0 : i32
    %c0_i32_0 = arith.constant 0 : i32
    %c0_i32_1 = arith.constant 0 : i32
    return %c0_i32, %c0_i32_0 : i32, i32
  }
  func.func @transform_9(%arg0: i32) -> (i32, i32) {
    %c0_i32 = arith.constant 0 : i32
    %c0_i32_0 = arith.constant 0 : i32
    %c0_i32_1 = arith.constant 0 : i32
    return %c0_i32, %c0_i32_0 : i32, i32
  }
  func.func @transform_10(%arg0: i32) -> (i32, i32) {
    %c0_i32 = arith.constant 0 : i32
    %c0_i32_0 = arith.constant 0 : i32
    %c0_i32_1 = arith.constant 0 : i32
    return %c0_i32, %c0_i32_0 : i32, i32
  }
  func.func @transform_11(%arg0: i32) -> (i32, i32) {
    %c0_i32 = arith.constant 0 : i32
    %c0_i32_0 = arith.constant 0 : i32
    %c0_i32_1 = arith.constant 0 : i32
    return %c0_i32, %c0_i32_0 : i32, i32
  }
  func.func @transform_12(%arg0: i32) -> (i32, i32) {
    %c0_i32 = arith.constant 0 : i32
    %c0_i32_0 = arith.constant 0 : i32
    %c0_i32_1 = arith.constant 0 : i32
    return %c0_i32, %c0_i32_0 : i32, i32
  }
  func.func @transform_13(%arg0: i32) -> (i32, i32, i32) {
    %c0_i32 = arith.constant 0 : i32
    %c0_i32_0 = arith.constant 0 : i32
    %c0_i32_1 = arith.constant 0 : i32
    return %arg0, %c0_i32, %c0_i32_0 : i32, i32, i32
  }
}

module attributes {stable_mosaic.version = 11 : i64} {
  func.func @kernel(%arg0: i32, %arg1: memref<1x8x32xf32, #tpu.memory_space<vmem>>, %arg2: memref<1x8x1xf32, #tpu.memory_space<vmem>>, %arg3: memref<1x1x8xf32, #tpu.memory_space<vmem>>, %arg4: memref<32x96xbf16, #tpu.memory_space<vmem>>, %arg5: memref<32x32xbf16, #tpu.memory_space<vmem>>, %arg6: memref<1x32xf32, #tpu.memory_space<vmem>>, %arg7: memref<1x32xf32, #tpu.memory_space<vmem>>, %arg8: memref<1x32xf32, #tpu.memory_space<vmem>>, %arg9: memref<32x64xbf16, #tpu.memory_space<vmem>>, %arg10: memref<1x64xf32, #tpu.memory_space<vmem>>, %arg11: memref<64x32xbf16, #tpu.memory_space<vmem>>, %arg12: memref<1x32xf32, #tpu.memory_space<vmem>>, %arg13: memref<1x32xf32, #tpu.memory_space<vmem>>, %arg14: memref<1x32xf32, #tpu.memory_space<vmem>>, %arg15: memref<1x8x32xf32, #tpu.memory_space<vmem>>) attributes {dimension_semantics = [#tpu.dimension_semantics<parallel>], iteration_bounds = array<i64: 2>, scalar_prefetch = 0 : i64, scratch_operands = 0 : i64, tpu.core_type = #tpu.core_type<tc>, window_params = [{transform_indices = @transform_0, window_bounds = array<i64: 1, 8, 32>}, {transform_indices = @transform_1, window_bounds = array<i64: 1, 8, 1>}, {transform_indices = @transform_2, window_bounds = array<i64: 1, 1, 8>}, {pipeline_mode = #tpu.pipeline_mode<synchronous>, transform_indices = @transform_3, window_bounds = array<i64: 32, 96>}, {pipeline_mode = #tpu.pipeline_mode<synchronous>, transform_indices = @transform_4, window_bounds = array<i64: 32, 32>}, {pipeline_mode = #tpu.pipeline_mode<synchronous>, transform_indices = @transform_5, window_bounds = array<i64: 1, 32>}, {pipeline_mode = #tpu.pipeline_mode<synchronous>, transform_indices = @transform_6, window_bounds = array<i64: 1, 32>}, {pipeline_mode = #tpu.pipeline_mode<synchronous>, transform_indices = @transform_7, window_bounds = array<i64: 1, 32>}, {pipeline_mode = #tpu.pipeline_mode<synchronous>, transform_indices = @transform_8, window_bounds = array<i64: 32, 64>}, {pipeline_mode = #tpu.pipeline_mode<synchronous>, transform_indices = @transform_9, window_bounds = array<i64: 1, 64>}, {pipeline_mode = #tpu.pipeline_mode<synchronous>, transform_indices = @transform_10, window_bounds = array<i64: 64, 32>}, {pipeline_mode = #tpu.pipeline_mode<synchronous>, transform_indices = @transform_11, window_bounds = array<i64: 1, 32>}, {pipeline_mode = #tpu.pipeline_mode<synchronous>, transform_indices = @transform_12, window_bounds = array<i64: 1, 32>}, {pipeline_mode = #tpu.pipeline_mode<synchronous>, transform_indices = @transform_13, window_bounds = array<i64: 1, 32>}, {transform_indices = @transform_14, window_bounds = array<i64: 1, 8, 32>}]} {
    %c0 = arith.constant 0 : index
    %c0_0 = arith.constant 0 : index
    %c0_1 = arith.constant 0 : index
    %0 = vector.load %arg1[%c0, %c0_0, %c0_1] : memref<1x8x32xf32, #tpu.memory_space<vmem>>, vector<1x8x32xf32>
    %1 = vector.shape_cast %0 : vector<1x8x32xf32> to vector<8x32xf32>
    %c0_2 = arith.constant 0 : index
    %c0_3 = arith.constant 0 : index
    %c0_4 = arith.constant 0 : index
    %2 = vector.load %arg2[%c0_2, %c0_3, %c0_4] : memref<1x8x1xf32, #tpu.memory_space<vmem>>, vector<1x8x1xf32>
    %3 = vector.shape_cast %2 : vector<1x8x1xf32> to vector<8x1xf32>
    %4 = arith.truncf %1 : vector<8x32xf32> to vector<8x32xbf16>
    %c0_5 = arith.constant 0 : index
    %c0_6 = arith.constant 0 : index
    %5 = vector.load %arg4[%c0_5, %c0_6] : memref<32x96xbf16, #tpu.memory_space<vmem>>, vector<32x96xbf16>
    %cst = arith.constant dense<0.000000e+00> : vector<8x96xf32>
    %6 = tpu.matmul %4, %5, %cst {dimension_numbers = #tpu.dot_dimension_numbers<[1], [0], [0], [1], [0, 0, 1, 1], [], []>} : vector<8x32xbf16>, vector<32x96xbf16>, vector<8x96xf32> -> vector<8x96xf32>
    %7 = vector.extract_strided_slice %6 {offsets = [0, 0], sizes = [8, 32], strides = [1, 1]} : vector<8x96xf32> to vector<8x32xf32>
    %8 = vector.extract_strided_slice %6 {offsets = [0, 32], sizes = [8, 32], strides = [1, 1]} : vector<8x96xf32> to vector<8x32xf32>
    %9 = vector.extract_strided_slice %6 {offsets = [0, 64], sizes = [8, 32], strides = [1, 1]} : vector<8x96xf32> to vector<8x32xf32>
    %c0_7 = arith.constant 0 : index
    %c0_8 = arith.constant 0 : index
    %c0_9 = arith.constant 0 : index
    %10 = vector.load %arg3[%c0_7, %c0_8, %c0_9] : memref<1x1x8xf32, #tpu.memory_space<vmem>>, vector<1x1x8xf32>
    %11 = vector.shape_cast %10 : vector<1x1x8xf32> to vector<1x8xf32>
    %12 = tpu.iota {dimensions = array<i32: 0>} : vector<8x8xi32>
    %13 = tpu.iota {dimensions = array<i32: 1>} : vector<8x8xi32>
    %14 = arith.cmpi sgt, %13, %12 : vector<8x8xi32>
    %cst_10 = arith.constant 5.000000e-01 : f32
    %15 = vector.broadcast %cst_10 : f32 to vector<1x8xf32>
    %16 = arith.cmpf ogt, %11, %15 : vector<1x8xf32>
    %17 = vector.broadcast %16 : vector<1x8xi1> to vector<8x8xi1>
    %18 = arith.ori %14, %17 : vector<8x8xi1>
    %cst_11 = arith.constant -1.000000e+09 : f32
    %cst_12 = arith.constant 0.000000e+00 : f32
    %19 = vector.broadcast %cst_11 : f32 to vector<8x8xf32>
    %20 = vector.broadcast %cst_12 : f32 to vector<8x8xf32>
    %21 = arith.select %18, %19, %20 : vector<8x8xi1>, vector<8x8xf32>
    %22 = vector.extract_strided_slice %7 {offsets = [0, 0], sizes = [8, 16], strides = [1, 1]} : vector<8x32xf32> to vector<8x16xf32>
    %23 = arith.truncf %22 : vector<8x16xf32> to vector<8x16xbf16>
    %24 = vector.extract_strided_slice %8 {offsets = [0, 0], sizes = [8, 16], strides = [1, 1]} : vector<8x32xf32> to vector<8x16xf32>
    %25 = arith.truncf %24 : vector<8x16xf32> to vector<8x16xbf16>
    %26 = vector.extract_strided_slice %9 {offsets = [0, 0], sizes = [8, 16], strides = [1, 1]} : vector<8x32xf32> to vector<8x16xf32>
    %27 = arith.truncf %26 : vector<8x16xf32> to vector<8x16xbf16>
    "tpu.trace_start"() <{level = 10 : i32, message = "qd,kd->qk"}> : () -> ()
    %cst_13 = arith.constant dense<0.000000e+00> : vector<8x8xf32>
    %28 = tpu.matmul %23, %25, %cst_13 {dimension_numbers = #tpu.dot_dimension_numbers<[1], [1], [0], [0], [0, 0, 1, 0], [], []>} : vector<8x16xbf16>, vector<8x16xbf16>, vector<8x8xf32> -> vector<8x8xf32>
    "tpu.trace_stop"() : () -> ()
    %29 = arith.addf %28, %21 : vector<8x8xf32>
    %cst_14 = arith.constant dense<0xFF800000> : vector<8xf32>
    %30 = vector.multi_reduction <maximumf>, %29, %cst_14 [1] : vector<8x8xf32> to vector<8xf32>
    %31 = vector.shape_cast %30 : vector<8xf32> to vector<8x1xf32>
    %32 = vector.broadcast %31 : vector<8x1xf32> to vector<8x8xf32>
    %33 = arith.subf %29, %32 : vector<8x8xf32>
    %34 = math.exp %33 : vector<8x8xf32>
    %cst_15 = arith.constant dense<0.000000e+00> : vector<8xf32>
    %35 = vector.multi_reduction <add>, %34, %cst_15 [1] : vector<8x8xf32> to vector<8xf32>
    %36 = vector.shape_cast %35 : vector<8xf32> to vector<8x1xf32>
    %37 = tpu.reciprocal %36 {approx = true} : vector<8x1xf32> -> vector<8x1xf32>
    %38 = vector.broadcast %37 : vector<8x1xf32> to vector<8x8xf32>
    %39 = arith.mulf %34, %38 : vector<8x8xf32>
    %40 = arith.truncf %39 : vector<8x8xf32> to vector<8x8xbf16>
    %cst_16 = arith.constant dense<0.000000e+00> : vector<8x16xf32>
    %41 = tpu.matmul %40, %27, %cst_16 {dimension_numbers = #tpu.dot_dimension_numbers<[1], [0], [0], [1], [0, 0, 1, 1], [], []>} : vector<8x8xbf16>, vector<8x16xbf16>, vector<8x16xf32> -> vector<8x16xf32>
    %42 = vector.extract_strided_slice %7 {offsets = [0, 16], sizes = [8, 16], strides = [1, 1]} : vector<8x32xf32> to vector<8x16xf32>
    %43 = arith.truncf %42 : vector<8x16xf32> to vector<8x16xbf16>
    %44 = vector.extract_strided_slice %8 {offsets = [0, 16], sizes = [8, 16], strides = [1, 1]} : vector<8x32xf32> to vector<8x16xf32>
    %45 = arith.truncf %44 : vector<8x16xf32> to vector<8x16xbf16>
    %46 = vector.extract_strided_slice %9 {offsets = [0, 16], sizes = [8, 16], strides = [1, 1]} : vector<8x32xf32> to vector<8x16xf32>
    %47 = arith.truncf %46 : vector<8x16xf32> to vector<8x16xbf16>
    "tpu.trace_start"() <{level = 10 : i32, message = "qd,kd->qk"}> : () -> ()
    %cst_17 = arith.constant dense<0.000000e+00> : vector<8x8xf32>
    %48 = tpu.matmul %43, %45, %cst_17 {dimension_numbers = #tpu.dot_dimension_numbers<[1], [1], [0], [0], [0, 0, 1, 0], [], []>} : vector<8x16xbf16>, vector<8x16xbf16>, vector<8x8xf32> -> vector<8x8xf32>
    "tpu.trace_stop"() : () -> ()
    %49 = arith.addf %48, %21 : vector<8x8xf32>
    %cst_18 = arith.constant dense<0xFF800000> : vector<8xf32>
    %50 = vector.multi_reduction <maximumf>, %49, %cst_18 [1] : vector<8x8xf32> to vector<8xf32>
    %51 = vector.shape_cast %50 : vector<8xf32> to vector<8x1xf32>
    %52 = vector.broadcast %51 : vector<8x1xf32> to vector<8x8xf32>
    %53 = arith.subf %49, %52 : vector<8x8xf32>
    %54 = math.exp %53 : vector<8x8xf32>
    %cst_19 = arith.constant dense<0.000000e+00> : vector<8xf32>
    %55 = vector.multi_reduction <add>, %54, %cst_19 [1] : vector<8x8xf32> to vector<8xf32>
    %56 = vector.shape_cast %55 : vector<8xf32> to vector<8x1xf32>
    %57 = tpu.reciprocal %56 {approx = true} : vector<8x1xf32> -> vector<8x1xf32>
    %58 = vector.broadcast %57 : vector<8x1xf32> to vector<8x8xf32>
    %59 = arith.mulf %54, %58 : vector<8x8xf32>
    %60 = arith.truncf %59 : vector<8x8xf32> to vector<8x8xbf16>
    %cst_20 = arith.constant dense<0.000000e+00> : vector<8x16xf32>
    %61 = tpu.matmul %60, %47, %cst_20 {dimension_numbers = #tpu.dot_dimension_numbers<[1], [0], [0], [1], [0, 0, 1, 1], [], []>} : vector<8x8xbf16>, vector<8x16xbf16>, vector<8x16xf32> -> vector<8x16xf32>
    %62 = tpu.concatenate %41, %61 in 1 : vector<8x16xf32>, vector<8x16xf32> -> vector<8x32xf32>
    %63 = arith.truncf %62 : vector<8x32xf32> to vector<8x32xbf16>
    %c0_21 = arith.constant 0 : index
    %c0_22 = arith.constant 0 : index
    %64 = vector.load %arg5[%c0_21, %c0_22] : memref<32x32xbf16, #tpu.memory_space<vmem>>, vector<32x32xbf16>
    %cst_23 = arith.constant dense<0.000000e+00> : vector<8x32xf32>
    %65 = tpu.matmul %63, %64, %cst_23 {dimension_numbers = #tpu.dot_dimension_numbers<[1], [0], [0], [1], [0, 0, 1, 1], [], []>} : vector<8x32xbf16>, vector<32x32xbf16>, vector<8x32xf32> -> vector<8x32xf32>
    %c0_24 = arith.constant 0 : index
    %c0_25 = arith.constant 0 : index
    %66 = vector.load %arg6[%c0_24, %c0_25] : memref<1x32xf32, #tpu.memory_space<vmem>>, vector<1x32xf32>
    %67 = vector.broadcast %66 : vector<1x32xf32> to vector<8x32xf32>
    %68 = arith.addf %65, %67 : vector<8x32xf32>
    %69 = arith.addf %68, %1 : vector<8x32xf32>
    %c0_26 = arith.constant 0 : index
    %c0_27 = arith.constant 0 : index
    %70 = vector.load %arg7[%c0_26, %c0_27] : memref<1x32xf32, #tpu.memory_space<vmem>>, vector<1x32xf32>
    %c0_28 = arith.constant 0 : index
    %c0_29 = arith.constant 0 : index
    %71 = vector.load %arg8[%c0_28, %c0_29] : memref<1x32xf32, #tpu.memory_space<vmem>>, vector<1x32xf32>
    %cst_30 = arith.constant dense<0.000000e+00> : vector<8xf32>
    %72 = vector.multi_reduction <add>, %69, %cst_30 [1] : vector<8x32xf32> to vector<8xf32>
    %73 = vector.shape_cast %72 : vector<8xf32> to vector<8x1xf32>
    %cst_31 = arith.constant 3.200000e+01 : f32
    %74 = vector.broadcast %cst_31 : f32 to vector<8x1xf32>
    %75 = arith.divf %73, %74 : vector<8x1xf32>
    %76 = vector.broadcast %75 : vector<8x1xf32> to vector<8x32xf32>
    %77 = arith.subf %69, %76 : vector<8x32xf32>
    %78 = arith.mulf %77, %77 : vector<8x32xf32>
    %cst_32 = arith.constant dense<0.000000e+00> : vector<8xf32>
    %79 = vector.multi_reduction <add>, %78, %cst_32 [1] : vector<8x32xf32> to vector<8xf32>
    %80 = vector.shape_cast %79 : vector<8xf32> to vector<8x1xf32>
    %cst_33 = arith.constant 3.200000e+01 : f32
    %81 = vector.broadcast %cst_33 : f32 to vector<8x1xf32>
    %82 = arith.divf %80, %81 : vector<8x1xf32>
    %83 = vector.broadcast %75 : vector<8x1xf32> to vector<8x32xf32>
    %84 = arith.subf %69, %83 : vector<8x32xf32>
    %cst_34 = arith.constant 9.99999997E-7 : f32
    %85 = vector.broadcast %cst_34 : f32 to vector<8x1xf32>
    %86 = arith.addf %82, %85 : vector<8x1xf32>
    %87 = math.rsqrt %86 : vector<8x1xf32>
    %88 = vector.broadcast %87 : vector<8x1xf32> to vector<8x32xf32>
    %89 = arith.mulf %84, %88 : vector<8x32xf32>
    %90 = vector.broadcast %70 : vector<1x32xf32> to vector<8x32xf32>
    %91 = arith.mulf %89, %90 : vector<8x32xf32>
    %92 = vector.broadcast %71 : vector<1x32xf32> to vector<8x32xf32>
    %93 = arith.addf %91, %92 : vector<8x32xf32>
    %94 = vector.broadcast %3 : vector<8x1xf32> to vector<8x32xf32>
    %95 = arith.mulf %93, %94 : vector<8x32xf32>
    %96 = arith.truncf %95 : vector<8x32xf32> to vector<8x32xbf16>
    %c0_35 = arith.constant 0 : index
    %c0_36 = arith.constant 0 : index
    %97 = vector.load %arg9[%c0_35, %c0_36] : memref<32x64xbf16, #tpu.memory_space<vmem>>, vector<32x64xbf16>
    %cst_37 = arith.constant dense<0.000000e+00> : vector<8x64xf32>
    %98 = tpu.matmul %96, %97, %cst_37 {dimension_numbers = #tpu.dot_dimension_numbers<[1], [0], [0], [1], [0, 0, 1, 1], [], []>} : vector<8x32xbf16>, vector<32x64xbf16>, vector<8x64xf32> -> vector<8x64xf32>
    %c0_38 = arith.constant 0 : index
    %c0_39 = arith.constant 0 : index
    %99 = vector.load %arg10[%c0_38, %c0_39] : memref<1x64xf32, #tpu.memory_space<vmem>>, vector<1x64xf32>
    %100 = vector.broadcast %99 : vector<1x64xf32> to vector<8x64xf32>
    %101 = arith.addf %98, %100 : vector<8x64xf32>
    %cst_40 = arith.constant 5.000000e-01 : f32
    %102 = vector.broadcast %cst_40 : f32 to vector<8x64xf32>
    %103 = arith.mulf %102, %101 : vector<8x64xf32>
    %cst_41 = arith.constant 4.471500e-02 : f32
    %104 = vector.broadcast %cst_41 : f32 to vector<8x64xf32>
    %105 = arith.mulf %104, %101 : vector<8x64xf32>
    %106 = arith.mulf %105, %101 : vector<8x64xf32>
    %107 = arith.mulf %106, %101 : vector<8x64xf32>
    %108 = arith.addf %101, %107 : vector<8x64xf32>
    %cst_42 = arith.constant 0.797884583 : f32
    %109 = vector.broadcast %cst_42 : f32 to vector<8x64xf32>
    %110 = arith.mulf %109, %108 : vector<8x64xf32>
    %111 = math.tanh %110 : vector<8x64xf32>
    %cst_43 = arith.constant 1.000000e+00 : f32
    %112 = vector.broadcast %cst_43 : f32 to vector<8x64xf32>
    %113 = arith.addf %112, %111 : vector<8x64xf32>
    %114 = arith.mulf %103, %113 : vector<8x64xf32>
    %115 = arith.truncf %114 : vector<8x64xf32> to vector<8x64xbf16>
    %c0_44 = arith.constant 0 : index
    %c0_45 = arith.constant 0 : index
    %116 = vector.load %arg11[%c0_44, %c0_45] : memref<64x32xbf16, #tpu.memory_space<vmem>>, vector<64x32xbf16>
    %cst_46 = arith.constant dense<0.000000e+00> : vector<8x32xf32>
    %117 = tpu.matmul %115, %116, %cst_46 {dimension_numbers = #tpu.dot_dimension_numbers<[1], [0], [0], [1], [0, 0, 1, 1], [], []>} : vector<8x64xbf16>, vector<64x32xbf16>, vector<8x32xf32> -> vector<8x32xf32>
    %c0_47 = arith.constant 0 : index
    %c0_48 = arith.constant 0 : index
    %118 = vector.load %arg12[%c0_47, %c0_48] : memref<1x32xf32, #tpu.memory_space<vmem>>, vector<1x32xf32>
    %119 = vector.broadcast %118 : vector<1x32xf32> to vector<8x32xf32>
    %120 = arith.addf %117, %119 : vector<8x32xf32>
    %121 = arith.addf %120, %95 : vector<8x32xf32>
    %c0_49 = arith.constant 0 : index
    %c0_50 = arith.constant 0 : index
    %122 = vector.load %arg13[%c0_49, %c0_50] : memref<1x32xf32, #tpu.memory_space<vmem>>, vector<1x32xf32>
    %c0_51 = arith.constant 0 : index
    %c0_52 = arith.constant 0 : index
    %123 = vector.load %arg14[%c0_51, %c0_52] : memref<1x32xf32, #tpu.memory_space<vmem>>, vector<1x32xf32>
    %cst_53 = arith.constant dense<0.000000e+00> : vector<8xf32>
    %124 = vector.multi_reduction <add>, %121, %cst_53 [1] : vector<8x32xf32> to vector<8xf32>
    %125 = vector.shape_cast %124 : vector<8xf32> to vector<8x1xf32>
    %cst_54 = arith.constant 3.200000e+01 : f32
    %126 = vector.broadcast %cst_54 : f32 to vector<8x1xf32>
    %127 = arith.divf %125, %126 : vector<8x1xf32>
    %128 = vector.broadcast %127 : vector<8x1xf32> to vector<8x32xf32>
    %129 = arith.subf %121, %128 : vector<8x32xf32>
    %130 = arith.mulf %129, %129 : vector<8x32xf32>
    %cst_55 = arith.constant dense<0.000000e+00> : vector<8xf32>
    %131 = vector.multi_reduction <add>, %130, %cst_55 [1] : vector<8x32xf32> to vector<8xf32>
    %132 = vector.shape_cast %131 : vector<8xf32> to vector<8x1xf32>
    %cst_56 = arith.constant 3.200000e+01 : f32
    %133 = vector.broadcast %cst_56 : f32 to vector<8x1xf32>
    %134 = arith.divf %132, %133 : vector<8x1xf32>
    %135 = vector.broadcast %127 : vector<8x1xf32> to vector<8x32xf32>
    %136 = arith.subf %121, %135 : vector<8x32xf32>
    %cst_57 = arith.constant 9.99999997E-7 : f32
    %137 = vector.broadcast %cst_57 : f32 to vector<8x1xf32>
    %138 = arith.addf %134, %137 : vector<8x1xf32>
    %139 = math.rsqrt %138 : vector<8x1xf32>
    %140 = vector.broadcast %139 : vector<8x1xf32> to vector<8x32xf32>
    %141 = arith.mulf %136, %140 : vector<8x32xf32>
    %142 = vector.broadcast %122 : vector<1x32xf32> to vector<8x32xf32>
    %143 = arith.mulf %141, %142 : vector<8x32xf32>
    %144 = vector.broadcast %123 : vector<1x32xf32> to vector<8x32xf32>
    %145 = arith.addf %143, %144 : vector<8x32xf32>
    %146 = vector.broadcast %3 : vector<8x1xf32> to vector<8x32xf32>
    %147 = arith.mulf %145, %146 : vector<8x32xf32>
    %c0_58 = arith.constant 0 : index
    %c0_59 = arith.constant 0 : index
    %c0_60 = arith.constant 0 : index
    %148 = vector.load %arg15[%c0_58, %c0_59, %c0_60] : memref<1x8x32xf32, #tpu.memory_space<vmem>>, vector<1x8x32xf32>
    %149 = vector.shape_cast %148 : vector<1x8x32xf32> to vector<8x32xf32>
    %150 = vector.shape_cast %147 : vector<8x32xf32> to vector<1x8x32xf32>
    tpu.vector_store %arg15[%c0_58, %c0_59, %c0_60], %150 {strides = array<i32>} : memref<1x8x32xf32, #tpu.memory_space<vmem>>, vector<1x8x32xf32>,
    return
  }
  func.func @transform_0(%arg0: i32) -> (i32, i32, i32) {
    %c0_i32 = arith.constant 0 : i32
    %c0_i32_0 = arith.constant 0 : i32
    %c0_i32_1 = arith.constant 0 : i32
    return %arg0, %c0_i32, %c0_i32_0 : i32, i32, i32
  }
  func.func @transform_1(%arg0: i32) -> (i32, i32, i32) {
    %c0_i32 = arith.constant 0 : i32
    %c0_i32_0 = arith.constant 0 : i32
    %c0_i32_1 = arith.constant 0 : i32
    return %arg0, %c0_i32, %c0_i32_0 : i32, i32, i32
  }
  func.func @transform_2(%arg0: i32) -> (i32, i32, i32) {
    %c0_i32 = arith.constant 0 : i32
    %c0_i32_0 = arith.constant 0 : i32
    %c0_i32_1 = arith.constant 0 : i32
    return %arg0, %c0_i32, %c0_i32_0 : i32, i32, i32
  }
  func.func @transform_3(%arg0: i32) -> (i32, i32) {
    %c0_i32 = arith.constant 0 : i32
    %c0_i32_0 = arith.constant 0 : i32
    %c0_i32_1 = arith.constant 0 : i32
    return %c0_i32, %c0_i32_0 : i32, i32
  }
  func.func @transform_4(%arg0: i32) -> (i32, i32) {
    %c0_i32 = arith.constant 0 : i32
    %c0_i32_0 = arith.constant 0 : i32
    %c0_i32_1 = arith.constant 0 : i32
    return %c0_i32, %c0_i32_0 : i32, i32
  }
  func.func @transform_5(%arg0: i32) -> (i32, i32) {
    %c0_i32 = arith.constant 0 : i32
    %c0_i32_0 = arith.constant 0 : i32
    %c0_i32_1 = arith.constant 0 : i32
    return %c0_i32, %c0_i32_0 : i32, i32
  }
  func.func @transform_6(%arg0: i32) -> (i32, i32) {
    %c0_i32 = arith.constant 0 : i32
    %c0_i32_0 = arith.constant 0 : i32
    %c0_i32_1 = arith.constant 0 : i32
    return %c0_i32, %c0_i32_0 : i32, i32
  }
  func.func @transform_7(%arg0: i32) -> (i32, i32) {
    %c0_i32 = arith.constant 0 : i32
    %c0_i32_0 = arith.constant 0 : i32
    %c0_i32_1 = arith.constant 0 : i32
    return %c0_i32, %c0_i32_0 : i32, i32
  }
  func.func @transform_8(%arg0: i32) -> (i32, i32) {
    %c0_i32 = arith.constant 0 : i32
    %c0_i32_0 = arith.constant 0 : i32
    %c0_i32_1 = arith.constant 0 : i32
    return %c0_i32, %c0_i32_0 : i32, i32
  }
  func.func @transform_9(%arg0: i32) -> (i32, i32) {
    %c0_i32 = arith.constant 0 : i32
    %c0_i32_0 = arith.constant 0 : i32
    %c0_i32_1 = arith.constant 0 : i32
    return %c0_i32, %c0_i32_0 : i32, i32
  }
  func.func @transform_10(%arg0: i32) -> (i32, i32) {
    %c0_i32 = arith.constant 0 : i32
    %c0_i32_0 = arith.constant 0 : i32
    %c0_i32_1 = arith.constant 0 : i32
    return %c0_i32, %c0_i32_0 : i32, i32
  }
  func.func @transform_11(%arg0: i32) -> (i32, i32) {
    %c0_i32 = arith.constant 0 : i32
    %c0_i32_0 = arith.constant 0 : i32
    %c0_i32_1 = arith.constant 0 : i32
    return %c0_i32, %c0_i32_0 : i32, i32
  }
  func.func @transform_12(%arg0: i32) -> (i32, i32) {
    %c0_i32 = arith.constant 0 : i32
    %c0_i32_0 = arith.constant 0 : i32
    %c0_i32_1 = arith.constant 0 : i32
    return %c0_i32, %c0_i32_0 : i32, i32
  }
  func.func @transform_13(%arg0: i32) -> (i32, i32) {
    %c0_i32 = arith.constant 0 : i32
    %c0_i32_0 = arith.constant 0 : i32
    %c0_i32_1 = arith.constant 0 : i32
    return %c0_i32, %c0_i32_0 : i32, i32
  }
  func.func @transform_14(%arg0: i32) -> (i32, i32, i32) {
    %c0_i32 = arith.constant 0 : i32
    %c0_i32_0 = arith.constant 0 : i32
    %c0_i32_1 = arith.constant 0 : i32
    return %arg0, %c0_i32, %c0_i32_0 : i32, i32, i32
  }
}

</mosaic_0001>

<bundles_post_ra>
// kernel: star_forward.9
= control target key start
LH: loop header
LB: loop body
LE: loop exit
PB: predicated region body
PF: predicated region fallthrough
CT: control target
= control target key end

     0   :  { %s677_s12 = smov 0   ;;  %s772_s0 = inlined_call_operand.vmem [shape: f32[2,8,1], index: 0, kind: input, shape index: {}]   ;;  %s773_s1 = inlined_call_operand.vmem [shape: f32[1,32], index: 1, kind: input, shape index: {}]   ;;  %s774_s2 = inlined_call_operand.vmem [shape: f32[2,8,1], index: 2, kind: input, shape index: {}]   ;;  %s775_s3 = inlined_call_operand.vmem [shape: f32[2,8,32], index: 3, kind: output, shape index: {}]  }
   0x1 LB: > { %s607_s13 = sadd.s32 4294967295, %s648_s12   ;;  %p611_p0 = scmp.ge.s32.totalorder %s648_s12, 1  ;;  %s648_s12 = sphi %s677_s12, %s13_s12  }
   0x2   : > { %p145_p1 = scmp.lt.s32.totalorder %s648_s12, 3 }
   0x4   : > { %p146_p2 = pnand %p611_p0, %p145_p1 }
   0x5   : > { %p171_p3 = scmp.lt.s32.totalorder (!%p146_p2), %s607_s13, 1 }
   0x6   : > { %149 = sbr.rel (%p146_p2) target bundleno = 232 (0xe8), region = 32 }
   0xb   : > { %v650_v0 = vmov 0   ;;  %s779_s13 = smov (!%p171_p3, %s607_s13), 1  ;;  %v639_v3 = vld [vmem:[%s773_s1] ss:$0 sm:$0xff]  ;;  %v651_v27 = vmov 683565275  }
   0xc   : > { %638 = vset.pattern.permute.xlu0 %v650_v0  ;;  %s686_s14 = sshll.u32 %s779_s13, 3  ;;  %640 = vrcp.f32 %v639_v3  ;;  %vm198_vm0 = vweird.f32 %v639_v3  ;;  %v204_v8 = vand.u32 2147483648, %v639_v3  ;;  %v202_v10 = vand.u32 2147483647, %v639_v3 }
   0xd   : > { %s174_s17 = scalar_lea.vmem %s772_s0, %s686_s14  ;;  %s178_s20 = scalar_lea.vmem %s774_s2, %s686_s14  ;;  %v652_v29 = vmov 2475754826   ;;  %v653_v32 = vmov 2131351028   ;;  %v654_v35 = vmov 2102212464  }
   0xe   : > { %v183_v1 = vld [vmem:[%s174_s17] sm:$0xff]  ;;  %v205_v11 = vor.u32 1.1754944e-38, %v204_v8  ;;  %vm203_vm3 = vcmp.eq.f32.partialorder %v202_v10, 8.507059e+37  ;;  %v655_v38 = vmov 920167782   ;;  %s182_s25 = scalar_lea.vmem %s775_s3, %s686_s14 }
   0xf   : > { %187 = vperm.xlu0 %638, %v183_v1   ;;  %v533_v2 = vld [vmem:[%s178_s20] sm:$0xff]  ;;  %v656_v41 = vmov 1326507024  }
  0x12   : > { %v641_v4 = vpop.eup %640 }
  0x13   : > { %v194_v5 = vmul.f32 %v641_v4, %v639_v3  ;;  %vm199_vm1 = vweird.f32 %v641_v4 }
  0x14   : > { %vm200_vm2 = vmor %vm198_vm0, %vm199_vm1 }
  0x15   : > { %v195_v6 = vsub.f32 1.0, %v194_v5 }
  0x17   : > { %536 = vperm.xlu0 %638, %v533_v2   ;;  %v196_v7 = vmul.f32 %v641_v4, %v195_v6 }
  0x19   : > { %v197_v9 = vadd.f32 %v641_v4, %v196_v7 }
  0x1b   : > { %v201_v12 = vsel %vm200_vm2, %v641_v4, %v197_v9 }
  0x1c   : > { %v206_v13 = vsel %vm203_vm3, %v205_v11, %v201_v12 }
  0x81   : > { %v188_v14 = vpop.permute.xlu0 %187 }
  0x82   : > { %v699_v15 = vmul.f32 %v206_v13, %v188_v14 }
  0x84   : > { %v226_v16 = vand.u32 2139095040, %v699_v15  ;;  %v223_v19 = vand.u32 2147483647, %v699_v15  ;;  %vm225_vm0 = vcmp.lt.s32.totalorder %v699_v15, 0 }
  0x86   : > { %v227_v17 = vshrl.u32 %v226_v16, 23  ;;  %v230_v21 = vand.u32 8388607, %v223_v19  ;;  %vm224_vm1 = vcmp.le.f32.partialorder %v223_v19, 0.7853982 }
  0x88   : > { %v615_v18 = vadd.s32 4294967169, %v227_v17  ;;  %v231_v25 = vor.u32 8388608, %v230_v21 }
  0x8a   : > { %v233_v20 = vadd.s32 1, %v615_v18  ;;  %v716_v48 = vshll.u32 %v231_v25, 8 }
  0x8c   : > { %vm234_vm4 = vcmp.gt.s32.totalorder %v233_v20, 0  ;;  %v272_v57 = vand.u32 65535, %v716_v48  ;;  %v273_v58 = vshrl.u32 %v716_v48, 16 }
  0x8d   : > { %v235_v22 = vsel %vm234_vm4, %v233_v20, 0 }
  0x8e   : > { %v237_v23 = vand.u32 31, %v235_v22  ;;  %v707_v26 = vshrl.u32 %v235_v22, 5 }
  0x90   : > { %v705_v24 = vsub.s32 32, %v237_v23  ;;  %v240_v28 = vshll.u32 %v651_v27, %v237_v23  ;;  %v243_v30 = vshll.u32 %v652_v29, %v237_v23  ;;  %v246_v34 = vshll.u32 %v653_v32, %v237_v23 }
  0x91   : > { %v249_v37 = vshll.u32 %v654_v35, %v237_v23  ;;  %v252_v40 = vshll.u32 %v655_v38, %v237_v23  ;;  %vm255_vm5 = vcmp.lt.s32.totalorder %v707_v26, 1  ;;  %vm258_vm6 = vcmp.lt.s32.totalorder %v707_v26, 4 }
  0x92   : > { %v241_v31 = vshrl.u32 %v652_v29, %v705_v24  ;;  %v244_v33 = vshrl.u32 %v653_v32, %v705_v24  ;;  %v247_v36 = vshrl.u32 %v654_v35, %v705_v24  ;;  %v250_v39 = vshrl.u32 %v655_v38, %v705_v24 }
  0x93   : > { %v253_v42 = vshrl.u32 %v656_v41, %v705_v24  ;;  %vm257_vm7 = vcmp.lt.s32.totalorder %v707_v26, 3  ;;  %vm256_vm8 = vcmp.lt.s32.totalorder %v707_v26, 2  ;;  %v239_v22 = vshrl.u32 %v651_v27, %v705_v24 }
  0x94   : > { %v242_v43 = vor.u32 %v241_v31, %v240_v28  ;;  %v245_v44 = vor.u32 %v244_v33, %v243_v30  ;;  %v248_v45 = vor.u32 %v247_v36, %v246_v34  ;;  %v251_v46 = vor.u32 %v250_v39, %v249_v37 }
  0x95   : > { %v254_v47 = vor.u32 %v253_v42, %v252_v40 }
  0x96   : > { %v263_v49 = vsel %vm255_vm5, %v242_v43, %v245_v44  ;;  %v267_v50 = vsel %vm255_vm5, %v245_v44, %v248_v45  ;;  %v264_v51 = vsel %vm258_vm6, %v251_v46, 920167782  ;;  %v260_v18 = vsel %vm258_vm6, %v248_v45, 2102212464 }
  0x97   : > { %v268_v52 = vsel %vm258_vm6, %v254_v47, 1326507024  ;;  %v265_v53 = vsel %vm257_vm7, %v248_v45, %v264_v51  ;;  %v259_v31 = vsel %vm255_vm5, %v239_v22, %v242_v43  ;;  %v261_v32 = vsel %vm257_vm7, %v245_v44, %v260_v18 }
  0x98   : > { %v269_v54 = vsel %vm257_vm7, %v251_v46, %v268_v52  ;;  %v266_v55 = vsel %vm256_vm8, %v263_v49, %v265_v53  ;;  %v262_v24 = vsel %vm256_vm8, %v259_v31, %v261_v32 }
  0x99   : > { %v270_v56 = vsel %vm256_vm8, %v267_v50, %v269_v54  ;;  %v296_v61 = vand.u32 65535, %v266_v55  ;;  %v297_v62 = vshrl.u32 %v266_v55, 16  ;;  %v316_v39 = vmul.u32 %v716_v48, %v262_v24 }
  0x9a   : > { %v274_v59 = vand.u32 65535, %v270_v56  ;;  %v275_v60 = vshrl.u32 %v270_v56, 16 }
  0x9b   : > { %v299_v2 = vmul.u32 %v297_v62, %v272_v57  ;;  %v300_v3 = vmul.u32 %v296_v61, %v273_v58  ;;  %v298_v7 = vmul.u32 %v296_v61, %v272_v57  ;;  %v301_v11 = vmul.u32 %v297_v62, %v273_v58 }
  0x9c   : > { %v277_v63 = vmul.u32 %v275_v60, %v272_v57  ;;  %v278_v1 = vmul.u32 %v274_v59, %v273_v58  ;;  %v276_v4 = vmul.u32 %v274_v59, %v272_v57  ;;  %v279_v6 = vmul.u32 %v275_v60, %v273_v58 }
  0x9d   : > { %v302_v8 = vshll.u32 %v299_v2, 16  ;;  %v304_v13 = vshll.u32 %v300_v3, 16  ;;  %v303_v29 = vshrl.u32 %v299_v2, 16  ;;  %v305_v35 = vshrl.u32 %v300_v3, 16 }
  0x9e   : > { %v280_v5 = vshll.u32 %v277_v63, 16  ;;  %v282_v9 = vshll.u32 %v278_v1, 16  ;;  %v281_v23 = vshrl.u32 %v277_v63, 16  ;;  %v283_v33 = vshrl.u32 %v278_v1, 16 }
  0x9f   : > { %vm306_vm10 = vc.u32 %v298_v7, %v302_v8  ;;  %v308_v14 = vadd.s32 %v302_v8, %v298_v7  ;;  %v208_v7 = vlaneseq }
  0xa0   : > { %vm284_vm9 = vc.u32 %v276_v4, %v280_v5  ;;  %v286_v10 = vadd.s32 %v280_v5, %v276_v4  ;;  %v307_v17 = vsel %vm306_vm10, 1, %v650_v0  ;;  %vm540_vm10 = vcmask 261120  }
  0xa1   : > { %v285_v12 = vsel %vm284_vm9, 1, %v650_v0  ;;  %v309_v21 = vadd.s32 %v307_v17, %v301_v11  ;;  %vm310_vm12 = vc.u32 %v308_v14, %v304_v13  ;;  %v312_v38 = vadd.s32 %v308_v14, %v304_v13 }
  0xa2   : > { %v287_v16 = vadd.s32 %v285_v12, %v279_v6  ;;  %vm288_vm11 = vc.u32 %v286_v10, %v282_v9  ;;  %v311_v28 = vsel %vm310_vm12, 1, %v650_v0  ;;  %v209_v13 = vand.u32 127, %v208_v7 }
  0xa3   : > { %v289_v20 = vsel %vm288_vm11, 1, %v650_v0  ;;  %v313_v30 = vadd.s32 %v311_v28, %v309_v21  ;;  %vm366_vm9 = vweird.f32 %v699_v15 }
  0xa4   : > { %v291_v25 = vadd.s32 %v289_v20, %v287_v16  ;;  %v214_v20 = vand.u32 1, %v209_v13 }
  0xa5   : > { %v314_v36 = vadd.s32 %v313_v30, %v303_v29 }
  0xa6   : > { %v292_v34 = vadd.s32 %v291_v25, %v281_v23  ;;  %vm758_vm2 = vcmp.eq.s32.totalorder %v214_v20, 0 }
  0xa7   : > { %v315_v27 = vadd.s32 %v314_v36, %v305_v35 }
  0xa8   : > { %v293_v37 = vadd.s32 %v292_v34, %v283_v33 }
  0xa9   : > { %v319_v0 = vadd.s32 1, %v315_v27 }
  0xaa   : > { %vm318_vm13 = vc.u32 %v293_v37, %v312_v38  ;;  %v317_v26 = vadd.s32 %v312_v38, %v293_v37 }
  0xab   : > { %v320_v40 = vsel %vm318_vm13, %v319_v0, %v315_v27  ;;  %v537_v0 = vpop.permute.xlu0 %536 }
  0xac   : > { %v321_v41 = vadd.s32 %v320_v40, %v316_v39 }
  0xae   : > { %v322_v42 = vadd.s32 536870912, %v321_v41 }
  0xb0   : > { %v323_v43 = vshrl.u32 %v322_v42, 30 }
  0xb2   : > { %v324_v45 = vshll.u32 %v323_v43, 30  ;;  %v347_v1 = vsub.s32 4, %v323_v43 }
  0xb4   : > { %v325_v44 = vsub.s32 %v321_v41, %v324_v45  ;;  %v348_v6 = vsel %vm225_vm0, %v347_v1, %v323_v43 }
  0xb5   : > { %v350_v10 = vsel %vm224_vm1, 0, %v348_v6 }
  0xb6   : > { %vm326_vm14 = vcmp.lt.s32.totalorder %v325_v44, 0  ;;  %v327_v46 = vsub.s32 0, %v325_v44  ;;  %v367_v17 = vadd.s32 3, %v350_v10  ;;  %v522_v23 = vand.u32 3, %v350_v10 }
  0xb8   : > { %v328_v47 = vsel %vm326_vm14, %v327_v46, %v325_v44  ;;  %v368_v25 = vand.u32 3, %v367_v17  ;;  %vm523_vm3 = vcmp.lt.s32.totalorder %v522_v23, 2  ;;  %vm524_vm4 = vcmp.eq.s32.totalorder %v522_v23, 0 }
  0xb9   : > { %v329_v49 = vclz %v328_v47  ;;  %vm527_vm8 = vcmp.eq.s32.totalorder %v522_v23, 2 }
  0xba   : > { %vm369_vm5 = vcmp.lt.s32.totalorder %v368_v25, 2  ;;  %vm370_vm6 = vcmp.eq.s32.totalorder %v368_v25, 0  ;;  %vm373_vm7 = vcmp.eq.s32.totalorder %v368_v25, 2 }
  0xbb   : > { %v616_v50 = vadd.s32 4294967294, %v329_v49 }
  0xbd   : > { %vm617_vm15 = vcmp.lt.s32.totalorder %v616_v50, 0 }
  0xbe   : > { %v332_v51 = vsel %vm617_vm15, 0, %v616_v50 }
  0xbf   : > { %v333_v52 = vsub.s32 32, %v332_v51  ;;  %v337_v53 = vsub.s32 4294967266, %v332_v51  ;;  %v334_v54 = vshll.u32 %v325_v44, %v332_v51 }
  0xc1   : > { %v335_v55 = vshrl.u32 %v317_v26, %v333_v52  ;;  %v338_v56 = vadd.s32 127, %v337_v53 }
  0xc3   : > { %v336_v48 = vor.u32 %v335_v55, %v334_v54  ;;  %v339_v57 = vshll.u32 %v338_v56, 23 }
  0xc5   : > { %v340_v58 = vor.u32 4788187, %v339_v57  ;;  %v343_v60 = vcvt.s32.f32 %v336_v48 }
  0xc7   : > { %v341_v59 = vand.u32 2147483647, %v340_v58 }
  0xc9   : > { %v344_v61 = vmul.f32 %v343_v60, %v341_v59 }
  0xcb   : > { %v345_v62 = vxor.u32 2147483648, %v344_v61 }
  0xcd   : > { %v346_v63 = vsel %vm225_vm0, %v345_v62, %v344_v61 }
  0xce   : > { %v349_v2 = vsel %vm224_vm1, %v699_v15, %v346_v63 }
  0xcf   : > { %v351_v3 = vmul.f32 %v349_v2, %v349_v2 }
  0xd1   : > { %v352_v4 = vmul.f32 -0.001358992, %v351_v3  ;;  %v359_v5 = vmul.f32 -0.00019511016, %v351_v3 }
  0xd3   : > { %v353_v8 = vadd.f32 0.041655596, %v352_v4  ;;  %v360_v9 = vadd.f32 0.008332121, %v359_v5 }
  0xd5   : > { %v354_v11 = vmul.f32 %v353_v8, %v351_v3  ;;  %v361_v12 = vmul.f32 %v360_v9, %v351_v3 }
  0xd7   : > { %v355_v14 = vadd.f32 -0.4999988, %v354_v11  ;;  %v362_v16 = vadd.f32 -0.16666654, %v361_v12 }
  0xd9   : > { %v356_v18 = vmul.f32 %v355_v14, %v351_v3  ;;  %v363_v19 = vmul.f32 %v362_v16, %v351_v3 }
  0xdb   : > { %v357_v21 = vadd.f32 1.0, %v356_v18  ;;  %v364_v22 = vadd.f32 1.0, %v363_v19 }
  0xdd   : > { %v365_v28 = vmul.f32 %v364_v22, %v349_v2  ;;  %v374_v29 = vxor.u32 2147483648, %v357_v21 }
  0xdf   : > { %v371_v31 = vxor.u32 2147483648, %v365_v28  ;;  %v375_v33 = vsel %vm373_vm7, %v374_v29, %v365_v28  ;;  %v529_v35 = vsel %vm527_vm8, %v374_v29, %v365_v28 }
  0xe1   : > { %v372_v32 = vsel %vm370_vm6, %v357_v21, %v371_v31  ;;  %v526_v34 = vsel %vm524_vm4, %v357_v21, %v371_v31 }
  0xe2   : > { %v376_v36 = vsel %vm369_vm5, %v372_v32, %v375_v33  ;;  %v530_v37 = vsel %vm523_vm3, %v526_v34, %v529_v35 }
  0xe3   : > { %v377_v38 = vsel %vm366_vm9, nan, %v376_v36  ;;  %v531_v24 = vsel %vm366_vm9, nan, %v530_v37 }
  0xe4   : > { %v532_v27 = vsel %vm758_vm2, %v377_v38, %v531_v24 }
  0xe5   : > { %v539_v39 = vmul.f32 %v537_v0, %v532_v27 }
  0xe7   : > { %541 = vst.msk [vmem:[%s182_s25] sm:$0xff] %vm540_vm10, %v539_v39 }
  0xe8 PF: > { %s13_s12 = sadd.s32 1, %s648_s12  }
  0xe9   : > { %p10_p4 = scmp.ge.s32.totalorder %s13_s12, 4  }
  0xeb   :  { %12 = sbr.rel (!%p10_p4) target bundleno = 1 (0x1), region = 65 }

// kernel: star_forward.15
= control target key start
LH: loop header
LB: loop body
LE: loop exit
PB: predicated region body
PF: predicated region fallthrough
CT: control target
= control target key end

     0   :  { %s344_s12 = smov 0   ;;  %s376_s0 = inlined_call_operand.vmem [shape: f32[2,8,64], index: 0, kind: input, shape index: {}]   ;;  %s377_s1 = inlined_call_operand.vmem [shape: bf16[64,32], index: 1, kind: input, shape index: {}]   ;;  %s378_s2 = inlined_call_operand.vmem [shape: f32[1,32], index: 2, kind: input, shape index: {}]   ;;  %s379_s3 = inlined_call_operand.vmem [shape: f32[2,8,32], index: 3, kind: output, shape index: {}]  }
   0x1 LB: > { %s277_s13 = sadd.s32 4294967295, %s322_s12   ;;  %p281_p0 = scmp.ge.s32.totalorder %s322_s12, 1  ;;  %s322_s12 = sphi %s344_s12, %s13_s12  }
   0x2   : > { %p136_p1 = scmp.lt.s32.totalorder %s322_s12, 3 }
   0x4   : > { %p137_p2 = pnand %p281_p0, %p136_p1 }
   0x5   : > { %p158_p3 = scmp.lt.s32.totalorder (!%p137_p2), %s277_s13, 1 }
   0x6   : > { %140 = sbr.rel (%p137_p2) target bundleno = 161 (0xa1), region = 32 }
   0xb   : > { %v306_v0 = vld [vmem:[%s377_s1 + $0x18] sm:$0xff]  ;;  %v305_v1 = vld [vmem:[%s377_s1 + $0x10] sm:$0xff]  ;;  %s381_s13 = smov (!%p158_p3, %s277_s13), 1  ;;  %v304_v2 = vld [vmem:[%s377_s1 + $0x8] sm:$0xff]  ;;  %vm205_vm0 = vcmask 523264   ;;  %vm222_vm1 = vcmask 261120  }
   0xc   : > { %213 = vmatpush.bf16.msra.mxu0 %v306_v0  ;;  %s282_s18 = sshll.u32 %s381_s13, 3  ;;  %v303_v3 = vld [vmem:[%s377_s1] sm:$0xff] }
   0xd   : > { %s161_s23 = scalar_lea.vmem %s376_s0, %s282_s18  ;;  %v315_v6 = vld [vmem:[%s378_s2] ss:$0 sm:$0xff]  ;;  %s165_s30 = scalar_lea.vmem %s379_s3, %s282_s18 }
   0xe   : > { %v167_v4 = vld [vmem:[%s161_s23] sm:$0xff] }
   0xf   : > { %v168_v5 = vpack.c.bf16 %v167_v4, %v167_v4 }
  0x10   : > { %214 = vmatpush.bf16.msra.mxu0 %v305_v1 }
  0x14   : > { %215 = vmatpush.bf16.msra.mxu0 %v304_v2 }
  0x18   : > { %216 = vmatpush.bf16.msra.mxu0 %v303_v3 }
  0x1b   : > { %300 = vmatmul.msk.bf16.vlgmr.msra.gmra.mxu0 %vm205_vm0, %v168_v5 }
  0x98   : > { %v218_v7 = vpop.f32.mrf.mxu0 }
  0x99   : > { %v219_v8 = vadd.f32 %v315_v6, %v218_v7 }
  0x9b   : > { %223 = vst.msk [vmem:[%s165_s30] sm:$0xff] %vm222_vm1, %v219_v8 }
  0xa0   : > { %v220_v9 = vpop.f32.mrf.mxu0 }
  0xa1 PF: > { %s13_s12 = sadd.s32 1, %s322_s12  }
  0xa2   : > { %p10_p4 = scmp.ge.s32.totalorder %s13_s12, 4  }
  0xa4   :  { %12 = sbr.rel (!%p10_p4) target bundleno = 1 (0x1), region = 62 }

// kernel: star_forward.10
= control target key start
LH: loop header
LB: loop body
LE: loop exit
PB: predicated region body
PF: predicated region fallthrough
CT: control target
= control target key end

     0   :  { %s1221_s18 = smov 0   ;;  %s1342_s0 = inlined_call_operand.vmem [shape: f32[2,8,32], index: 0, kind: input, shape index: {}]   ;;  %s1343_s1 = inlined_call_operand.vmem [shape: f32[2,8,32], index: 1, kind: input, shape index: {}]   ;;  %s1344_s2 = inlined_call_operand.vmem [shape: f32[2,8,1], index: 2, kind: input, shape index: {}]   ;;  %s1345_s3 = inlined_call_operand.vmem [shape: f32[2,1,8], index: 3, kind: input, shape index: {}]   ;;  %s1346_s4 = inlined_call_operand.vmem [shape: bf16[32,96], index: 4, kind: input, shape index: {}]   ;;  %s1347_s5 = inlined_call_operand.vmem [shape: bf16[32,32], index: 5, kind: input, shape index: {}]   ;;  %s1348_s6 = inlined_call_operand.vmem [shape: f32[1,32], index: 6, kind: input, shape index: {}]   ;;  %s1349_s7 = inlined_call_operand.vmem [shape: f32[1,32], index: 7, kind: input, shape index: {}, may-alias: {7,13}]   ;;  %s1350_s8 = inlined_call_operand.vmem [shape: f32[1,32], index: 8, kind: input, shape index: {}, may-alias: {8,14}]   ;;  %s1351_s9 = inlined_call_operand.vmem [shape: bf16[32,64], index: 9, kind: input, shape index: {}]   ;;  %s1352_s10 = inlined_call_operand.vmem [shape: f32[1,64], index: 10, kind: input, shape index: {}]   ;;  %s1353_s11 = inlined_call_operand.vmem [shape: bf16[64,32], index: 11, kind: input, shape index: {}]   ;;  %s1354_s12 = inlined_call_operand.vmem [shape: f32[1,32], index: 12, kind: input, shape index: {}]   ;;  %s1355_s13 = inlined_call_operand.vmem [shape: f32[1,32], index: 13, kind: input, shape index: {}, may-alias: {7,13}]   ;;  %s1356_s14 = inlined_call_operand.vmem [shape: f32[1,32], index: 14, kind: input, shape index: {}, may-alias: {8,14}]   ;;  %s1357_s15 = inlined_call_operand.vmem [shape: f32[2,8,32], index: 15, kind: output, shape index: {}]  }
   0x1 LB: > { %s1013_s19 = sadd.s32 4294967295, %s1130_s18   ;;  %p1017_p0 = scmp.ge.s32.totalorder %s1130_s18, 1  ;;  %s1130_s18 = sphi %s1221_s18, %s25_s18  }
   0x2   : > { %p462_p1 = scmp.lt.s32.totalorder %s1130_s18, 3 }
   0x4   : > { %p463_p2 = pnand %p1017_p0, %p462_p1 }
   0x5   : > { %p519_p3 = scmp.lt.s32.totalorder (!%p463_p2), %s1013_s19, 1  ;;  %s1132_s16 = smov (!%p463_p2), 112  }
   0x6   : > { %466 = sbr.rel (%p463_p2) target bundleno = 1857 (0x741), region = 80  ;;  %s1133_s17 = smov (!%p463_p2), 96  }
   0x7   : > { %s1134_s20 = smov (!%p463_p2), 80   ;;  %s1135_s21 = smov (!%p463_p2), 64  }
   0x8   : > { %s1136_s22 = smov (!%p463_p2), 48  }
   0xb   : > { %v1073_v0 = vld [vmem:[%s1346_s4 + $0x8] sm:$0xff]  ;;  %v1072_v1 = vld [vmem:[%s1346_s4] sm:$0xff]  ;;  %s1359_s19 = smov (!%p519_p3, %s1013_s19), 1  ;;  %vm560_vm0 = vcmask 261120   ;;  %v1137_v9 = vmov 0   ;;  %vm593_vm1 = vcmask 130048   ;;  %v578_v20 = vlaneseq }
   0xc   : > { %570 = vmatpush.bf16.msra.mxu0 %v1073_v0  ;;  %s1238_s24 = sshll.u32 %s1359_s19, 3  ;;  %1099 = vset.pattern.permute.xlu1 %v1137_v9  ;;  %vm631_vm2 = vcmask 1043456   ;;  %s533_s26 = scalar_lea.vmem %s1345_s3, %s1359_s19  ;;  %v1138_v25 = vmov 0.0   ;;  %vm613_vm7 = vcmask 64512   ;;  %v1075_v53 = vld [vmem:[%s1347_s5 + $0x8] sm:$0xff]  ;;  %v1074_v54 = vld [vmem:[%s1347_s5] sm:$0xff] }
   0xd   : > { %s522_s27 = scalar_lea.vmem %s1342_s0, %s1238_s24  ;;  %s526_s30 = scalar_lea.vmem %s1343_s1, %s1238_s24  ;;  %1100 = vset.pattern.permute.xlu0 %v1137_v9  ;;  %v577_v19 = vld [vmem:[%s533_s26] sm:$0x1]  ;;  %v579_v22 = vshrl.u32 %v578_v20, 7  ;;  %v581_v23 = vand.u32 127, %v578_v20  ;;  %vm875_vm12 = vcmask 523264  }
   0xe   : > { %v539_v2 = vld [vmem:[%s522_s27] sm:$0xff]  ;;  %vm583_vm3 = vcmp.gt.f32.partialorder %v577_v19, 0.5  ;;  %s537_s23 = scalar_lea.vmem %s1357_s15, %s1238_s24 }
   0xf   : > { %v540_v3 = vld [vmem:[%s526_s30] sm:$0xff]  ;;  %v584_v21 = vsel %vm583_vm3, 1, %v1137_v9  ;;  %vm582_vm4 = vcmp.gt.s32.totalorder %v581_v23, %v579_v22  ;;  %s1139_s30 = smov 16  }
  0x10   : > { %571 = vmatpush.bf16.msra.mxu0 %v1072_v1  ;;  %v1248_v4 = vadd.f32 %v540_v3, %v539_v2  ;;  %v585_v24 = vperm.slane %v584_v21, 0  ;;  %v1101_v62 = vld [vmem:[%s1348_s6] ss:$0 sm:$0xff] }
  0x12   : > { %v543_v5 = vpack.c.bf16 %v1248_v4, %v1248_v4  ;;  %vm586_vm5 = vcmp.eq.s32.totalorder %v585_v24, 1 }
  0x13   : > { %vm587_vm6 = vmor %vm582_vm4, %vm586_vm5 }
  0x14   : > { %1030 = vmatmul.msk.bf16.vlgmr.msra.gmra.mxu0 %vm560_vm0, %v543_v5  ;;  %v588_v26 = vsel %vm587_vm6, -1e+09, %v1138_v25  ;;  %v1140_v5 = vmov 32.0  }
  0x15   : > { %739 = vmatpush.bf16.msrb.mxu0 %v1075_v53 }
  0x19   : > { %740 = vmatpush.bf16.msrb.mxu0 %v1074_v54 }
  0x91   : > { %v573_v6 = vpop.f32.mrf.mxu0 }
  0x92   : > { %v589_v7 = vpack.c.bf16 %v573_v6, %v573_v6 }
  0x94   : > { %648 = vrot.lane.b32.xlu1 %v589_v7, %s1132_s16  ;;  %591 = vrot.lane.b32.xlu0 %v589_v7, %s1133_s17 }
  0x99   : > { %v575_v8 = vpop.f32.mrf.mxu0 }
  0x9c   : > { %650 = vrot.lane.b32.xlu0 %v589_v7, %s1134_s20 }
  0xa4   : > { %626 = vrot.lane.b32.xlu0 %v589_v7, %s1135_s21 }
  0xac   : > { %683 = vrot.lane.b32.xlu0 %v589_v7, %s1136_s22  ;;  %s530_s22 = scalar_lea.vmem %s1344_s2, %s1238_s24 }
  0xad   : > { %v542_v6 = vld [vmem:[%s530_s22] sm:$0xff] }
 0x106   : > { %v592_v10 = vpop.permute.xlu0 %591  ;;  %v649_v14 = vpop.permute.xlu1 %648 }
 0x107   : > { %v598_v11 = vsel %vm593_vm1, %v592_v10, 0 }
 0x108   : > { %607 = vmatpush.bf16.xpose.msra.mxu1 %v598_v11 }
 0x10e   : > { %v651_v12 = vpop.permute.xlu0 %650 }
 0x10f   : > { %1031 = vmatmul.msk.bf16.vlgmr.msra.gmra.mxu1 %vm593_vm1, %v589_v7  ;;  %v656_v13 = vsel %vm593_vm1, %v651_v12, 0 }
 0x110   : > { %665 = vmatpush.bf16.xpose.msra.mxu3 %v656_v13 }
 0x116   : > { %v627_v15 = vpop.permute.xlu0 %626 }
 0x117   : > { %1033 = vmatmul.msk.bf16.vlgmr.msra.gmra.mxu3 %vm593_vm1, %v649_v14  ;;  %v633_v16 = vsel %vm631_vm2, %v627_v15, 0 }
 0x118   : > { %642 = vmatpush.bf16.msra.mxu2 %v633_v16 }
 0x11e   : > { %v684_v17 = vpop.permute.xlu0 %683 }
 0x11f   : > { %v689_v18 = vsel %vm631_vm2, %v684_v17, 0  ;;  %v1077_v17 = vld [vmem:[%s1351_s9 + $0x8] sm:$0xff] }
 0x120   : > { %698 = vmatpush.bf16.msrb.mxu2 %v689_v18  ;;  %822 = vmatpush.bf16.msrb.mxu1 %v1077_v17  ;;  %v1076_v18 = vld [vmem:[%s1351_s9] sm:$0xff] }
 0x124   : > { %823 = vmatpush.bf16.msrb.mxu1 %v1076_v18 }
 0x18c   : > { %v609_v27 = vpop.f32.mrf.mxu1 }
 0x18d   : > { %v610_v28 = vadd.f32 %v609_v27, %v588_v26 }
 0x18f   : > { %v614_v29 = vsel %vm613_vm7, %v610_v28, -inf }
 0x190   : > { %615 = vmax.xlane.f32.xlu1 %v614_v29 }
 0x194   : > { %v611_v30 = vpop.f32.mrf.mxu1 }
 0x195   : > { %v1103_v30 = vld [vmem:[%s1350_s8] ss:$0 sm:$0xff] }
 0x19a   : > { %v667_v31 = vpop.f32.mrf.mxu3 }
 0x19b   : > { %v668_v32 = vadd.f32 %v667_v31, %v588_v26 }
 0x19d   : > { %v671_v33 = vsel %vm613_vm7, %v668_v32, -inf }
 0x19e   : > { %672 = vmax.xlane.f32.xlu2 %v671_v33 }
 0x1a2   : > { %v669_v34 = vpop.f32.mrf.mxu3 }
 0x1a9   : > { %788 = vperm.xlu1 %1099, %v542_v6  }
 0x203   : > { %v616_v35 = vpop.xlane.xlu1 %615 }
 0x204   : > { %v617_v36 = vsub.f32 %v610_v28, %v616_v35  ;;  %v1102_v28 = vld [vmem:[%s1349_s7] ss:$0 sm:$0xff] }
 0x206   : > { %v618_v37 = vmul.f32 1.442695, %v617_v36 }
 0x208   : > { %1108 = vpow2.f32 %v618_v37  ;;  %v1081_v37 = vld [vmem:[%s1353_s11 + $0x18] sm:$0xff] }
 0x209   : > { %883 = vmatpush.bf16.msrb.mxu3 %v1081_v37 }
 0x20e   : > { %v1109_v38 = vpop.eup %1108 }
 0x20f   : > { %v620_v39 = vsel %vm613_vm7, %v1109_v38, 0.0 }
 0x210   : > { %621 = vadd.xlane.f32.xlu2 %v620_v39  ;;  %v1079_v39 = vld [vmem:[%s1353_s11 + $0x8] sm:$0xff] }
 0x211   : > { %v673_v40 = vpop.xlane.xlu2 %672 }
 0x212   : > { %v674_v41 = vsub.f32 %v668_v32, %v673_v40  ;;  %v1078_v40 = vld [vmem:[%s1353_s11] sm:$0xff] }
 0x214   : > { %v675_v42 = vmul.f32 1.442695, %v674_v41  ;;  %v1104_v41 = vld [vmem:[%s1352_s10] ss:$0 sm:$0xff] }
 0x216   : > { %1110 = vpow2.f32 %v675_v42 }
 0x21b   : > { %v1301_v33 = vpop.permute.xlu1 %788 }
 0x21c   : > { %v1111_v43 = vpop.eup %1110 }
 0x21d   : > { %v677_v44 = vsel %vm613_vm7, %v1111_v43, 0.0 }
 0x21e   : > { %678 = vadd.xlane.f32.xlu2 %v677_v44 }
 0x283   : > { %v622_v45 = vpop.xlane.xlu2 %621 }
 0x284   : > { %1112 = vrcp.f32 %v622_v45 }
 0x28a   : > { %v1113_v46 = vpop.eup %1112 }
 0x28b   : > { %v624_v47 = vmul.f32 %v1113_v46, %v1109_v38  ;;  %v1080_v38 = vld [vmem:[%s1353_s11 + $0x10] sm:$0xff] }
 0x28c   : > { %884 = vmatpush.bf16.msrb.mxu3 %v1080_v38 }
 0x28d   : > { %v625_v48 = vpack.c.bf16 %v624_v47, %v624_v47 }
 0x28f   : > { %1032 = vmatmul.msk.bf16.vlgmr.msra.gmra.mxu2 %vm613_vm7, %v625_v48 }
 0x290   : > { %885 = vmatpush.bf16.msrb.mxu3 %v1079_v39 }
 0x291   : > { %v679_v49 = vpop.xlane.xlu2 %678 }
 0x292   : > { %1114 = vrcp.f32 %v679_v49 }
 0x293   : > { %1116 = vrcp.f32 %v1140_v5 }
 0x294   : > { %886 = vmatpush.bf16.msrb.mxu3 %v1078_v40 }
 0x298   : > { %v1115_v50 = vpop.eup %1114 }
 0x299   : > { %v681_v51 = vmul.f32 %v1115_v50, %v1111_v43  ;;  %v1117_v7 = vpop.eup %1116 }
 0x29a   : > { %v753_v8 = vmul.f32 32.0, %v1117_v7  ;;  %vm757_vm8 = vweird.f32 %v1117_v7 }
 0x29b   : > { %v682_v52 = vpack.c.bf16 %v681_v51, %v681_v51 }
 0x29c   : > { %v754_v9 = vsub.f32 1.0, %v753_v8 }
 0x29e   : > { %v755_v10 = vmul.f32 %v1117_v7, %v754_v9 }
 0x29f   : > { %1034 = vmatmul.msk.bf16.vlgmr.msrb.gmra.mxu2 %vm613_vm7, %v682_v52 }
 0x2a0   : > { %v756_v11 = vadd.f32 %v1117_v7, %v755_v10 }
 0x2a2   : > { %v1284_v12 = vsel %vm757_vm8, %v1117_v7, %v756_v11 }
 0x312   : > { %v644_v55 = vpop.f32.mrf.mxu2 }
 0x31a   : > { %v646_v56 = vpop.f32.mrf.mxu2 }
 0x322   : > { %v700_v57 = vpop.f32.mrf.mxu2 }
 0x323   : > { %705 = vrot.lane.b32.xlu2 %v700_v57, %s1139_s30 }
 0x32a   : > { %v702_v58 = vpop.f32.mrf.mxu2 }
 0x37d   : > { %v706_v59 = vpop.permute.xlu2 %705 }
 0x37e   : > { %v708_v60 = vsel %vm593_vm1, %v644_v55, %v706_v59  ;;  %v1105_v55 = vld [vmem:[%s1354_s12] ss:$0 sm:$0xff] }
 0x37f   : > { %v709_v61 = vpack.c.bf16 %v708_v60, %v708_v60 }
 0x381   : > { %1043 = vmatmul.msk.bf16.vlgmr.msrb.gmra.mxu0 %vm560_vm0, %v709_v61 }
 0x3fe   : > { %v742_v63 = vpop.f32.mrf.mxu0 }
 0x3ff   : > { %v743_v0 = vadd.f32 %v1101_v62, %v742_v63 }
 0x401   : > { %v746_v1 = vadd.f32 %v743_v0, %v1248_v4 }
 0x403   : > { %v749_v2 = vsel %vm560_vm0, %v746_v1, 0.0 }
 0x404   : > { %750 = vadd.xlane.f32.xlu0 %v749_v2 }
 0x406   : > { %v744_v3 = vpop.f32.mrf.mxu0 }
 0x477   : > { %v751_v4 = vpop.xlane.xlu0 %750 }
 0x478   : > { %v759_v13 = vmul.f32 %v1284_v12, %v751_v4  ;;  %v1106_v4 = vld [vmem:[%s1355_s13] ss:$0 sm:$0xff] }
 0x47a   : > { %v760_v14 = vsub.f32 %v746_v1, %v759_v13 }
 0x47c   : > { %v761_v15 = vmul.f32 %v760_v14, %v760_v14 }
 0x47e   : > { %v762_v16 = vsel %vm560_vm0, %v761_v15, 0.0 }
 0x47f   : > { %763 = vadd.xlane.f32.xlu2 %v762_v16 }
 0x4f2   : > { %v764_v19 = vpop.xlane.xlu2 %763 }
 0x4f3   : > { %v765_v20 = vmul.f32 %v764_v19, %v1284_v12 }
 0x4f5   : > { %v766_v21 = vadd.f32 1e-06, %v765_v20 }
 0x4f7   : > { %1118 = vrsqrt.f32 %v766_v21  ;;  %vm773_vm10 = vweird.f32 %v766_v21 }
 0x4fd   : > { %v1119_v22 = vpop.eup %1118 }
 0x4fe   : > { %v768_v23 = vmul.f32 %v1119_v22, %v766_v21  ;;  %vm774_vm9 = vweird.f32 %v1119_v22 }
 0x4ff   : > { %vm775_vm11 = vmor %vm773_vm10, %vm774_vm9 }
 0x500   : > { %v769_v24 = vmul.f32 %v1119_v22, %v768_v23 }
 0x502   : > { %v770_v25 = vmul.f32 0.5, %v769_v24 }
 0x504   : > { %v771_v26 = vsub.f32 1.5, %v770_v25 }
 0x506   : > { %v772_v27 = vmul.f32 %v1119_v22, %v771_v26 }
 0x508   : > { %v776_v29 = vsel %vm775_vm11, %v1119_v22, %v772_v27 }
 0x509   : > { %v777_v31 = vmul.f32 %v776_v29, %v760_v14 }
 0x50b   : > { %v781_v32 = vmul.f32 %v1102_v28, %v777_v31 }
 0x50d   : > { %v785_v34 = vadd.f32 %v1103_v30, %v781_v32 }
 0x50f   : > { %v791_v35 = vmul.f32 %v1301_v33, %v785_v34 }
 0x511   : > { %v792_v36 = vpack.c.bf16 %v791_v35, %v791_v35 }
 0x513   : > { %1052 = vmatmul.msk.bf16.vlgmr.msrb.gmra.mxu1 %vm560_vm0, %v792_v36 }
 0x590   : > { %v825_v42 = vpop.f32.mrf.mxu1 }
 0x591   : > { %v826_v43 = vadd.f32 %v1104_v41, %v825_v42 }
 0x593   : > { %v830_v44 = vmul.f32 0.044715, %v826_v43  ;;  %v829_v51 = vmul.f32 0.5, %v826_v43 }
 0x595   : > { %v831_v45 = vmul.f32 %v830_v44, %v826_v43 }
 0x597   : > { %v832_v46 = vmul.f32 %v831_v45, %v826_v43 }
 0x598   : > { %v827_v47 = vpop.f32.mrf.mxu1 }
 0x599   : > { %v833_v48 = vadd.f32 %v832_v46, %v826_v43 }
 0x59b   : > { %v834_v49 = vmul.f32 0.7978846, %v833_v48 }
 0x59d   : > { %1120 = vtanh.f32 %v834_v49 }
 0x5a3   : > { %v1121_v50 = vpop.eup %1120 }
 0x5a4   : > { %v836_v52 = vadd.f32 1.0, %v1121_v50 }
 0x5a6   : > { %v837_v53 = vmul.f32 %v836_v52, %v829_v51 }
 0x5a8   : > { %v838_v54 = vpack.c.bf16 %v837_v53, %v837_v53 }
 0x5aa   : > { %1069 = vmatmul.msk.bf16.vlgmr.msrb.gmra.mxu3 %vm875_vm12, %v838_v54 }
 0x62d   : > { %v888_v56 = vpop.f32.mrf.mxu3 }
 0x62e   : > { %v889_v57 = vadd.f32 %v1105_v55, %v888_v56 }
 0x630   : > { %v892_v58 = vadd.f32 %v889_v57, %v791_v35 }
 0x632   : > { %v895_v59 = vsel %vm560_vm0, %v892_v58, 0.0 }
 0x633   : > { %896 = vadd.xlane.f32.xlu0 %v895_v59 }
 0x635   : > { %v890_v60 = vpop.f32.mrf.mxu3 }
 0x6a6   : > { %v897_v61 = vpop.xlane.xlu0 %896 }
 0x6a7   : > { %v898_v62 = vmul.f32 %v897_v61, %v1284_v12 }
 0x6a9   : > { %v899_v63 = vsub.f32 %v892_v58, %v898_v62 }
 0x6ab   : > { %v900_v0 = vmul.f32 %v899_v63, %v899_v63 }
 0x6ad   : > { %v901_v1 = vsel %vm560_vm0, %v900_v0, 0.0 }
 0x6ae   : > { %902 = vadd.xlane.f32.xlu1 %v901_v1 }
 0x721   : > { %v903_v2 = vpop.xlane.xlu1 %902 }
 0x722   : > { %v904_v3 = vmul.f32 %v903_v2, %v1284_v12  ;;  %v1107_v12 = vld [vmem:[%s1356_s14] ss:$0 sm:$0xff] }
 0x724   : > { %v905_v5 = vadd.f32 1e-06, %v904_v3 }
 0x726   : > { %1122 = vrsqrt.f32 %v905_v5  ;;  %vm912_vm14 = vweird.f32 %v905_v5 }
 0x72c   : > { %v1123_v6 = vpop.eup %1122 }
 0x72d   : > { %v907_v7 = vmul.f32 %v1123_v6, %v905_v5  ;;  %vm913_vm13 = vweird.f32 %v1123_v6 }
 0x72e   : > { %vm914_vm15 = vmor %vm912_vm14, %vm913_vm13 }
 0x72f   : > { %v908_v8 = vmul.f32 %v1123_v6, %v907_v7 }
 0x731   : > { %v909_v9 = vmul.f32 0.5, %v908_v8 }
 0x733   : > { %v910_v10 = vsub.f32 1.5, %v909_v9 }
 0x735   : > { %v911_v11 = vmul.f32 %v1123_v6, %v910_v10 }
 0x737   : > { %v915_v13 = vsel %vm914_vm15, %v1123_v6, %v911_v11 }
 0x738   : > { %v916_v14 = vmul.f32 %v915_v13, %v899_v63 }
 0x73a   : > { %v920_v15 = vmul.f32 %v1106_v4, %v916_v14 }
 0x73c   : > { %v924_v16 = vadd.f32 %v1107_v12, %v920_v15 }
 0x73e   : > { %v925_v17 = vmul.f32 %v924_v16, %v1301_v33 }
 0x740   : > { %926 = vst.msk [vmem:[%s537_s23] sm:$0xff] %vm560_vm0, %v925_v17 }
 0x741 PF: > { %s25_s18 = sadd.s32 1, %s1130_s18  }
 0x742   : > { %p22_p4 = scmp.ge.s32.totalorder %s25_s18, 4  }
 0x744   :  { %24 = sbr.rel (!%p22_p4) target bundleno = 1 (0x1), region = 119 }

// kernel: star_forward.14
= control target key start
LH: loop header
LB: loop body
LE: loop exit
PB: predicated region body
PF: predicated region fallthrough
CT: control target
= control target key end

     0   :  { %s1622_s0 = inlined_call_operand.vmem [shape: f32[2,8,32], index: 0, kind: input, shape index: {}]   ;;  %s1623_s1 = inlined_call_operand.vmem [shape: f32[2,8,32], index: 1, kind: input, shape index: {}]   ;;  %s1624_s2 = inlined_call_operand.vmem [shape: f32[2,8,1], index: 2, kind: input, shape index: {}]   ;;  %s1625_s3 = inlined_call_operand.vmem [shape: f32[2,1,8], index: 3, kind: input, shape index: {}]   ;;  %s1626_s4 = inlined_call_operand.vmem [shape: bf16[32,96], index: 4, kind: input, shape index: {}]   ;;  %s1627_s5 = inlined_call_operand.vmem [shape: bf16[32,32], index: 5, kind: input, shape index: {}]   ;;  %s1628_s6 = inlined_call_operand.vmem [shape: f32[1,32], index: 6, kind: input, shape index: {}]   ;;  %s1629_s7 = inlined_call_operand.vmem [shape: f32[1,32], index: 7, kind: input, shape index: {}, may-alias: {7,13}]   ;;  %s1630_s8 = inlined_call_operand.vmem [shape: f32[1,32], index: 8, kind: input, shape index: {}, may-alias: {8,14}]   ;;  %s1631_s9 = inlined_call_operand.vmem [shape: bf16[32,64], index: 9, kind: input, shape index: {}]   ;;  %s1632_s10 = inlined_call_operand.vmem [shape: f32[1,64], index: 10, kind: input, shape index: {}]   ;;  %s1633_s11 = inlined_call_operand.vmem [shape: bf16[64,32], index: 11, kind: input, shape index: {}]   ;;  %s1634_s12 = inlined_call_operand.vmem [shape: f32[1,32], index: 12, kind: input, shape index: {}]   ;;  %s1635_s13 = inlined_call_operand.vmem [shape: f32[1,32], index: 13, kind: input, shape index: {}, may-alias: {7,13}]   ;;  %s1636_s14 = inlined_call_operand.vmem [shape: f32[1,32], index: 14, kind: input, shape index: {}, may-alias: {8,14}]   ;;  %s1637_s15 = inlined_call_operand.vmem [shape: f32[2,8,32], index: 15, kind: output, shape index: {0}]   ;;  %s1638_s16 = inlined_call_operand.hbm [shape: f32[2,2,8,8], index: 16, kind: output, shape index: {1}]  }
   0x1   :  { %1645 = sst [smem:[#allocation10_spill]] %s1622_s0 }
   0x2   :  { %1646 = sst [smem:[#allocation11_spill]] %s1623_s1 }
   0x3   :  { %1647 = sst [smem:[#allocation12_spill]] %s1624_s2 }
   0x4   :  { %1648 = sst [smem:[#allocation13_spill]] %s1625_s3 }
   0x5   :  { %1649 = sst [smem:[#allocation14_spill]] %s1626_s4 }
   0x6   :  { %22 = vsyncpa [#allocation3], 0 }
   0x7   :  { %24 = vsyncpa [#allocation3 + $0x1], 0  ;;  %s1419_s21 = smov 0   ;;  %s1421_s22 = smov 0  }
   0x8   :  { %s1423_s23 = smov 0   ;;  %s1425_s24 = smov 0  }
   0x9 LB: > { %1650 = sst [smem:[#allocation5_spill]] %s1309_s21  ;;  %s1440_s25 = sadd.s32 4294967295, %s1321_s24   ;;  %s1321_s24 = sphi %s1425_s24, %s1665_s24   ;;  %s1317_s23 = sphi %s1423_s23, %s1667_s23   ;;  %s1313_s22 = sphi %s1421_s22, %s1669_s22   ;;  %s1309_s21 = sphi %s1419_s21, %s1668_s21  }
   0xa   : > { %1651 = sst [smem:[#allocation6_spill]] %s1317_s23  ;;  %s1110_s26 = sadd.s32 4294967294, %s1321_s24  }
   0xb   : > { %s1444_s27 = sadd.s32 1, %s1321_s24   ;;  %s398_s28 = sadd.s32 1, %s1317_s23 }
   0xc   : > { %1652 = sst [smem:[#allocation7_spill]] %s1444_s27  ;;  %s395_s29 = ssub.s32 %s1321_s24, %s1444_s27 }
   0xd   : > { %p408_p0 = scmp.ne.s32.totalorder %s1317_s23, %s1313_s22  ;;  %p396_p1 = scmp.eq.s32.totalorder %s395_s29, 0 }
   0xe   : > { %p409_p2 = scmp.eq.s32.totalorder %s1440_s25, 1  ;;  %p414_p3 = scmp.ne.s32.totalorder %s1313_s22, %s1309_s21 }
   0xf   : > { %p415_p4 = scmp.eq.s32.totalorder %s1110_s26, 1  ;;  %p1113_p7 = scmp.ge.s32.totalorder %s1321_s24, 1 }
  0x10   : > { %s1455_s30 = scalar_select %p396_p1, %s1317_s23, %s398_s28  }
  0x11   : > { %p1457_p5 = por %p409_p2, %p408_p0  ;;  %p1461_p6 = por %p415_p4, %p414_p3 }
  0x12   : > { %1653 = sst [smem:[#allocation8_spill]] %s1455_s30  ;;  %p493_p8 = scmp.lt.s32.totalorder %s1321_s24, 3 }
  0x13   : > { %s1655_s17 = scalar_select %p1461_p6, 1, 0 }
  0x14   : > { %p494_p9 = pnand %p1113_p7, %p493_p8 }
  0x15   : > { %1656 = sst [smem:[#allocation9_spill]] %s1655_s17  ;;  %p557_p10 = scmp.lt.s32.totalorder (!%p494_p9), %s1440_s25, 1 }
  0x16   : > { %497 = sbr.rel (%p494_p9) target bundleno = 1874 (0x752), region = 80  ;;  %s1657_s4 = sld [smem:[#allocation14_spill]] (!%p494_p9) }
  0x17   : > { %s1658_s27 = sld [smem:[#allocation10_spill]] (!%p494_p9)  ;;  %s1323_s23 = smov (!%p494_p9), 112  }
  0x18   : > { %s1659_s1 = sld [smem:[#allocation11_spill]] (!%p494_p9)  ;;  %s1325_s30 = smov (!%p494_p9), 80  }
  0x19   : > { %s1326_s17 = smov (!%p494_p9), 64   ;;  %s1660_s3 = sld [smem:[#allocation13_spill]] (!%p494_p9) }
  0x1a   : > { %s1330_s20 = smov (!%p494_p9), 16   ;;  %s1661_s2 = sld [smem:[#allocation12_spill]] (!%p494_p9) }
  0x1b   : > { %s1475_s28 = scalar_select %p557_p10, %s1440_s25, 1  ;;  %vm598_vm0 = vcmask 261120   ;;  %v1328_v9 = vmov 0   ;;  %vm631_vm1 = vcmask 130048   ;;  %vm670_vm2 = vcmask 1043456   ;;  %v1176_v53 = vld [vmem:[%s1627_s5 + $0x8] sm:$0xff] }
  0x1c   : > { %v1174_v0 = vld [vmem:[%s1657_s4 + $0x8] sm:$0xff]  ;;  %v1173_v1 = vld [vmem:[%s1657_s4] sm:$0xff]  ;;  %1234 = vset.pattern.permute.xlu1 %v1328_v9  ;;  %1235 = vset.pattern.permute.xlu0 %v1328_v9  ;;  %v616_v20 = vlaneseq  ;;  %v1329_v25 = vmov 0.0   ;;  %vm651_vm7 = vcmask 64512   ;;  %vm916_vm12 = vcmask 523264  }
  0x1d   : > { %608 = vmatpush.bf16.msra.mxu0 %v1174_v0  ;;  %s1478_s29 = sshll.u32 %s1475_s28, 3  ;;  %v1175_v54 = vld [vmem:[%s1627_s5] sm:$0xff] }
  0x1e   : > { %s560_s18 = scalar_lea.vmem %s1658_s27, %s1478_s29  ;;  %s564_s21 = scalar_lea.vmem %s1659_s1, %s1478_s29  ;;  %v617_v22 = vshrl.u32 %v616_v20, 7  ;;  %v619_v23 = vand.u32 127, %v616_v20  ;;  %v1236_v62 = vld [vmem:[%s1628_s6] ss:$0 sm:$0xff] }
  0x1f   : > { %v577_v2 = vld [vmem:[%s560_s18] sm:$0xff]  ;;  %s1324_s27 = smov 96   ;;  %s571_s18 = scalar_lea.vmem %s1660_s3, %s1475_s28 }
  0x20   : > { %v578_v3 = vld [vmem:[%s564_s21] sm:$0xff]  ;;  %s1327_s21 = smov 48   ;;  %vm620_vm4 = vcmp.gt.s32.totalorder %v619_v23, %v617_v22  ;;  %s1644_s28 = sand.u32 1, %s1313_s22  }
  0x21   : > { %609 = vmatpush.bf16.msra.mxu0 %v1173_v1  ;;  %v1488_v4 = vadd.f32 %v578_v3, %v577_v2  ;;  %v615_v19 = vld [vmem:[%s571_s18] sm:$0x1]  ;;  %s1114_s19 = sshll.u32 %s1644_s28, 4  ;;  %s1183_s28 = sshll.u32 %s1440_s25, 4 }
  0x22   : > { %vm621_vm3 = vcmp.gt.f32.partialorder %v615_v19, 0.5  ;;  %s987_s26 = scalar_lea.hbm %s1638_s16, %s1183_s28  ;;  %s1279_s25 = scalar_lea.hbm %s1638_s16, 32 }
  0x23   : > { %v581_v5 = vpack.c.bf16 %v1488_v4, %v1488_v4  ;;  %v622_v21 = vsel %vm621_vm3, 1, %v1328_v9 }
  0x24   : > { %v623_v24 = vperm.slane %v622_v21, 0 }
  0x25   : > { %1127 = vmatmul.msk.bf16.vlgmr.msra.gmra.mxu0 %vm598_vm0, %v581_v5  ;;  %v1331_v5 = vmov 32.0  }
  0x26   : > { %vm624_vm5 = vcmp.eq.s32.totalorder %v623_v24, 1  ;;  %780 = vmatpush.bf16.msrb.mxu0 %v1176_v53 }
  0x27   : > { %vm625_vm6 = vmor %vm620_vm4, %vm624_vm5 }
  0x28   : > { %v626_v26 = vsel %vm625_vm6, -1e+09, %v1329_v25 }
  0x2a   : > { %781 = vmatpush.bf16.msrb.mxu0 %v1175_v54 }
  0xa2   : > { %v611_v6 = vpop.f32.mrf.mxu0 }
  0xa3   : > { %v627_v7 = vpack.c.bf16 %v611_v6, %v611_v6 }
  0xa5   : > { %687 = vrot.lane.b32.xlu1 %v627_v7, %s1323_s23  ;;  %629 = vrot.lane.b32.xlu0 %v627_v7, %s1324_s27  ;;  %s1508_s23 = scalar_lea.vmem [#allocation2], %s1114_s19  ;;  %s990_s19 = sshll.u32 %s987_s26, 4  ;;  %s991_s19 = int_to_ptr.hbm [resolvable:$true] %s990_s19 }
  0xa6   : > { %s988_s18 = sshll.u32 %s1508_s23, 4  ;;  %s1662_s27 = sand.u32 1, %s1313_s22   ;;  %s989_s18 = int_to_ptr.vmem [resolvable:$true] %s988_s18 }
  0xaa   : > { %v613_v8 = vpop.f32.mrf.mxu0 }
  0xad   : > { %689 = vrot.lane.b32.xlu0 %v627_v7, %s1325_s30  ;;  %s568_s30 = scalar_lea.vmem %s1661_s2, %s1478_s29 }
  0xae   : > { %v580_v6 = vld [vmem:[%s568_s30] sm:$0xff]  ;;  %s973_s30 = scalar_lea.sflag [#allocation3], %s1662_s27 }
  0xb5   : > { %665 = vrot.lane.b32.xlu0 %v627_v7, %s1326_s17  ;;  %s1273_s17 = sshra.s32 %s991_s19, 4  ;;  %s1274_s17 = int_to_ptr.hbm [resolvable:$true] %s1273_s17 }
  0xb6   : > { %s1275_s1 = scalar_lea.hbm %s1274_s17, 16  ;;  %p1280_p0 = scmp.lt.s32.totalorder %s1274_s17, %s1638_s16 }
  0xb7   : > { %p1276_p11 = scmp.ne.s32.totalorder %s1274_s17, %s1275_s1  ;;  %p1281_p1 = scmp.lt.s32.totalorder %s1279_s25, %s1275_s1 }
  0xb9   : > { %p1277_p12 = pnand %p1276_p11, %p1457_p5  ;;  %p1282_p2 = por %p1281_p1, %p1280_p0 }
  0xbb   : > { %p1278_p13 = pneg %p1277_p12 }
  0xbd   : > { %724 = vrot.lane.b32.xlu0 %v627_v7, %s1327_s21  ;;  %p1283_p3 = pnand %p1282_p2, %p1278_p13 }
 0x117   : > { %v630_v10 = vpop.permute.xlu0 %629  ;;  %v688_v14 = vpop.permute.xlu1 %687 }
 0x118   : > { %v636_v11 = vsel %vm631_vm1, %v630_v10, 0 }
 0x119   : > { %645 = vmatpush.bf16.xpose.msra.mxu1 %v636_v11 }
 0x11f   : > { %v690_v12 = vpop.permute.xlu0 %689 }
 0x120   : > { %1128 = vmatmul.msk.bf16.vlgmr.msra.gmra.mxu1 %vm631_vm1, %v627_v7  ;;  %v695_v13 = vsel %vm631_vm1, %v690_v12, 0 }
 0x121   : > { %704 = vmatpush.bf16.xpose.msra.mxu3 %v695_v13 }
 0x127   : > { %v666_v15 = vpop.permute.xlu0 %665 }
 0x128   : > { %1130 = vmatmul.msk.bf16.vlgmr.msra.gmra.mxu3 %vm631_vm1, %v688_v14  ;;  %v672_v16 = vsel %vm670_vm2, %v666_v15, 0 }
 0x129   : > { %681 = vmatpush.bf16.msra.mxu2 %v672_v16 }
 0x12f   : > { %v725_v17 = vpop.permute.xlu0 %724 }
 0x130   : > { %v730_v18 = vsel %vm670_vm2, %v725_v17, 0  ;;  %v1178_v17 = vld [vmem:[%s1631_s9 + $0x8] sm:$0xff] }
 0x131   : > { %739 = vmatpush.bf16.msrb.mxu2 %v730_v18  ;;  %863 = vmatpush.bf16.msrb.mxu1 %v1178_v17  ;;  %v1177_v18 = vld [vmem:[%s1631_s9] sm:$0xff] }
 0x135   : > { %864 = vmatpush.bf16.msrb.mxu1 %v1177_v18 }
 0x19d   : > { %v647_v27 = vpop.f32.mrf.mxu1 }
 0x19e   : > { %v648_v28 = vadd.f32 %v647_v27, %v626_v26 }
 0x1a0   : > { %v652_v29 = vsel %vm651_vm7, %v648_v28, -inf }
 0x1a1   : > { %653 = vmax.xlane.f32.xlu1 %v652_v29 }
 0x1a5   : > { %v649_v30 = vpop.f32.mrf.mxu1 }
 0x1a6   : > { %v1238_v30 = vld [vmem:[%s1630_s8] ss:$0 sm:$0xff] }
 0x1ab   : > { %v706_v31 = vpop.f32.mrf.mxu3 }
 0x1ac   : > { %v707_v32 = vadd.f32 %v706_v31, %v626_v26 }
 0x1ae   : > { %v710_v33 = vsel %vm651_vm7, %v707_v32, -inf }
 0x1af   : > { %711 = vmax.xlane.f32.xlu2 %v710_v33 }
 0x1b3   : > { %v708_v34 = vpop.f32.mrf.mxu3 }
 0x1ba   : > { %829 = vperm.xlu1 %1234, %v580_v6  }
 0x214   : > { %v654_v35 = vpop.xlane.xlu1 %653 }
 0x215   : > { %v655_v36 = vsub.f32 %v648_v28, %v654_v35  ;;  %v1237_v28 = vld [vmem:[%s1629_s7] ss:$0 sm:$0xff] }
 0x217   : > { %v656_v37 = vmul.f32 1.442695, %v655_v36 }
 0x219   : > { %1243 = vpow2.f32 %v656_v37  ;;  %v1182_v37 = vld [vmem:[%s1633_s11 + $0x18] sm:$0xff] }
 0x21a   : > { %924 = vmatpush.bf16.msrb.mxu3 %v1182_v37 }
 0x21f   : > { %v1244_v38 = vpop.eup %1243 }
 0x220   : > { %v658_v39 = vsel %vm651_vm7, %v1244_v38, 0.0 }
 0x221   : > { %659 = vadd.xlane.f32.xlu2 %v658_v39  ;;  %v1180_v39 = vld [vmem:[%s1633_s11 + $0x8] sm:$0xff] }
 0x222   : > { %v712_v40 = vpop.xlane.xlu2 %711 }
 0x223   : > { %v713_v41 = vsub.f32 %v707_v32, %v712_v40  ;;  %v1179_v40 = vld [vmem:[%s1633_s11] sm:$0xff] }
 0x225   : > { %v714_v42 = vmul.f32 1.442695, %v713_v41  ;;  %v1239_v41 = vld [vmem:[%s1632_s10] ss:$0 sm:$0xff] }
 0x227   : > { %1245 = vpow2.f32 %v714_v42 }
 0x22c   : > { %v1550_v33 = vpop.permute.xlu1 %829 }
 0x22d   : > { %v1246_v43 = vpop.eup %1245 }
 0x22e   : > { %v716_v44 = vsel %vm651_vm7, %v1246_v43, 0.0 }
 0x22f   : > { %717 = vadd.xlane.f32.xlu2 %v716_v44 }
 0x294   : > { %v660_v45 = vpop.xlane.xlu2 %659 }
 0x295   : > { %1247 = vrcp.f32 %v660_v45 }
 0x29b   : > { %v1248_v46 = vpop.eup %1247 }
 0x29c   : > { %v662_v47 = vmul.f32 %v1248_v46, %v1244_v38  ;;  %v1181_v38 = vld [vmem:[%s1633_s11 + $0x10] sm:$0xff] }
 0x29d   : > { %925 = vmatpush.bf16.msrb.mxu3 %v1181_v38 }
 0x29e   : > { %663 = vst.msk [vmem:[%s1508_s23] sm:$0xff] %vm651_vm7, %v662_v47  ;;  %v664_v48 = vpack.c.bf16 %v662_v47, %v662_v47 }
 0x2a0   : > { %1129 = vmatmul.msk.bf16.vlgmr.msra.gmra.mxu2 %vm651_vm7, %v664_v48 }
 0x2a1   : > { %926 = vmatpush.bf16.msrb.mxu3 %v1180_v39 }
 0x2a2   : > { %v718_v49 = vpop.xlane.xlu2 %717 }
 0x2a3   : > { %1249 = vrcp.f32 %v718_v49 }
 0x2a4   : > { %1251 = vrcp.f32 %v1331_v5 }
 0x2a5   : > { %927 = vmatpush.bf16.msrb.mxu3 %v1179_v40 }
 0x2a9   : > { %v1250_v50 = vpop.eup %1249 }
 0x2aa   : > { %v720_v51 = vmul.f32 %v1250_v50, %v1246_v43  ;;  %v1252_v7 = vpop.eup %1251 }
 0x2ab   : > { %v794_v8 = vmul.f32 32.0, %v1252_v7  ;;  %vm798_vm8 = vweird.f32 %v1252_v7 }
 0x2ac   : > { %1131 = vst.msk [vmem:[%s1508_s23 + $0x8] sm:$0xff] %vm651_vm7, %v720_v51  ;;  %v723_v52 = vpack.c.bf16 %v720_v51, %v720_v51 }
 0x2ad   : > { %v795_v9 = vsub.f32 1.0, %v794_v8 }
 0x2af   : > { %v796_v10 = vmul.f32 %v1252_v7, %v795_v9 }
 0x2b0   : > { %1132 = vmatmul.msk.bf16.vlgmr.msrb.gmra.mxu2 %vm651_vm7, %v723_v52 }
 0x2b1   : > { %v797_v11 = vadd.f32 %v1252_v7, %v796_v10 }
 0x2b3   : > { %v1533_v12 = vsel %vm798_vm8, %v1252_v7, %v797_v11 }
 0x323   : > { %v683_v55 = vpop.f32.mrf.mxu2 }
 0x32b   : > { %v685_v56 = vpop.f32.mrf.mxu2 }
 0x333   : > { %v741_v57 = vpop.f32.mrf.mxu2 }
 0x334   : > { %746 = vrot.lane.b32.xlu2 %v741_v57, %s1330_s20 }
 0x33b   : > { %v743_v58 = vpop.f32.mrf.mxu2 }
 0x38e   : > { %v747_v59 = vpop.permute.xlu2 %746 }
 0x38f   : > { %v749_v60 = vsel %vm631_vm1, %v683_v55, %v747_v59  ;;  %v1240_v55 = vld [vmem:[%s1634_s12] ss:$0 sm:$0xff] }
 0x390   : > { %v750_v61 = vpack.c.bf16 %v749_v60, %v749_v60 }
 0x392   : > { %1141 = vmatmul.msk.bf16.vlgmr.msrb.gmra.mxu0 %vm598_vm0, %v750_v61 }
 0x40f   : > { %v783_v63 = vpop.f32.mrf.mxu0 }
 0x410   : > { %v784_v0 = vadd.f32 %v1236_v62, %v783_v63 }
 0x412   : > { %v787_v1 = vadd.f32 %v784_v0, %v1488_v4 }
 0x414   : > { %v790_v2 = vsel %vm598_vm0, %v787_v1, 0.0 }
 0x415   : > { %791 = vadd.xlane.f32.xlu0 %v790_v2 }
 0x417   : > { %v785_v3 = vpop.f32.mrf.mxu0 }
 0x488   : > { %v792_v4 = vpop.xlane.xlu0 %791 }
 0x489   : > { %v800_v13 = vmul.f32 %v1533_v12, %v792_v4 }
 0x48b   : > { %v801_v14 = vsub.f32 %v787_v1, %v800_v13 }
 0x48d   : > { %v802_v15 = vmul.f32 %v801_v14, %v801_v14 }
 0x48f   : > { %v803_v16 = vsel %vm598_vm0, %v802_v15, 0.0 }
 0x490   : > { %804 = vadd.xlane.f32.xlu2 %v803_v16 }
 0x503   : > { %v805_v19 = vpop.xlane.xlu2 %804 }
 0x504   : > { %v806_v20 = vmul.f32 %v805_v19, %v1533_v12 }
 0x506   : > { %v807_v21 = vadd.f32 1e-06, %v806_v20 }
 0x508   : > { %1253 = vrsqrt.f32 %v807_v21  ;;  %vm814_vm10 = vweird.f32 %v807_v21 }
 0x50e   : > { %v1254_v22 = vpop.eup %1253 }
 0x50f   : > { %v809_v23 = vmul.f32 %v1254_v22, %v807_v21  ;;  %vm815_vm9 = vweird.f32 %v1254_v22 }
 0x510   : > { %vm816_vm11 = vmor %vm814_vm10, %vm815_vm9 }
 0x511   : > { %v810_v24 = vmul.f32 %v1254_v22, %v809_v23 }
 0x513   : > { %v811_v25 = vmul.f32 0.5, %v810_v24 }
 0x515   : > { %v812_v26 = vsub.f32 1.5, %v811_v25 }
 0x517   : > { %v813_v27 = vmul.f32 %v1254_v22, %v812_v26 }
 0x519   : > { %v817_v29 = vsel %vm816_vm11, %v1254_v22, %v813_v27 }
 0x51a   : > { %v818_v31 = vmul.f32 %v817_v29, %v801_v14 }
 0x51c   : > { %v822_v32 = vmul.f32 %v1237_v28, %v818_v31 }
 0x51e   : > { %v826_v34 = vadd.f32 %v1238_v30, %v822_v32 }
 0x520   : > { %v832_v35 = vmul.f32 %v1550_v33, %v826_v34 }
 0x522   : > { %v833_v36 = vpack.c.bf16 %v832_v35, %v832_v35 }
 0x524   : > { %1150 = vmatmul.msk.bf16.vlgmr.msrb.gmra.mxu1 %vm598_vm0, %v833_v36 }
 0x5a1   : > { %v866_v42 = vpop.f32.mrf.mxu1 }
 0x5a2   : > { %v867_v43 = vadd.f32 %v1239_v41, %v866_v42 }
 0x5a4   : > { %v871_v44 = vmul.f32 0.044715, %v867_v43  ;;  %v870_v51 = vmul.f32 0.5, %v867_v43 }
 0x5a6   : > { %v872_v45 = vmul.f32 %v871_v44, %v867_v43 }
 0x5a8   : > { %v873_v46 = vmul.f32 %v872_v45, %v867_v43 }
 0x5a9   : > { %v868_v47 = vpop.f32.mrf.mxu1 }
 0x5aa   : > { %v874_v48 = vadd.f32 %v873_v46, %v867_v43 }
 0x5ac   : > { %v875_v49 = vmul.f32 0.7978846, %v874_v48 }
 0x5ae   : > { %1255 = vtanh.f32 %v875_v49 }
 0x5b4   : > { %v1256_v50 = vpop.eup %1255 }
 0x5b5   : > { %v877_v52 = vadd.f32 1.0, %v1256_v50 }
 0x5b7   : > { %v878_v53 = vmul.f32 %v877_v52, %v870_v51 }
 0x5b9   : > { %v879_v54 = vpack.c.bf16 %v878_v53, %v878_v53 }
 0x5bb   : > { %1167 = vmatmul.msk.bf16.vlgmr.msrb.gmra.mxu3 %vm916_vm12, %v879_v54 }
 0x63e   : > { %v929_v56 = vpop.f32.mrf.mxu3 }
 0x63f   : > { %v930_v57 = vadd.f32 %v1240_v55, %v929_v56 }
 0x641   : > { %v933_v58 = vadd.f32 %v930_v57, %v832_v35 }
 0x643   : > { %v936_v59 = vsel %vm598_vm0, %v933_v58, 0.0 }
 0x644   : > { %937 = vadd.xlane.f32.xlu0 %v936_v59 }
 0x646   : > { %v931_v60 = vpop.f32.mrf.mxu3 }
 0x6b7   : > { %v938_v61 = vpop.xlane.xlu0 %937 }
 0x6b8   : > { %v939_v62 = vmul.f32 %v938_v61, %v1533_v12 }
 0x6ba   : > { %v940_v63 = vsub.f32 %v933_v58, %v939_v62 }
 0x6bc   : > { %v941_v0 = vmul.f32 %v940_v63, %v940_v63 }
 0x6be   : > { %v942_v1 = vsel %vm598_vm0, %v941_v0, 0.0 }
 0x6bf   : > { %943 = vadd.xlane.f32.xlu1 %v942_v1 }
 0x6c0   : > { %1286 = shalt.err (!%p1283_p3)
}
 0x6c1   : > { %s1332_s23 = smov 128   ;;  %s1333_s28 = smov 8   ;;  %v1241_v4 = vld [vmem:[%s1635_s13] ss:$0 sm:$0xff] }
 0x6c2   : > { %1184 = dma.vmem_to_hbm [thread:$0]  (%p1457_p5), %s989_s18, 256, %s991_s19, %s973_s30, %s1332_s23, %s1332_s23, %s1333_s28  }
 0x6c3   : > { %s575_s18 = scalar_lea.vmem %s1637_s15, %s1478_s29 }
 0x732   : > { %v944_v2 = vpop.xlane.xlu1 %943 }
 0x733   : > { %v945_v3 = vmul.f32 %v944_v2, %v1533_v12  ;;  %v1242_v12 = vld [vmem:[%s1636_s14] ss:$0 sm:$0xff] }
 0x735   : > { %v946_v5 = vadd.f32 1e-06, %v945_v3 }
 0x737   : > { %1257 = vrsqrt.f32 %v946_v5  ;;  %vm953_vm14 = vweird.f32 %v946_v5 }
 0x73d   : > { %v1258_v6 = vpop.eup %1257 }
 0x73e   : > { %v948_v7 = vmul.f32 %v1258_v6, %v946_v5  ;;  %vm954_vm13 = vweird.f32 %v1258_v6 }
 0x73f   : > { %vm955_vm15 = vmor %vm953_vm14, %vm954_vm13 }
 0x740   : > { %v949_v8 = vmul.f32 %v1258_v6, %v948_v7 }
 0x742   : > { %v950_v9 = vmul.f32 0.5, %v949_v8 }
 0x744   : > { %v951_v10 = vsub.f32 1.5, %v950_v9 }
 0x746   : > { %v952_v11 = vmul.f32 %v1258_v6, %v951_v10 }
 0x748   : > { %v956_v13 = vsel %vm955_vm15, %v1258_v6, %v952_v11 }
 0x749   : > { %v957_v14 = vmul.f32 %v956_v13, %v940_v63 }
 0x74b   : > { %v961_v15 = vmul.f32 %v1241_v4, %v957_v14 }
 0x74d   : > { %v965_v16 = vadd.f32 %v1242_v12, %v961_v15 }
 0x74f   : > { %v966_v17 = vmul.f32 %v965_v16, %v1550_v33 }
 0x751   : > { %967 = vst.msk [vmem:[%s575_s18] sm:$0xff] %vm598_vm0, %v966_v17 }
 0x752 PF: > { %s1663_s19 = sld [smem:[#allocation5_spill]]  ;;  %p1190_p4 = scmp.ge.s32.totalorder %s1321_s24, 2 }
 0x754   : > { %p1187_p5 = pnand %p1190_p4, %p1461_p6 }
 0x756   : > { %p1188_p7 = pneg %p1187_p5 }
 0x758   : > { %s1012_s30 = sand.u32 1, %s1663_s19  }
 0x759   : > { %s1013_s17 = scalar_lea.sflag [#allocation3], %s1012_s30 }
 0x75a   : > { %1304 = dma.done.wait (%p1188_p7), %s1013_s17, 256  }
 0x75b   : > { %1306 = vsyncadd (%p1188_p7), %s1013_s17, 4294967040  ;;  %s1665_s24 = sld [smem:[#allocation7_spill]]  ;;  %s1668_s21 = smov %s1313_s22 }
 0x75c   : > { %s1666_s1 = sld [smem:[#allocation6_spill]] }
 0x75d   : > { %s1667_s23 = sld [smem:[#allocation8_spill]] }
 0x761   : > { %p27_p8 = scmp.ge.s32.totalorder %s1665_s24, 4  }
 0x762   : > { %s1669_s22 = smov %s1666_s1 }
 0x763   :  { %29 = sbr.rel (!%p27_p8) target bundleno = 9 (0x9), region = 137 }
 0x768   :  { %1019 = vsyncpa [#allocation3], 1 }
 0x769   :  { %1021 = vsyncpa [#allocation3 + $0x1], 1 }

// kernel: star_forward.16
= control target key start
LH: loop header
LB: loop body
LE: loop exit
PB: predicated region body
PF: predicated region fallthrough
CT: control target
= control target key end

     0   :  { %s1088_s25 = smov 0   ;;  %s1198_s0 = inlined_call_operand.vmem [shape: f32[2,8,32], index: 0, kind: input, shape index: {}]   ;;  %s1199_s1 = inlined_call_operand.vmem [shape: f32[2,8,1], index: 1, kind: input, shape index: {}]   ;;  %s1200_s2 = inlined_call_operand.vmem [shape: bf16[32,96], index: 2, kind: input, shape index: {}]   ;;  %s1201_s3 = inlined_call_operand.vmem [shape: bf16[32,32], index: 3, kind: input, shape index: {}]   ;;  %s1202_s4 = inlined_call_operand.vmem [shape: f32[1,32], index: 4, kind: input, shape index: {}]   ;;  %s1203_s5 = inlined_call_operand.vmem [shape: f32[1,32], index: 5, kind: input, shape index: {}, may-alias: {5,11}]   ;;  %s1204_s6 = inlined_call_operand.vmem [shape: f32[1,32], index: 6, kind: input, shape index: {}, may-alias: {6,12}]   ;;  %s1205_s7 = inlined_call_operand.vmem [shape: bf16[32,64], index: 7, kind: input, shape index: {}]   ;;  %s1206_s8 = inlined_call_operand.vmem [shape: f32[1,64], index: 8, kind: input, shape index: {}]   ;;  %s1207_s9 = inlined_call_operand.vmem [shape: bf16[64,32], index: 9, kind: input, shape index: {}]   ;;  %s1208_s10 = inlined_call_operand.vmem [shape: f32[1,32], index: 10, kind: input, shape index: {}]   ;;  %s1209_s11 = inlined_call_operand.vmem [shape: f32[1,32], index: 11, kind: input, shape index: {}, may-alias: {5,11}]   ;;  %s1210_s12 = inlined_call_operand.vmem [shape: f32[1,32], index: 12, kind: input, shape index: {}, may-alias: {6,12}]   ;;  %s1211_s13 = inlined_call_operand.vmem [shape: f32[2,8,32], index: 13, kind: output, shape index: {}]  }
   0x1 LB: > { %s893_s26 = sadd.s32 4294967295, %s1008_s25   ;;  %p897_p0 = scmp.ge.s32.totalorder %s1008_s25, 1  ;;  %s1008_s25 = sphi %s1088_s25, %s23_s25  }
   0x2   : > { %p395_p1 = scmp.lt.s32.totalorder %s1008_s25, 3 }
   0x4   : > { %p396_p2 = pnand %p897_p0, %p395_p1 }
   0x5   : > { %p441_p3 = scmp.lt.s32.totalorder (!%p396_p2), %s893_s26, 1  ;;  %s1010_s18 = smov (!%p396_p2), 112  }
   0x6   : > { %399 = sbr.rel (%p396_p2) target bundleno = 1854 (0x73e), region = 72  ;;  %s1011_s19 = smov (!%p396_p2), 96  }
   0x7   : > { %s1012_s20 = smov (!%p396_p2), 80   ;;  %s1013_s21 = smov (!%p396_p2), 64  }
   0x8   : > { %s1014_s22 = smov (!%p396_p2), 48   ;;  %s1015_s28 = smov (!%p396_p2), 16  }
   0xb   : > { %v952_v0 = vld [vmem:[%s1200_s2 + $0x8] sm:$0xff]  ;;  %v951_v1 = vld [vmem:[%s1200_s2] sm:$0xff]  ;;  %s1213_s26 = smov (!%p441_p3, %s893_s26), 1  ;;  %vm473_vm0 = vcmask 261120   ;;  %vm494_vm1 = vcmask 130048   ;;  %vm532_vm2 = vcmask 1043456  }
   0xc   : > { %483 = vmatpush.bf16.msra.mxu0 %v952_v0  ;;  %s1102_s14 = sshll.u32 %s1213_s26, 3  ;;  %vm514_vm3 = vcmask 64512   ;;  %v954_v40 = vld [vmem:[%s1201_s3 + $0x8] sm:$0xff]  ;;  %v953_v41 = vld [vmem:[%s1201_s3] sm:$0xff]  ;;  %v1016_v55 = vmov 32.0   ;;  %v1017_v57 = vmov 0  }
   0xd   : > { %s444_s17 = scalar_lea.vmem %s1198_s0, %s1102_s14  ;;  %v979_v49 = vld [vmem:[%s1202_s4] ss:$0 sm:$0xff]  ;;  %977 = vset.pattern.permute.xlu1 %v1017_v57  ;;  %978 = vset.pattern.permute.xlu0 %v1017_v57  ;;  %vm776_vm8 = vcmask 523264   ;;  %s452_s30 = scalar_lea.vmem %s1211_s13, %s1102_s14 }
   0xe   : > { %v1108_v2 = vld [vmem:[%s444_s17] sm:$0xff]  ;;  %s448_s17 = scalar_lea.vmem %s1199_s1, %s1102_s14 }
   0xf   : > { %v456_v3 = vpack.c.bf16 %v1108_v2, %v1108_v2  ;;  %v455_v56 = vld [vmem:[%s448_s17] sm:$0xff] }
  0x10   : > { %484 = vmatpush.bf16.msra.mxu0 %v951_v1 }
  0x13   : > { %909 = vmatmul.msk.bf16.vlgmr.msra.gmra.mxu0 %vm473_vm0, %v456_v3 }
  0x14   : > { %640 = vmatpush.bf16.msrb.mxu0 %v954_v40 }
  0x18   : > { %641 = vmatpush.bf16.msrb.mxu0 %v953_v41 }
  0x90   : > { %v486_v4 = vpop.f32.mrf.mxu0 }
  0x91   : > { %v490_v5 = vpack.c.bf16 %v486_v4, %v486_v4 }
  0x93   : > { %549 = vrot.lane.b32.xlu1 %v490_v5, %s1010_s18  ;;  %492 = vrot.lane.b32.xlu0 %v490_v5, %s1011_s19 }
  0x98   : > { %v488_v6 = vpop.f32.mrf.mxu0 }
  0x99   : > { %v955_v6 = vld [vmem:[%s1205_s7] sm:$0xff] }
  0x9b   : > { %551 = vrot.lane.b32.xlu0 %v490_v5, %s1012_s20 }
  0xa3   : > { %527 = vrot.lane.b32.xlu0 %v490_v5, %s1013_s21 }
  0xab   : > { %584 = vrot.lane.b32.xlu0 %v490_v5, %s1014_s22 }
 0x105   : > { %v493_v7 = vpop.permute.xlu0 %492  ;;  %v550_v11 = vpop.permute.xlu1 %549 }
 0x106   : > { %v499_v8 = vsel %vm494_vm1, %v493_v7, 0 }
 0x107   : > { %508 = vmatpush.bf16.xpose.msra.mxu1 %v499_v8 }
 0x10d   : > { %v552_v9 = vpop.permute.xlu0 %551 }
 0x10e   : > { %910 = vmatmul.msk.bf16.vlgmr.msra.gmra.mxu1 %vm494_vm1, %v490_v5  ;;  %v557_v10 = vsel %vm494_vm1, %v552_v9, 0  ;;  %v956_v5 = vld [vmem:[%s1205_s7 + $0x8] sm:$0xff] }
 0x10f   : > { %566 = vmatpush.bf16.xpose.msra.mxu3 %v557_v10  ;;  %723 = vmatpush.bf16.msrb.mxu1 %v956_v5 }
 0x113   : > { %724 = vmatpush.bf16.msrb.mxu1 %v955_v6 }
 0x115   : > { %v528_v12 = vpop.permute.xlu0 %527 }
 0x116   : > { %912 = vmatmul.msk.bf16.vlgmr.msra.gmra.mxu3 %vm494_vm1, %v550_v11  ;;  %v534_v13 = vsel %vm532_vm2, %v528_v12, 0 }
 0x117   : > { %543 = vmatpush.bf16.msra.mxu2 %v534_v13 }
 0x11d   : > { %v585_v14 = vpop.permute.xlu0 %584 }
 0x11e   : > { %v590_v15 = vsel %vm532_vm2, %v585_v14, 0 }
 0x11f   : > { %599 = vmatpush.bf16.msrb.mxu2 %v590_v15 }
 0x18b   : > { %v510_v16 = vpop.f32.mrf.mxu1 }
 0x18c   : > { %v515_v17 = vsel %vm514_vm3, %v510_v16, -inf }
 0x18d   : > { %516 = vmax.xlane.f32.xlu1 %v515_v17 }
 0x193   : > { %v512_v18 = vpop.f32.mrf.mxu1 }
 0x194   : > { %v981_v18 = vld [vmem:[%s1204_s6] ss:$0 sm:$0xff] }
 0x199   : > { %v568_v19 = vpop.f32.mrf.mxu3 }
 0x19a   : > { %v572_v20 = vsel %vm514_vm3, %v568_v19, -inf }
 0x19b   : > { %573 = vmax.xlane.f32.xlu2 %v572_v20 }
 0x1a1   : > { %v570_v21 = vpop.f32.mrf.mxu3 }
 0x1a6   : > { %689 = vperm.xlu1 %977, %v455_v56  }
 0x200   : > { %v517_v22 = vpop.xlane.xlu1 %516 }
 0x201   : > { %v518_v23 = vsub.f32 %v510_v16, %v517_v22  ;;  %v980_v16 = vld [vmem:[%s1203_s5] ss:$0 sm:$0xff] }
 0x203   : > { %v519_v24 = vmul.f32 1.442695, %v518_v23 }
 0x205   : > { %986 = vpow2.f32 %v519_v24 }
 0x20b   : > { %v987_v25 = vpop.eup %986 }
 0x20c   : > { %v521_v26 = vsel %vm514_vm3, %v987_v25, 0.0 }
 0x20d   : > { %522 = vadd.xlane.f32.xlu2 %v521_v26  ;;  %v959_v26 = vld [vmem:[%s1207_s9 + $0x10] sm:$0xff] }
 0x20e   : > { %v574_v27 = vpop.xlane.xlu2 %573 }
 0x20f   : > { %v575_v28 = vsub.f32 %v568_v19, %v574_v27  ;;  %v958_v27 = vld [vmem:[%s1207_s9 + $0x8] sm:$0xff] }
 0x211   : > { %v576_v29 = vmul.f32 1.442695, %v575_v28  ;;  %v957_v28 = vld [vmem:[%s1207_s9] sm:$0xff] }
 0x213   : > { %988 = vpow2.f32 %v576_v29  ;;  %v982_v29 = vld [vmem:[%s1206_s8] ss:$0 sm:$0xff] }
 0x218   : > { %v1157_v21 = vpop.permute.xlu1 %689 }
 0x219   : > { %v989_v30 = vpop.eup %988 }
 0x21a   : > { %v578_v31 = vsel %vm514_vm3, %v989_v30, 0.0 }
 0x21b   : > { %579 = vadd.xlane.f32.xlu2 %v578_v31 }
 0x280   : > { %v523_v32 = vpop.xlane.xlu2 %522 }
 0x281   : > { %990 = vrcp.f32 %v523_v32 }
 0x287   : > { %v991_v33 = vpop.eup %990 }
 0x288   : > { %v525_v34 = vmul.f32 %v991_v33, %v987_v25  ;;  %v960_v25 = vld [vmem:[%s1207_s9 + $0x18] sm:$0xff] }
 0x289   : > { %784 = vmatpush.bf16.msrb.mxu3 %v960_v25 }
 0x28a   : > { %v526_v35 = vpack.c.bf16 %v525_v34, %v525_v34 }
 0x28c   : > { %911 = vmatmul.msk.bf16.vlgmr.msra.gmra.mxu2 %vm514_vm3, %v526_v35 }
 0x28d   : > { %785 = vmatpush.bf16.msrb.mxu3 %v959_v26 }
 0x28e   : > { %v580_v36 = vpop.xlane.xlu2 %579 }
 0x28f   : > { %992 = vrcp.f32 %v580_v36 }
 0x290   : > { %994 = vrcp.f32 %v1016_v55 }
 0x291   : > { %786 = vmatpush.bf16.msrb.mxu3 %v958_v27 }
 0x295   : > { %v993_v37 = vpop.eup %992  ;;  %787 = vmatpush.bf16.msrb.mxu3 %v957_v28 }
 0x296   : > { %v582_v38 = vmul.f32 %v993_v37, %v989_v30  ;;  %v995_v58 = vpop.eup %994 }
 0x297   : > { %v654_v59 = vmul.f32 32.0, %v995_v58  ;;  %vm658_vm4 = vweird.f32 %v995_v58 }
 0x298   : > { %v583_v39 = vpack.c.bf16 %v582_v38, %v582_v38 }
 0x299   : > { %v655_v60 = vsub.f32 1.0, %v654_v59 }
 0x29b   : > { %v656_v61 = vmul.f32 %v995_v58, %v655_v60 }
 0x29c   : > { %913 = vmatmul.msk.bf16.vlgmr.msrb.gmra.mxu2 %vm514_vm3, %v583_v39 }
 0x29d   : > { %v657_v62 = vadd.f32 %v995_v58, %v656_v61 }
 0x29f   : > { %v1140_v63 = vsel %vm658_vm4, %v995_v58, %v657_v62 }
 0x30f   : > { %v545_v42 = vpop.f32.mrf.mxu2 }
 0x317   : > { %v547_v43 = vpop.f32.mrf.mxu2 }
 0x318   : > { %v983_v43 = vld [vmem:[%s1208_s10] ss:$0 sm:$0xff] }
 0x31f   : > { %v601_v44 = vpop.f32.mrf.mxu2 }
 0x320   : > { %606 = vrot.lane.b32.xlu2 %v601_v44, %s1015_s28 }
 0x327   : > { %v603_v45 = vpop.f32.mrf.mxu2 }
 0x37a   : > { %v607_v46 = vpop.permute.xlu2 %606 }
 0x37b   : > { %v609_v47 = vsel %vm494_vm1, %v545_v42, %v607_v46 }
 0x37c   : > { %v610_v48 = vpack.c.bf16 %v609_v47, %v609_v47 }
 0x37e   : > { %922 = vmatmul.msk.bf16.vlgmr.msrb.gmra.mxu0 %vm473_vm0, %v610_v48 }
 0x3fb   : > { %v643_v50 = vpop.f32.mrf.mxu0 }
 0x3fc   : > { %v644_v51 = vadd.f32 %v979_v49, %v643_v50 }
 0x3fe   : > { %v647_v52 = vadd.f32 %v644_v51, %v1108_v2 }
 0x400   : > { %v650_v53 = vsel %vm473_vm0, %v647_v52, 0.0 }
 0x401   : > { %651 = vadd.xlane.f32.xlu0 %v650_v53 }
 0x403   : > { %v645_v54 = vpop.f32.mrf.mxu0 }
 0x474   : > { %v652_v0 = vpop.xlane.xlu0 %651 }
 0x475   : > { %v660_v1 = vmul.f32 %v1140_v63, %v652_v0  ;;  %v984_v0 = vld [vmem:[%s1209_s11] ss:$0 sm:$0xff] }
 0x477   : > { %v661_v2 = vsub.f32 %v647_v52, %v660_v1 }
 0x479   : > { %v662_v3 = vmul.f32 %v661_v2, %v661_v2 }
 0x47b   : > { %v663_v4 = vsel %vm473_vm0, %v662_v3, 0.0 }
 0x47c   : > { %664 = vadd.xlane.f32.xlu2 %v663_v4 }
 0x4ef   : > { %v665_v7 = vpop.xlane.xlu2 %664 }
 0x4f0   : > { %v666_v8 = vmul.f32 %v665_v7, %v1140_v63 }
 0x4f2   : > { %v667_v9 = vadd.f32 1e-06, %v666_v8 }
 0x4f4   : > { %996 = vrsqrt.f32 %v667_v9  ;;  %vm674_vm6 = vweird.f32 %v667_v9 }
 0x4fa   : > { %v997_v10 = vpop.eup %996 }
 0x4fb   : > { %v669_v11 = vmul.f32 %v997_v10, %v667_v9  ;;  %vm675_vm5 = vweird.f32 %v997_v10 }
 0x4fc   : > { %vm676_vm7 = vmor %vm674_vm6, %vm675_vm5 }
 0x4fd   : > { %v670_v12 = vmul.f32 %v997_v10, %v669_v11 }
 0x4ff   : > { %v671_v13 = vmul.f32 0.5, %v670_v12 }
 0x501   : > { %v672_v14 = vsub.f32 1.5, %v671_v13 }
 0x503   : > { %v673_v15 = vmul.f32 %v997_v10, %v672_v14 }
 0x505   : > { %v677_v17 = vsel %vm676_vm7, %v997_v10, %v673_v15 }
 0x506   : > { %v678_v19 = vmul.f32 %v677_v17, %v661_v2 }
 0x508   : > { %v682_v20 = vmul.f32 %v980_v16, %v678_v19 }
 0x50a   : > { %v686_v22 = vadd.f32 %v981_v18, %v682_v20 }
 0x50c   : > { %v692_v23 = vmul.f32 %v1157_v21, %v686_v22 }
 0x50e   : > { %v693_v24 = vpack.c.bf16 %v692_v23, %v692_v23 }
 0x510   : > { %931 = vmatmul.msk.bf16.vlgmr.msrb.gmra.mxu1 %vm473_vm0, %v693_v24 }
 0x58d   : > { %v726_v30 = vpop.f32.mrf.mxu1 }
 0x58e   : > { %v727_v31 = vadd.f32 %v982_v29, %v726_v30 }
 0x590   : > { %v731_v32 = vmul.f32 0.044715, %v727_v31  ;;  %v730_v39 = vmul.f32 0.5, %v727_v31 }
 0x592   : > { %v732_v33 = vmul.f32 %v731_v32, %v727_v31 }
 0x594   : > { %v733_v34 = vmul.f32 %v732_v33, %v727_v31 }
 0x595   : > { %v728_v35 = vpop.f32.mrf.mxu1 }
 0x596   : > { %v734_v36 = vadd.f32 %v733_v34, %v727_v31 }
 0x598   : > { %v735_v37 = vmul.f32 0.7978846, %v734_v36 }
 0x59a   : > { %998 = vtanh.f32 %v735_v37 }
 0x5a0   : > { %v999_v38 = vpop.eup %998 }
 0x5a1   : > { %v737_v40 = vadd.f32 1.0, %v999_v38 }
 0x5a3   : > { %v738_v41 = vmul.f32 %v737_v40, %v730_v39 }
 0x5a5   : > { %v739_v42 = vpack.c.bf16 %v738_v41, %v738_v41 }
 0x5a7   : > { %948 = vmatmul.msk.bf16.vlgmr.msrb.gmra.mxu3 %vm776_vm8, %v739_v42 }
 0x62a   : > { %v789_v44 = vpop.f32.mrf.mxu3 }
 0x62b   : > { %v790_v45 = vadd.f32 %v983_v43, %v789_v44 }
 0x62d   : > { %v793_v46 = vadd.f32 %v790_v45, %v692_v23 }
 0x62f   : > { %v796_v47 = vsel %vm473_vm0, %v793_v46, 0.0 }
 0x630   : > { %797 = vadd.xlane.f32.xlu0 %v796_v47 }
 0x632   : > { %v791_v48 = vpop.f32.mrf.mxu3 }
 0x6a3   : > { %v798_v49 = vpop.xlane.xlu0 %797 }
 0x6a4   : > { %v799_v50 = vmul.f32 %v798_v49, %v1140_v63 }
 0x6a6   : > { %v800_v51 = vsub.f32 %v793_v46, %v799_v50 }
 0x6a8   : > { %v801_v52 = vmul.f32 %v800_v51, %v800_v51 }
 0x6aa   : > { %v802_v53 = vsel %vm473_vm0, %v801_v52, 0.0 }
 0x6ab   : > { %803 = vadd.xlane.f32.xlu1 %v802_v53 }
 0x71e   : > { %v804_v54 = vpop.xlane.xlu1 %803 }
 0x71f   : > { %v805_v55 = vmul.f32 %v804_v54, %v1140_v63  ;;  %v985_v63 = vld [vmem:[%s1210_s12] ss:$0 sm:$0xff] }
 0x721   : > { %v806_v56 = vadd.f32 1e-06, %v805_v55 }
 0x723   : > { %1000 = vrsqrt.f32 %v806_v56  ;;  %vm813_vm10 = vweird.f32 %v806_v56 }
 0x729   : > { %v1001_v57 = vpop.eup %1000 }
 0x72a   : > { %v808_v58 = vmul.f32 %v1001_v57, %v806_v56  ;;  %vm814_vm9 = vweird.f32 %v1001_v57 }
 0x72b   : > { %vm815_vm11 = vmor %vm813_vm10, %vm814_vm9 }
 0x72c   : > { %v809_v59 = vmul.f32 %v1001_v57, %v808_v58 }
 0x72e   : > { %v810_v60 = vmul.f32 0.5, %v809_v59 }
 0x730   : > { %v811_v61 = vsub.f32 1.5, %v810_v60 }
 0x732   : > { %v812_v62 = vmul.f32 %v1001_v57, %v811_v61 }
 0x734   : > { %v816_v1 = vsel %vm815_vm11, %v1001_v57, %v812_v62 }
 0x735   : > { %v817_v2 = vmul.f32 %v816_v1, %v800_v51 }
 0x737   : > { %v821_v3 = vmul.f32 %v984_v0, %v817_v2 }
 0x739   : > { %v825_v4 = vadd.f32 %v985_v63, %v821_v3 }
 0x73b   : > { %v826_v5 = vmul.f32 %v825_v4, %v1157_v21 }
 0x73d   : > { %827 = vst.msk [vmem:[%s452_s30] sm:$0xff] %vm473_vm0, %v826_v5 }
 0x73e PF: > { %s23_s25 = sadd.s32 1, %s1008_s25  }
 0x73f   : > { %p20_p4 = scmp.ge.s32.totalorder %s23_s25, 4  }
 0x741   :  { %22 = sbr.rel (!%p20_p4) target bundleno = 1 (0x1), region = 105 }

// kernel: star_forward.17
= control target key start
LH: loop header
LB: loop body
LE: loop exit
PB: predicated region body
PF: predicated region fallthrough
CT: control target
= control target key end

     0   :  { %s1451_s0 = inlined_call_operand.vmem [shape: f32[2,8,32], index: 0, kind: input, shape index: {}]   ;;  %s1452_s1 = inlined_call_operand.vmem [shape: f32[2,8,1], index: 1, kind: input, shape index: {}]   ;;  %s1453_s2 = inlined_call_operand.vmem [shape: f32[2,1,8], index: 2, kind: input, shape index: {}]   ;;  %s1454_s3 = inlined_call_operand.vmem [shape: bf16[32,96], index: 3, kind: input, shape index: {}]   ;;  %s1455_s4 = inlined_call_operand.vmem [shape: bf16[32,32], index: 4, kind: input, shape index: {}]   ;;  %s1456_s5 = inlined_call_operand.vmem [shape: f32[1,32], index: 5, kind: input, shape index: {}]   ;;  %s1457_s6 = inlined_call_operand.vmem [shape: f32[1,32], index: 6, kind: input, shape index: {}, may-alias: {6,12}]   ;;  %s1458_s7 = inlined_call_operand.vmem [shape: f32[1,32], index: 7, kind: input, shape index: {}, may-alias: {7,13}]   ;;  %s1459_s8 = inlined_call_operand.vmem [shape: bf16[32,64], index: 8, kind: input, shape index: {}]   ;;  %s1460_s9 = inlined_call_operand.vmem [shape: f32[1,64], index: 9, kind: input, shape index: {}]   ;;  %s1461_s10 = inlined_call_operand.vmem [shape: bf16[64,32], index: 10, kind: input, shape index: {}]   ;;  %s1462_s11 = inlined_call_operand.vmem [shape: f32[1,32], index: 11, kind: input, shape index: {}]   ;;  %s1463_s12 = inlined_call_operand.vmem [shape: f32[1,32], index: 12, kind: input, shape index: {}, may-alias: {6,12}]   ;;  %s1464_s13 = inlined_call_operand.vmem [shape: f32[1,32], index: 13, kind: input, shape index: {}, may-alias: {7,13}]   ;;  %s1465_s14 = inlined_call_operand.hbm [shape: f32[2,8,32], index: 14, kind: output, shape index: {}]  }
   0x1   :  { %1467 = sst [smem:[#allocation7_spill]] %s1451_s0 }
   0x2   :  { %1468 = sst [smem:[#allocation8_spill]] %s1452_s1 }
   0x3   :  { %1469 = sst [smem:[#allocation9_spill]] %s1453_s2 }
   0x4   :  { %19 = vsyncpa [#allocation3], 0 }
   0x5   :  { %21 = vsyncpa [#allocation3 + $0x1], 0  ;;  %s1267_s29 = smov 0   ;;  %s1269_s30 = smov 0  }
   0x6   :  { %s1271_s15 = smov 0   ;;  %s1273_s16 = smov 0  }
   0x7 LB: > { %1470 = sst [smem:[#allocation5_spill]] %s1177_s15  ;;  %s1288_s17 = sadd.s32 4294967295, %s1181_s16   ;;  %s1181_s16 = sphi %s1273_s16, %s1481_s16   ;;  %s1177_s15 = sphi %s1271_s15, %s1478_s15   ;;  %s1173_s30 = sphi %s1269_s30, %s1480_s30   ;;  %s1169_s29 = sphi %s1267_s29, %s1479_s29  }
   0x8   : > { %s977_s18 = sadd.s32 4294967294, %s1181_s16   ;;  %s1292_s19 = sadd.s32 1, %s1181_s16  }
   0x9   : > { %s343_s20 = sadd.s32 1, %s1177_s15  ;;  %s340_s21 = ssub.s32 %s1181_s16, %s1292_s19 }
   0xa   : > { %p353_p0 = scmp.ne.s32.totalorder %s1177_s15, %s1173_s30  ;;  %p341_p1 = scmp.eq.s32.totalorder %s340_s21, 0 }
   0xb   : > { %p354_p2 = scmp.eq.s32.totalorder %s1288_s17, 1  ;;  %p359_p3 = scmp.ne.s32.totalorder %s1173_s30, %s1169_s29 }
   0xc   : > { %p360_p4 = scmp.eq.s32.totalorder %s977_s18, 1  ;;  %p980_p7 = scmp.ge.s32.totalorder %s1181_s16, 1 }
   0xd   : > { %s1303_s22 = scalar_select %p341_p1, %s1177_s15, %s343_s20  }
   0xe   : > { %p1305_p5 = por %p354_p2, %p353_p0  ;;  %p1309_p6 = por %p360_p4, %p359_p3 }
   0xf   : > { %1471 = sst [smem:[#allocation6_spill]] %s1303_s22  ;;  %p431_p8 = scmp.lt.s32.totalorder %s1181_s16, 3 }
  0x11   : > { %p432_p9 = pnand %p980_p7, %p431_p8 }
  0x12   : > { %p483_p10 = scmp.lt.s32.totalorder (!%p432_p9), %s1288_s17, 1  ;;  %s1474_s0 = sld [smem:[#allocation7_spill]] (!%p432_p9) }
  0x13   : > { %435 = sbr.rel (%p432_p9) target bundleno = 1871 (0x74f), region = 76  ;;  %s1183_s25 = smov (!%p432_p9), 112  }
  0x14   : > { %s1184_s26 = smov (!%p432_p9), 96   ;;  %s1185_s27 = smov (!%p432_p9), 80  }
  0x15   : > { %s1186_s22 = smov (!%p432_p9), 64   ;;  %s1187_s28 = smov (!%p432_p9), 48  }
  0x16   : > { %s1475_s2 = sld [smem:[#allocation9_spill]] (!%p432_p9) }
  0x17   : > { %s1476_s1 = sld [smem:[#allocation8_spill]] (!%p432_p9) }
  0x18   : > { %v1037_v0 = vld [vmem:[%s1454_s3 + $0x8] sm:$0xff]  ;;  %v1036_v1 = vld [vmem:[%s1454_s3] sm:$0xff]  ;;  %s1323_s18 = scalar_select %p483_p10, %s1288_s17, 1  ;;  %vm514_vm0 = vcmask 261120   ;;  %v1188_v7 = vmov 0   ;;  %vm547_vm1 = vcmask 130048   ;;  %v532_v18 = vlaneseq }
  0x19   : > { %524 = vmatpush.bf16.msra.mxu0 %v1037_v0  ;;  %1094 = vset.pattern.permute.xlu1 %v1188_v7  ;;  %vm585_vm2 = vcmask 1043456   ;;  %v1189_v23 = vmov 0.0   ;;  %vm567_vm7 = vcmask 64512   ;;  %v1039_v51 = vld [vmem:[%s1455_s4 + $0x8] sm:$0xff]  ;;  %v1038_v52 = vld [vmem:[%s1455_s4] sm:$0xff]  ;;  %vm829_vm12 = vcmask 523264  }
  0x1a   : > { %s982_s20 = sshll.u32 %s1323_s18, 3  ;;  %1095 = vset.pattern.permute.xlu0 %v1188_v7  ;;  %v533_v20 = vshrl.u32 %v532_v18, 7  ;;  %v535_v21 = vand.u32 127, %v532_v18  ;;  %v1096_v60 = vld [vmem:[%s1456_s5] ss:$0 sm:$0xff] }
  0x1b   : > { %s486_s15 = scalar_lea.vmem %s1474_s0, %s982_s20  ;;  %s480_s0 = sand.u32 1, %s1173_s30  }
  0x1c   : > { %v1331_v2 = vld [vmem:[%s486_s15] sm:$0xff]  ;;  %vm536_vm4 = vcmp.gt.s32.totalorder %v535_v21, %v533_v20  ;;  %s1190_s15 = smov 16  }
  0x1d   : > { %525 = vmatpush.bf16.msra.mxu0 %v1036_v1  ;;  %v497_v3 = vpack.c.bf16 %v1331_v2, %v1331_v2 }
  0x20   : > { %992 = vmatmul.msk.bf16.vlgmr.msra.gmra.mxu0 %vm514_vm0, %v497_v3  ;;  %v1191_v3 = vmov 32.0  }
  0x21   : > { %693 = vmatpush.bf16.msrb.mxu0 %v1039_v51 }
  0x25   : > { %694 = vmatpush.bf16.msrb.mxu0 %v1038_v52 }
  0x9d   : > { %v527_v4 = vpop.f32.mrf.mxu0 }
  0x9e   : > { %v543_v5 = vpack.c.bf16 %v527_v4, %v527_v4 }
  0xa0   : > { %602 = vrot.lane.b32.xlu1 %v543_v5, %s1183_s25  ;;  %545 = vrot.lane.b32.xlu0 %v543_v5, %s1184_s26  ;;  %s493_s25 = scalar_lea.vmem %s1475_s2, %s1323_s18 }
  0xa1   : > { %v531_v17 = vld [vmem:[%s493_s25] sm:$0x1] }
  0xa2   : > { %vm537_vm3 = vcmp.gt.f32.partialorder %v531_v17, 0.5 }
  0xa3   : > { %v538_v19 = vsel %vm537_vm3, 1, %v1188_v7 }
  0xa4   : > { %v539_v22 = vperm.slane %v538_v19, 0 }
  0xa5   : > { %v529_v6 = vpop.f32.mrf.mxu0 }
  0xa6   : > { %vm540_vm5 = vcmp.eq.s32.totalorder %v539_v22, 1 }
  0xa7   : > { %vm541_vm6 = vmor %vm536_vm4, %vm540_vm5 }
  0xa8   : > { %604 = vrot.lane.b32.xlu0 %v543_v5, %s1185_s27  ;;  %v542_v24 = vsel %vm541_vm6, -1e+09, %v1189_v23 }
  0xb0   : > { %580 = vrot.lane.b32.xlu0 %v543_v5, %s1186_s22  ;;  %s490_s22 = scalar_lea.vmem %s1476_s1, %s982_s20  ;;  %s981_s20 = sshll.u32 %s480_s0, 3 }
  0xb1   : > { %v496_v4 = vld [vmem:[%s490_s22] sm:$0xff]  ;;  %s482_s1 = scalar_lea.vmem [#allocation2], %s981_s20  ;;  %s1139_s20 = scalar_lea.hbm %s1465_s14, 16 }
  0xb2   : > { %s894_s2 = sshll.u32 %s482_s1, 4  ;;  %s895_s2 = int_to_ptr.vmem [resolvable:$true] %s894_s2 }
  0xb8   : > { %637 = vrot.lane.b32.xlu0 %v543_v5, %s1187_s28  ;;  %s1033_s28 = sshll.u32 %s1288_s17, 3 }
  0xb9   : > { %s892_s18 = scalar_lea.hbm %s1465_s14, %s1033_s28 }
  0xba   : > { %s896_s17 = sshll.u32 %s892_s18, 4  ;;  %s897_s17 = int_to_ptr.hbm [resolvable:$true] %s896_s17 }
  0xbb   : > { %s1133_s21 = sshra.s32 %s897_s17, 4  ;;  %s1134_s21 = int_to_ptr.hbm [resolvable:$true] %s1133_s21 }
  0xbc   : > { %s1135_s25 = scalar_lea.hbm %s1134_s21, 8  ;;  %p1140_p0 = scmp.lt.s32.totalorder %s1134_s21, %s1465_s14 }
  0xbd   : > { %p1136_p11 = scmp.ne.s32.totalorder %s1134_s21, %s1135_s25  ;;  %p1141_p1 = scmp.lt.s32.totalorder %s1139_s20, %s1135_s25 }
  0xbf   : > { %p1137_p12 = pnand %p1136_p11, %p1305_p5  ;;  %p1142_p2 = por %p1141_p1, %p1140_p0 }
  0xc1   : > { %p1138_p13 = pneg %p1137_p12 }
  0xc3   : > { %p1143_p3 = pnand %p1142_p2, %p1138_p13 }
 0x112   : > { %v546_v8 = vpop.permute.xlu0 %545  ;;  %v603_v12 = vpop.permute.xlu1 %602 }
 0x113   : > { %v552_v9 = vsel %vm547_vm1, %v546_v8, 0 }
 0x114   : > { %561 = vmatpush.bf16.xpose.msra.mxu1 %v552_v9 }
 0x11a   : > { %v605_v10 = vpop.permute.xlu0 %604 }
 0x11b   : > { %993 = vmatmul.msk.bf16.vlgmr.msra.gmra.mxu1 %vm547_vm1, %v543_v5  ;;  %v610_v11 = vsel %vm547_vm1, %v605_v10, 0 }
 0x11c   : > { %619 = vmatpush.bf16.xpose.msra.mxu3 %v610_v11 }
 0x122   : > { %v581_v13 = vpop.permute.xlu0 %580 }
 0x123   : > { %995 = vmatmul.msk.bf16.vlgmr.msra.gmra.mxu3 %vm547_vm1, %v603_v12  ;;  %v587_v14 = vsel %vm585_vm2, %v581_v13, 0 }
 0x124   : > { %596 = vmatpush.bf16.msra.mxu2 %v587_v14 }
 0x12a   : > { %v638_v15 = vpop.permute.xlu0 %637 }
 0x12b   : > { %v643_v16 = vsel %vm585_vm2, %v638_v15, 0  ;;  %v1041_v15 = vld [vmem:[%s1459_s8 + $0x8] sm:$0xff] }
 0x12c   : > { %652 = vmatpush.bf16.msrb.mxu2 %v643_v16  ;;  %776 = vmatpush.bf16.msrb.mxu1 %v1041_v15  ;;  %v1040_v16 = vld [vmem:[%s1459_s8] sm:$0xff] }
 0x130   : > { %777 = vmatpush.bf16.msrb.mxu1 %v1040_v16 }
 0x198   : > { %v563_v25 = vpop.f32.mrf.mxu1 }
 0x199   : > { %v564_v26 = vadd.f32 %v563_v25, %v542_v24 }
 0x19b   : > { %v568_v27 = vsel %vm567_vm7, %v564_v26, -inf }
 0x19c   : > { %569 = vmax.xlane.f32.xlu1 %v568_v27 }
 0x1a0   : > { %v565_v28 = vpop.f32.mrf.mxu1 }
 0x1a1   : > { %v1098_v28 = vld [vmem:[%s1458_s7] ss:$0 sm:$0xff] }
 0x1a6   : > { %v621_v29 = vpop.f32.mrf.mxu3 }
 0x1a7   : > { %v622_v30 = vadd.f32 %v621_v29, %v542_v24 }
 0x1a9   : > { %v625_v31 = vsel %vm567_vm7, %v622_v30, -inf }
 0x1aa   : > { %626 = vmax.xlane.f32.xlu2 %v625_v31 }
 0x1ae   : > { %v623_v32 = vpop.f32.mrf.mxu3 }
 0x1b5   : > { %742 = vperm.xlu1 %1094, %v496_v4  }
 0x20f   : > { %v570_v33 = vpop.xlane.xlu1 %569 }
 0x210   : > { %v571_v34 = vsub.f32 %v564_v26, %v570_v33  ;;  %v1097_v26 = vld [vmem:[%s1457_s6] ss:$0 sm:$0xff] }
 0x212   : > { %v572_v35 = vmul.f32 1.442695, %v571_v34 }
 0x214   : > { %1103 = vpow2.f32 %v572_v35  ;;  %v1045_v35 = vld [vmem:[%s1461_s10 + $0x18] sm:$0xff] }
 0x215   : > { %837 = vmatpush.bf16.msrb.mxu3 %v1045_v35 }
 0x21a   : > { %v1104_v36 = vpop.eup %1103 }
 0x21b   : > { %v574_v37 = vsel %vm567_vm7, %v1104_v36, 0.0 }
 0x21c   : > { %575 = vadd.xlane.f32.xlu2 %v574_v37  ;;  %v1043_v37 = vld [vmem:[%s1461_s10 + $0x8] sm:$0xff] }
 0x21d   : > { %v627_v38 = vpop.xlane.xlu2 %626 }
 0x21e   : > { %v628_v39 = vsub.f32 %v622_v30, %v627_v38  ;;  %v1042_v38 = vld [vmem:[%s1461_s10] sm:$0xff] }
 0x220   : > { %v629_v40 = vmul.f32 1.442695, %v628_v39  ;;  %v1099_v39 = vld [vmem:[%s1460_s9] ss:$0 sm:$0xff] }
 0x222   : > { %1105 = vpow2.f32 %v629_v40 }
 0x227   : > { %v1385_v31 = vpop.permute.xlu1 %742 }
 0x228   : > { %v1106_v41 = vpop.eup %1105 }
 0x229   : > { %v631_v42 = vsel %vm567_vm7, %v1106_v41, 0.0 }
 0x22a   : > { %632 = vadd.xlane.f32.xlu2 %v631_v42 }
 0x28f   : > { %v576_v43 = vpop.xlane.xlu2 %575 }
 0x290   : > { %1107 = vrcp.f32 %v576_v43 }
 0x296   : > { %v1108_v44 = vpop.eup %1107 }
 0x297   : > { %v578_v45 = vmul.f32 %v1108_v44, %v1104_v36  ;;  %v1044_v36 = vld [vmem:[%s1461_s10 + $0x10] sm:$0xff] }
 0x298   : > { %838 = vmatpush.bf16.msrb.mxu3 %v1044_v36 }
 0x299   : > { %v579_v46 = vpack.c.bf16 %v578_v45, %v578_v45 }
 0x29b   : > { %994 = vmatmul.msk.bf16.vlgmr.msra.gmra.mxu2 %vm567_vm7, %v579_v46 }
 0x29c   : > { %839 = vmatpush.bf16.msrb.mxu3 %v1043_v37 }
 0x29d   : > { %v633_v47 = vpop.xlane.xlu2 %632 }
 0x29e   : > { %1109 = vrcp.f32 %v633_v47 }
 0x29f   : > { %1111 = vrcp.f32 %v1191_v3 }
 0x2a0   : > { %840 = vmatpush.bf16.msrb.mxu3 %v1042_v38 }
 0x2a4   : > { %v1110_v48 = vpop.eup %1109 }
 0x2a5   : > { %v635_v49 = vmul.f32 %v1110_v48, %v1106_v41  ;;  %v1112_v5 = vpop.eup %1111 }
 0x2a6   : > { %v707_v6 = vmul.f32 32.0, %v1112_v5  ;;  %vm711_vm8 = vweird.f32 %v1112_v5 }
 0x2a7   : > { %v636_v50 = vpack.c.bf16 %v635_v49, %v635_v49 }
 0x2a8   : > { %v708_v7 = vsub.f32 1.0, %v707_v6 }
 0x2aa   : > { %v709_v8 = vmul.f32 %v1112_v5, %v708_v7 }
 0x2ab   : > { %996 = vmatmul.msk.bf16.vlgmr.msrb.gmra.mxu2 %vm567_vm7, %v636_v50 }
 0x2ac   : > { %v710_v9 = vadd.f32 %v1112_v5, %v709_v8 }
 0x31e   : > { %v598_v53 = vpop.f32.mrf.mxu2 }
 0x326   : > { %v600_v54 = vpop.f32.mrf.mxu2 }
 0x32e   : > { %v654_v55 = vpop.f32.mrf.mxu2 }
 0x32f   : > { %659 = vrot.lane.b32.xlu2 %v654_v55, %s1190_s15  ;;  %s882_s15 = scalar_lea.sflag [#allocation3], %s480_s0 }
 0x336   : > { %v656_v56 = vpop.f32.mrf.mxu2 }
 0x389   : > { %v660_v57 = vpop.permute.xlu2 %659 }
 0x38a   : > { %v662_v58 = vsel %vm547_vm1, %v598_v53, %v660_v57  ;;  %v1100_v53 = vld [vmem:[%s1462_s11] ss:$0 sm:$0xff] }
 0x38b   : > { %v663_v59 = vpack.c.bf16 %v662_v58, %v662_v58 }
 0x38d   : > { %1005 = vmatmul.msk.bf16.vlgmr.msrb.gmra.mxu0 %vm514_vm0, %v663_v59 }
 0x40a   : > { %v696_v61 = vpop.f32.mrf.mxu0 }
 0x40b   : > { %v697_v62 = vadd.f32 %v1096_v60, %v696_v61 }
 0x40d   : > { %v700_v63 = vadd.f32 %v697_v62, %v1331_v2  ;;  %v1368_v2 = vsel %vm711_vm8, %v1112_v5, %v710_v9 }
 0x40f   : > { %v703_v0 = vsel %vm514_vm0, %v700_v63, 0.0 }
 0x410   : > { %704 = vadd.xlane.f32.xlu0 %v703_v0 }
 0x412   : > { %v698_v1 = vpop.f32.mrf.mxu0 }
 0x483   : > { %v705_v10 = vpop.xlane.xlu0 %704 }
 0x484   : > { %v713_v11 = vmul.f32 %v1368_v2, %v705_v10  ;;  %v1101_v10 = vld [vmem:[%s1463_s12] ss:$0 sm:$0xff] }
 0x486   : > { %v714_v12 = vsub.f32 %v700_v63, %v713_v11 }
 0x488   : > { %v715_v13 = vmul.f32 %v714_v12, %v714_v12 }
 0x48a   : > { %v716_v14 = vsel %vm514_vm0, %v715_v13, 0.0 }
 0x48b   : > { %717 = vadd.xlane.f32.xlu2 %v716_v14 }
 0x4fe   : > { %v718_v17 = vpop.xlane.xlu2 %717 }
 0x4ff   : > { %v719_v18 = vmul.f32 %v718_v17, %v1368_v2 }
 0x501   : > { %v720_v19 = vadd.f32 1e-06, %v719_v18 }
 0x503   : > { %1113 = vrsqrt.f32 %v720_v19  ;;  %vm727_vm10 = vweird.f32 %v720_v19 }
 0x509   : > { %v1114_v20 = vpop.eup %1113 }
 0x50a   : > { %v722_v21 = vmul.f32 %v1114_v20, %v720_v19  ;;  %vm728_vm9 = vweird.f32 %v1114_v20 }
 0x50b   : > { %vm729_vm11 = vmor %vm727_vm10, %vm728_vm9 }
 0x50c   : > { %v723_v22 = vmul.f32 %v1114_v20, %v722_v21 }
 0x50e   : > { %v724_v23 = vmul.f32 0.5, %v723_v22 }
 0x510   : > { %v725_v24 = vsub.f32 1.5, %v724_v23 }
 0x512   : > { %v726_v25 = vmul.f32 %v1114_v20, %v725_v24 }
 0x514   : > { %v730_v27 = vsel %vm729_vm11, %v1114_v20, %v726_v25 }
 0x515   : > { %v731_v29 = vmul.f32 %v730_v27, %v714_v12  ;;  %v1102_v12 = vld [vmem:[%s1464_s13] ss:$0 sm:$0xff] }
 0x517   : > { %v735_v30 = vmul.f32 %v1097_v26, %v731_v29 }
 0x519   : > { %v739_v32 = vadd.f32 %v1098_v28, %v735_v30 }
 0x51b   : > { %v745_v33 = vmul.f32 %v1385_v31, %v739_v32 }
 0x51d   : > { %v746_v34 = vpack.c.bf16 %v745_v33, %v745_v33 }
 0x51f   : > { %1014 = vmatmul.msk.bf16.vlgmr.msrb.gmra.mxu1 %vm514_vm0, %v746_v34 }
 0x59c   : > { %v779_v40 = vpop.f32.mrf.mxu1 }
 0x59d   : > { %v780_v41 = vadd.f32 %v1099_v39, %v779_v40 }
 0x59f   : > { %v784_v42 = vmul.f32 0.044715, %v780_v41  ;;  %v783_v49 = vmul.f32 0.5, %v780_v41 }
 0x5a1   : > { %v785_v43 = vmul.f32 %v784_v42, %v780_v41 }
 0x5a3   : > { %v786_v44 = vmul.f32 %v785_v43, %v780_v41 }
 0x5a4   : > { %v781_v45 = vpop.f32.mrf.mxu1 }
 0x5a5   : > { %v787_v46 = vadd.f32 %v786_v44, %v780_v41 }
 0x5a7   : > { %v788_v47 = vmul.f32 0.7978846, %v787_v46 }
 0x5a9   : > { %1115 = vtanh.f32 %v788_v47 }
 0x5af   : > { %v1116_v48 = vpop.eup %1115 }
 0x5b0   : > { %v790_v50 = vadd.f32 1.0, %v1116_v48 }
 0x5b2   : > { %v791_v51 = vmul.f32 %v790_v50, %v783_v49 }
 0x5b4   : > { %v792_v52 = vpack.c.bf16 %v791_v51, %v791_v51 }
 0x5b6   : > { %1031 = vmatmul.msk.bf16.vlgmr.msrb.gmra.mxu3 %vm829_vm12, %v792_v52 }
 0x639   : > { %v842_v54 = vpop.f32.mrf.mxu3 }
 0x63a   : > { %v843_v55 = vadd.f32 %v1100_v53, %v842_v54 }
 0x63c   : > { %v846_v56 = vadd.f32 %v843_v55, %v745_v33 }
 0x63e   : > { %v849_v57 = vsel %vm514_vm0, %v846_v56, 0.0 }
 0x63f   : > { %850 = vadd.xlane.f32.xlu0 %v849_v57 }
 0x641   : > { %v844_v58 = vpop.f32.mrf.mxu3 }
 0x6b2   : > { %v851_v59 = vpop.xlane.xlu0 %850 }
 0x6b3   : > { %v852_v60 = vmul.f32 %v851_v59, %v1368_v2 }
 0x6b5   : > { %v853_v61 = vsub.f32 %v846_v56, %v852_v60 }
 0x6b7   : > { %v854_v62 = vmul.f32 %v853_v61, %v853_v61 }
 0x6b9   : > { %v855_v63 = vsel %vm514_vm0, %v854_v62, 0.0 }
 0x6ba   : > { %856 = vadd.xlane.f32.xlu1 %v855_v63 }
 0x72d   : > { %v857_v0 = vpop.xlane.xlu1 %856 }
 0x72e   : > { %v858_v1 = vmul.f32 %v857_v0, %v1368_v2 }
 0x730   : > { %v859_v3 = vadd.f32 1e-06, %v858_v1 }
 0x732   : > { %1117 = vrsqrt.f32 %v859_v3  ;;  %vm866_vm14 = vweird.f32 %v859_v3 }
 0x738   : > { %v1118_v4 = vpop.eup %1117 }
 0x739   : > { %v861_v5 = vmul.f32 %v1118_v4, %v859_v3  ;;  %vm867_vm13 = vweird.f32 %v1118_v4 }
 0x73a   : > { %vm868_vm15 = vmor %vm866_vm14, %vm867_vm13 }
 0x73b   : > { %v862_v6 = vmul.f32 %v1118_v4, %v861_v5 }
 0x73d   : > { %v863_v7 = vmul.f32 0.5, %v862_v6 }
 0x73f   : > { %v864_v8 = vsub.f32 1.5, %v863_v7 }
 0x741   : > { %v865_v9 = vmul.f32 %v1118_v4, %v864_v8 }
 0x743   : > { %v869_v11 = vsel %vm868_vm15, %v1118_v4, %v865_v9 }
 0x744   : > { %v870_v2 = vmul.f32 %v869_v11, %v853_v61 }
 0x746   : > { %v874_v13 = vmul.f32 %v1101_v10, %v870_v2 }
 0x748   : > { %v878_v14 = vadd.f32 %v1102_v12, %v874_v13 }
 0x74a   : > { %v879_v15 = vmul.f32 %v878_v14, %v1385_v31 }
 0x74c   : > { %880 = vst.msk [vmem:[%s482_s1] sm:$0xff] %vm514_vm0, %v879_v15 }
 0x74d   : > { %1146 = shalt.err (!%p1143_p3)
}
 0x74e   : > { %1046 = dma.vmem_to_hbm [thread:$0]  (%p1305_p5), %s895_s2, 128, %s897_s17, %s882_s15  }
 0x74f PF: > { %p1052_p4 = scmp.ge.s32.totalorder %s1181_s16, 2  ;;  %s908_s1 = sand.u32 1, %s1169_s29  }
 0x750   : > { %s909_s0 = scalar_lea.sflag [#allocation3], %s908_s1 }
 0x751   : > { %p1049_p7 = pnand %p1052_p4, %p1309_p6 }
 0x753   : > { %p1050_p8 = pneg %p1049_p7 }
 0x755   : > { %1164 = dma.done.wait (%p1050_p8), %s909_s0, 128  }
 0x756   : > { %1166 = vsyncadd (%p1050_p8), %s909_s0, 4294967168  ;;  %s1477_s18 = sld [smem:[#allocation5_spill]]  ;;  %p24_p9 = scmp.ge.s32.totalorder %s1292_s19, 4  }
 0x757   : > { %s1478_s15 = sld [smem:[#allocation6_spill]]  ;;  %s1479_s29 = smov %s1173_s30 }
 0x758   : > { %s1481_s16 = smov %s1292_s19  ;;  %26 = sbr.rel (!%p24_p9) target bundleno = 7 (0x7), region = 117 }
 0x75c   : > { %s1480_s30 = smov %s1477_s18 }
 0x75d   :  { %915 = vsyncpa [#allocation3], 1 }
 0x75e   :  { %917 = vsyncpa [#allocation3 + $0x1], 1 }

</bundles_post_ra>
